<compile_context>
chip_gen: v7x
topology: tpu7x:2x2x1
jax: 0.10.0
libtpu: 0.0.40
codegen_flags: <defaults>
</compile_context>

<pallas_src>
import jax
import jax.numpy as jnp
from jax.experimental import pallas as pl
from jax.experimental.pallas import tpu as pltpu

EPS = 1e-5  # PyTorch BatchNorm3d default eps


# ---------------------------------------------------------------------------
# Kernel factory (closures capture the static geometry)
# ---------------------------------------------------------------------------
def _make_kernels(C, Hp, Wp, R128, tap_dtype):
    HpWp = Hp * Wp
    # flat-index offsets of the 27 taps, tap order t = kd*9 + kh*3 + kw
    offs = [(kd - 1) * HpWp + (kh - 1) * Wp + (kw - 1)
            for kd in range(3) for kh in range(3) for kw in range(3)]

    def _conv(pin, w_ref, taps_ref):
        # Build the stacked (27*C, R128) taps matrix with XLU rolls (lane-dense,
        # full-row writes), then ONE MXU contraction with K = 27*C.
        # Roll wraparound only ever lands on masked pad positions: every interior
        # flat index r satisfies OFF <= r < R_pad - OFF, so r + off stays in range.
        for t, o in enumerate(offs):
            shifted = pin if o == 0 else pltpu.roll(pin, shift=(-o) % R128, axis=1)
            taps_ref[t * C:(t + 1) * C, :] = shifted.astype(tap_dtype)
        # (C, R128) f32 result, kept in vregs (no VMEM accumulator).
        return jnp.dot(w_ref[...], taps_ref[...], preferred_element_type=jnp.float32)

    def _epilogue(acc, b_ref, m_ref, o_ref, s_ref, q_ref):
        # conv + bias, a single mask multiply shared by the store and the BN
        # stats, f32 stat reduction, one lane-dense bf16 store of the full row.
        y = (acc + b_ref[...]) * m_ref[...]
        s_ref[0] = jnp.sum(y, axis=1, keepdims=True)        # (C, 1) masked sum
        q_ref[0] = jnp.sum(y * y, axis=1, keepdims=True)    # (C, 1) masked sum of squares
        o_ref[0] = y.astype(o_ref.dtype)

    # ---- stage 1: conv1 + bias (+ BN1 partial stats) -------------------------
    def conv1_kernel(x_ref, w_ref, b_ref, m_ref, o_ref, s_ref, q_ref, taps_ref):
        acc = _conv(x_ref[0], w_ref, taps_ref)
        _epilogue(acc, b_ref, m_ref, o_ref, s_ref, q_ref)

    # ---- stage 2: (BN1 + ReLU + mask fused on input) + conv2 + bias (+ stats) -
    def conv2_kernel(y1_ref, w_ref, b_ref, m_ref, sc_ref, sh_ref,
                     o_ref, s_ref, q_ref, taps_ref):
        h = jnp.maximum(y1_ref[0].astype(jnp.float32) * sc_ref[...] + sh_ref[...], 0.0)
        h = h * m_ref[...]      # re-zero pad rows (BN shift made them nonzero)
        acc = _conv(h, w_ref, taps_ref)
        _epilogue(acc, b_ref, m_ref, o_ref, s_ref, q_ref)

    # ---- stage 3: BN2 + residual add + ReLU (full lane-dense f32 store) ------
    def bn_add_relu_kernel(y2_ref, x_ref, sc_ref, sh_ref, o_ref):
        y = y2_ref[0].astype(jnp.float32)
        o_ref[0] = jnp.maximum(y * sc_ref[...] + sh_ref[...] + x_ref[0], 0.0)

    return conv1_kernel, conv2_kernel, bn_add_relu_kernel


# ---------------------------------------------------------------------------
# Wrapper
# ---------------------------------------------------------------------------
def residual_block_simplified(x, params):
    """x: (N, C, D, H, W) f32.  Conv weights in PyTorch layout (Cout, Cin, 3, 3, 3)."""
    w1, b1, g1, bt1, w2, b2, g2, bt2 = params
    N, C, D, H, W = x.shape
    Dp, Hp, Wp = D + 2, H + 2, W + 2
    R_pad = Dp * Hp * Wp
    R128 = ((R_pad + 127) // 128) * 128            # lane-dense flat width

    # bf16 stacked taps need each per-tap C-row block aligned to the packed
    # (16, 128) bf16 tile; otherwise keep taps (and weights) in f32.
    tap_dtype = jnp.bfloat16 if C % 16 == 0 else jnp.float32
    tap_bytes = 2 if tap_dtype == jnp.bfloat16 else 4

    conv1_k, conv2_k, bn_add_relu_k = _make_kernels(C, Hp, Wp, R128, tap_dtype)

    # ---- cheap host-side layout prep (single zero-padded copy, no im2col) ----
    x_pad = jnp.pad(x, ((0, 0), (0, 0), (1, 1), (1, 1), (1, 1)))
    x_flat = jnp.pad(x_pad.reshape(N, C, R_pad),
                     ((0, 0), (0, 0), (0, R128 - R_pad)))        # f32 (conv1 + residual)

    def prep_w(w):   # (Cout, Cin, 3,3,3) -> (Cout, 27*Cin), tap-major column blocks
        return jnp.transpose(w, (0, 2, 3, 4, 1)).reshape(C, 27 * C).astype(tap_dtype)

    w1s, w2s = prep_w(w1), prep_w(w2)
    b1c = b1.reshape(C, 1).astype(jnp.float32)
    b2c = b2.reshape(C, 1).astype(jnp.float32)

    # interior mask over padded flat coords (1 = real voxel, 0 = pad / lane tail)
    md = (jnp.arange(Dp) >= 1) & (jnp.arange(Dp) <= D)
    mh = (jnp.arange(Hp) >= 1) & (jnp.arange(Hp) <= H)
    mw = (jnp.arange(Wp) >= 1) & (jnp.arange(Wp) <= W)
    m = (md[:, None, None] & mh[None, :, None] & mw[None, None, :]).reshape(1, R_pad)
    m = jnp.pad(m.astype(jnp.float32), ((0, 0), (0, R128 - R_pad)))

    count = float(N * D * H * W)

    vol = pl.BlockSpec((1, C, R128), lambda n: (n, 0, 0))
    wsp = pl.BlockSpec((C, 27 * C), lambda n: (0, 0))
    cvec = pl.BlockSpec((C, 1), lambda n: (0, 0))
    msp = pl.BlockSpec((1, R128), lambda n: (0, 0))
    stat = pl.BlockSpec((1, C, 1), lambda n: (n, 0, 0))

    cparams = pltpu.CompilerParams(
        dimension_semantics=("parallel",),
        vmem_limit_bytes=64 * 1024 * 1024,
    )

    conv_out_shapes = (
        jax.ShapeDtypeStruct((N, C, R128), jnp.bfloat16),   # pre-BN activation (bf16)
        jax.ShapeDtypeStruct((N, C, 1), jnp.float32),       # per-n masked sum
        jax.ShapeDtypeStruct((N, C, 1), jnp.float32),       # per-n masked sum of squares
    )

    def conv_cost(in_bytes):
        return pl.CostEstimate(
            flops=2 * N * R128 * 27 * C * C,
            transcendentals=0,
            bytes_accessed=int(N * (C * R128 * (in_bytes + 2)
                                    + 27 * C * C * tap_bytes
                                    + R128 * 4 + 2 * C * 4)),
        )

    def finalize_stats(s, q, gamma, beta):
        # TODO(synk): E[y^2]-E[y]^2 in f32 can cancel for activations with a large
        #             mean relative to their variance; fine at these magnitudes.
        mean = jnp.sum(s[:, :, 0], axis=0) / count
        var = jnp.sum(q[:, :, 0], axis=0) / count - mean * mean
        scale = gamma * jax.lax.rsqrt(var + EPS)
        shift = beta - mean * scale
        return scale.reshape(C, 1), shift.reshape(C, 1)

    # ---- stage 1: conv1 + bias (+ BN1 partial stats) --------------------------
    y1, s1, q1 = pl.pallas_call(
        conv1_k,
        grid=(N,),
        in_specs=[vol, wsp, cvec, msp],
        out_specs=(vol, stat, stat),
        out_shape=conv_out_shapes,
        scratch_shapes=[pltpu.VMEM((27 * C, R128), tap_dtype)],
        compiler_params=cparams,
        cost_estimate=conv_cost(4),
    )(x_flat, w1s, b1c, m)

    sc1, sh1 = finalize_stats(s1, q1, g1, bt1)

    # ---- stage 2: fused BN1+ReLU+mask + conv2 + bias (+ BN2 partial stats) ----
    y2, s2, q2 = pl.pallas_call(
        conv2_k,
        grid=(N,),
        in_specs=[vol, wsp, cvec, msp, cvec, cvec],
        out_specs=(vol, stat, stat),
        out_shape=conv_out_shapes,
        scratch_shapes=[pltpu.VMEM((27 * C, R128), tap_dtype)],
        compiler_params=cparams,
        cost_estimate=conv_cost(2),
    )(y1, w2s, b2c, m, sc1, sh1)

    sc2, sh2 = finalize_stats(s2, q2, g2, bt2)

    # ---- stage 3: BN2 + residual + ReLU ---------------------------------------
    out_full = pl.pallas_call(
        bn_add_relu_k,
        grid=(N,),
        in_specs=[vol, vol, cvec, cvec],
        out_specs=vol,
        out_shape=jax.ShapeDtypeStruct((N, C, R128), jnp.float32),
        compiler_params=cparams,
        cost_estimate=pl.CostEstimate(
            flops=4 * N * C * R128, transcendentals=0,
            bytes_accessed=int(N * C * R128 * (2 + 4 + 4))),
    )(y2, x_flat, sc2, sh2)

    out = out_full[:, :, :R_pad].reshape(N, C, Dp, Hp, Wp)[:, :, 1:-1, 1:-1, 1:-1]
    return out


# ---------------------------------------------------------------------------
# Pure-JAX reference (sanity check)
# ---------------------------------------------------------------------------
def _ref_forward(x, params):
    w1, b1, g1, bt1, w2, b2, g2, bt2 = params

    def conv(h, w, b):
        y = jax.lax.conv_general_dilated(
            h, w, window_strides=(1, 1, 1), padding=[(1, 1)] * 3,
            dimension_numbers=("NCDHW", "OIDHW", "NCDHW"),
            precision=jax.lax.Precision.HIGHEST)
        return y + b.reshape(1, -1, 1, 1, 1)

    def bn(y, g, bt):
        mean = jnp.mean(y, axis=(0, 2, 3, 4), keepdims=True)
        var = jnp.mean((y - mean) ** 2, axis=(0, 2, 3, 4), keepdims=True)
        return ((y - mean) * jax.lax.rsqrt(var + EPS) * g.reshape(1, -1, 1, 1, 1)
                + bt.reshape(1, -1, 1, 1, 1))

    h = jax.nn.relu(bn(conv(x, w1, b1), g1, bt1))
    y = bn(conv(h, w2, b2), g2, bt2)
    return jax.nn.relu(y + x)


# ---------------------------------------------------------------------------
if __name__ == "__main__":
    key = jax.random.PRNGKey(0)

    def make_params(k, C):
        ks = jax.random.split(k, 8)
        w1 = 0.1 * jax.random.normal(ks[0], (C, C, 3, 3, 3), jnp.float32)
        b1 = 0.1 * jax.random.normal(ks[1], (C,), jnp.float32)
        w2 = 0.1 * jax.random.normal(ks[2], (C, C, 3, 3, 3), jnp.float32)
        b2 = 0.1 * jax.random.normal(ks[3], (C,), jnp.float32)
        g1 = 1.0 + 0.1 * jax.random.normal(ks[4], (C,), jnp.float32)
        bt1 = 0.1 * jax.random.normal(ks[5], (C,), jnp.float32)
        g2 = 1.0 + 0.1 * jax.random.normal(ks[6], (C,), jnp.float32)
        bt2 = 0.1 * jax.random.normal(ks[7], (C,), jnp.float32)
        return (w1, b1, g1, bt1, w2, b2, g2, bt2)

    # config A exercises the f32-taps path (C not a multiple of 16, R_pad=1000->1024),
    # config B exercises the bf16 stacked-taps path (C=16, R_pad=512 already 128-aligned).
    configs = [
        (2, 8, 8, 8, 8, 8e-2),
        (2, 16, 6, 6, 6, 1.5e-1),
    ]
    for i, (N, C, D, H, W, tol) in enumerate(configs):
        kx, kp = jax.random.split(jax.random.fold_in(key, i))
        x = jax.random.normal(kx, (N, C, D, H, W), jnp.float32)
        params = make_params(kp, C)

        out = jax.block_until_ready(jax.jit(residual_block_simplified)(x, params))
        ref = _ref_forward(x, params)
        err = float(jnp.max(jnp.abs(out - ref)))

        assert out.shape == (N, C, D, H, W)
        # bf16 intermediate activations (+ bf16 taps/weights in config B) vs f32 reference
        assert err < tol, f"config {i}: mismatch vs reference, max abs err = {err} >= {tol}"

    print("KERNEL_OK")
</pallas_src>

<mosaic_0001>
module attributes {stable_mosaic.version = 11 : i64} {
  func.func @conv1_kernel(%arg0: i32, %arg1: memref<1x8x1024xf32, #tpu.memory_space<vmem>>, %arg2: memref<8x216xf32, #tpu.memory_space<vmem>>, %arg3: memref<8x1xf32, #tpu.memory_space<vmem>>, %arg4: memref<1x1024xf32, #tpu.memory_space<vmem>>, %arg5: memref<1x8x1024xbf16, #tpu.memory_space<vmem>>, %arg6: memref<1x8x1xf32, #tpu.memory_space<vmem>>, %arg7: memref<1x8x1xf32, #tpu.memory_space<vmem>>, %arg8: memref<216x1024xf32, #tpu.memory_space<vmem>>) attributes {dimension_semantics = [#tpu.dimension_semantics<parallel>], iteration_bounds = array<i64: 2>, scalar_prefetch = 0 : i64, scratch_operands = 1 : i64, tpu.core_type = #tpu.core_type<tc>, window_params = [{transform_indices = @transform_0, window_bounds = array<i64: 1, 8, 1024>}, {pipeline_mode = #tpu.pipeline_mode<synchronous>, transform_indices = @transform_1, window_bounds = array<i64: 8, 216>}, {pipeline_mode = #tpu.pipeline_mode<synchronous>, transform_indices = @transform_2, window_bounds = array<i64: 8, 1>}, {pipeline_mode = #tpu.pipeline_mode<synchronous>, transform_indices = @transform_3, window_bounds = array<i64: 1, 1024>}, {transform_indices = @transform_4, window_bounds = array<i64: 1, 8, 1024>}, {transform_indices = @transform_5, window_bounds = array<i64: 1, 8, 1>}, {transform_indices = @transform_6, window_bounds = array<i64: 1, 8, 1>}]} {
    %c0 = arith.constant 0 : index
    %c0_0 = arith.constant 0 : index
    %c0_1 = arith.constant 0 : index
    %0 = vector.load %arg1[%c0, %c0_0, %c0_1] : memref<1x8x1024xf32, #tpu.memory_space<vmem>>, vector<1x8x1024xf32>
    %1 = vector.shape_cast %0 : vector<1x8x1024xf32> to vector<8x1024xf32>
    %c111_i32 = arith.constant 111 : i32
    %2 = tpu.dynamic_rotate %1 by %c111_i32 dim 1 : vector<8x1024xf32>, i32 -> vector<8x1024xf32>
    %c0_2 = arith.constant 0 : index
    %c0_3 = arith.constant 0 : index
    %3 = vector.load %arg8[%c0_2, %c0_3] : memref<216x1024xf32, #tpu.memory_space<vmem>>, vector<8x1024xf32>
    tpu.vector_store %arg8[%c0_2, %c0_3], %2 {strides = array<i32>} : memref<216x1024xf32, #tpu.memory_space<vmem>>, vector<8x1024xf32>,
    %c110_i32 = arith.constant 110 : i32
    %4 = tpu.dynamic_rotate %1 by %c110_i32 dim 1 : vector<8x1024xf32>, i32 -> vector<8x1024xf32>
    %c8 = arith.constant 8 : index
    %c0_4 = arith.constant 0 : index
    %5 = vector.load %arg8[%c8, %c0_4] : memref<216x1024xf32, #tpu.memory_space<vmem>>, vector<8x1024xf32>
    tpu.vector_store %arg8[%c8, %c0_4], %4 {strides = array<i32>} : memref<216x1024xf32, #tpu.memory_space<vmem>>, vector<8x1024xf32>,
    %c109_i32 = arith.constant 109 : i32
    %6 = tpu.dynamic_rotate %1 by %c109_i32 dim 1 : vector<8x1024xf32>, i32 -> vector<8x1024xf32>
    %c16 = arith.constant 16 : index
    %c0_5 = arith.constant 0 : index
    %7 = vector.load %arg8[%c16, %c0_5] : memref<216x1024xf32, #tpu.memory_space<vmem>>, vector<8x1024xf32>
    tpu.vector_store %arg8[%c16, %c0_5], %6 {strides = array<i32>} : memref<216x1024xf32, #tpu.memory_space<vmem>>, vector<8x1024xf32>,
    %c101_i32 = arith.constant 101 : i32
    %8 = tpu.dynamic_rotate %1 by %c101_i32 dim 1 : vector<8x1024xf32>, i32 -> vector<8x1024xf32>
    %c24 = arith.constant 24 : index
    %c0_6 = arith.constant 0 : index
    %9 = vector.load %arg8[%c24, %c0_6] : memref<216x1024xf32, #tpu.memory_space<vmem>>, vector<8x1024xf32>
    tpu.vector_store %arg8[%c24, %c0_6], %8 {strides = array<i32>} : memref<216x1024xf32, #tpu.memory_space<vmem>>, vector<8x1024xf32>,
    %c100_i32 = arith.constant 100 : i32
    %10 = tpu.dynamic_rotate %1 by %c100_i32 dim 1 : vector<8x1024xf32>, i32 -> vector<8x1024xf32>
    %c32 = arith.constant 32 : index
    %c0_7 = arith.constant 0 : index
    %11 = vector.load %arg8[%c32, %c0_7] : memref<216x1024xf32, #tpu.memory_space<vmem>>, vector<8x1024xf32>
    tpu.vector_store %arg8[%c32, %c0_7], %10 {strides = array<i32>} : memref<216x1024xf32, #tpu.memory_space<vmem>>, vector<8x1024xf32>,
    %c99_i32 = arith.constant 99 : i32
    %12 = tpu.dynamic_rotate %1 by %c99_i32 dim 1 : vector<8x1024xf32>, i32 -> vector<8x1024xf32>
    %c40 = arith.constant 40 : index
    %c0_8 = arith.constant 0 : index
    %13 = vector.load %arg8[%c40, %c0_8] : memref<216x1024xf32, #tpu.memory_space<vmem>>, vector<8x1024xf32>
    tpu.vector_store %arg8[%c40, %c0_8], %12 {strides = array<i32>} : memref<216x1024xf32, #tpu.memory_space<vmem>>, vector<8x1024xf32>,
    %c91_i32 = arith.constant 91 : i32
    %14 = tpu.dynamic_rotate %1 by %c91_i32 dim 1 : vector<8x1024xf32>, i32 -> vector<8x1024xf32>
    %c48 = arith.constant 48 : index
    %c0_9 = arith.constant 0 : index
    %15 = vector.load %arg8[%c48, %c0_9] : memref<216x1024xf32, #tpu.memory_space<vmem>>, vector<8x1024xf32>
    tpu.vector_store %arg8[%c48, %c0_9], %14 {strides = array<i32>} : memref<216x1024xf32, #tpu.memory_space<vmem>>, vector<8x1024xf32>,
    %c90_i32 = arith.constant 90 : i32
    %16 = tpu.dynamic_rotate %1 by %c90_i32 dim 1 : vector<8x1024xf32>, i32 -> vector<8x1024xf32>
    %c56 = arith.constant 56 : index
    %c0_10 = arith.constant 0 : index
    %17 = vector.load %arg8[%c56, %c0_10] : memref<216x1024xf32, #tpu.memory_space<vmem>>, vector<8x1024xf32>
    tpu.vector_store %arg8[%c56, %c0_10], %16 {strides = array<i32>} : memref<216x1024xf32, #tpu.memory_space<vmem>>, vector<8x1024xf32>,
    %c89_i32 = arith.constant 89 : i32
    %18 = tpu.dynamic_rotate %1 by %c89_i32 dim 1 : vector<8x1024xf32>, i32 -> vector<8x1024xf32>
    %c64 = arith.constant 64 : index
    %c0_11 = arith.constant 0 : index
    %19 = vector.load %arg8[%c64, %c0_11] : memref<216x1024xf32, #tpu.memory_space<vmem>>, vector<8x1024xf32>
    tpu.vector_store %arg8[%c64, %c0_11], %18 {strides = array<i32>} : memref<216x1024xf32, #tpu.memory_space<vmem>>, vector<8x1024xf32>,
    %c11_i32 = arith.constant 11 : i32
    %20 = tpu.dynamic_rotate %1 by %c11_i32 dim 1 : vector<8x1024xf32>, i32 -> vector<8x1024xf32>
    %c72 = arith.constant 72 : index
    %c0_12 = arith.constant 0 : index
    %21 = vector.load %arg8[%c72, %c0_12] : memref<216x1024xf32, #tpu.memory_space<vmem>>, vector<8x1024xf32>
    tpu.vector_store %arg8[%c72, %c0_12], %20 {strides = array<i32>} : memref<216x1024xf32, #tpu.memory_space<vmem>>, vector<8x1024xf32>,
    %c10_i32 = arith.constant 10 : i32
    %22 = tpu.dynamic_rotate %1 by %c10_i32 dim 1 : vector<8x1024xf32>, i32 -> vector<8x1024xf32>
    %c80 = arith.constant 80 : index
    %c0_13 = arith.constant 0 : index
    %23 = vector.load %arg8[%c80, %c0_13] : memref<216x1024xf32, #tpu.memory_space<vmem>>, vector<8x1024xf32>
    tpu.vector_store %arg8[%c80, %c0_13], %22 {strides = array<i32>} : memref<216x1024xf32, #tpu.memory_space<vmem>>, vector<8x1024xf32>,
    %c9_i32 = arith.constant 9 : i32
    %24 = tpu.dynamic_rotate %1 by %c9_i32 dim 1 : vector<8x1024xf32>, i32 -> vector<8x1024xf32>
    %c88 = arith.constant 88 : index
    %c0_14 = arith.constant 0 : index
    %25 = vector.load %arg8[%c88, %c0_14] : memref<216x1024xf32, #tpu.memory_space<vmem>>, vector<8x1024xf32>
    tpu.vector_store %arg8[%c88, %c0_14], %24 {strides = array<i32>} : memref<216x1024xf32, #tpu.memory_space<vmem>>, vector<8x1024xf32>,
    %c1_i32 = arith.constant 1 : i32
    %26 = tpu.dynamic_rotate %1 by %c1_i32 dim 1 : vector<8x1024xf32>, i32 -> vector<8x1024xf32>
    %c96 = arith.constant 96 : index
    %c0_15 = arith.constant 0 : index
    %27 = vector.load %arg8[%c96, %c0_15] : memref<216x1024xf32, #tpu.memory_space<vmem>>, vector<8x1024xf32>
    tpu.vector_store %arg8[%c96, %c0_15], %26 {strides = array<i32>} : memref<216x1024xf32, #tpu.memory_space<vmem>>, vector<8x1024xf32>,
    %c104 = arith.constant 104 : index
    %c0_16 = arith.constant 0 : index
    %28 = vector.load %arg8[%c104, %c0_16] : memref<216x1024xf32, #tpu.memory_space<vmem>>, vector<8x1024xf32>
    tpu.vector_store %arg8[%c104, %c0_16], %1 {strides = array<i32>} : memref<216x1024xf32, #tpu.memory_space<vmem>>, vector<8x1024xf32>,
    %c1023_i32 = arith.constant 1023 : i32
    %29 = tpu.dynamic_rotate %1 by %c1023_i32 dim 1 : vector<8x1024xf32>, i32 -> vector<8x1024xf32>
    %c112 = arith.constant 112 : index
    %c0_17 = arith.constant 0 : index
    %30 = vector.load %arg8[%c112, %c0_17] : memref<216x1024xf32, #tpu.memory_space<vmem>>, vector<8x1024xf32>
    tpu.vector_store %arg8[%c112, %c0_17], %29 {strides = array<i32>} : memref<216x1024xf32, #tpu.memory_space<vmem>>, vector<8x1024xf32>,
    %c1015_i32 = arith.constant 1015 : i32
    %31 = tpu.dynamic_rotate %1 by %c1015_i32 dim 1 : vector<8x1024xf32>, i32 -> vector<8x1024xf32>
    %c120 = arith.constant 120 : index
    %c0_18 = arith.constant 0 : index
    %32 = vector.load %arg8[%c120, %c0_18] : memref<216x1024xf32, #tpu.memory_space<vmem>>, vector<8x1024xf32>
    tpu.vector_store %arg8[%c120, %c0_18], %31 {strides = array<i32>} : memref<216x1024xf32, #tpu.memory_space<vmem>>, vector<8x1024xf32>,
    %c1014_i32 = arith.constant 1014 : i32
    %33 = tpu.dynamic_rotate %1 by %c1014_i32 dim 1 : vector<8x1024xf32>, i32 -> vector<8x1024xf32>
    %c128 = arith.constant 128 : index
    %c0_19 = arith.constant 0 : index
    %34 = vector.load %arg8[%c128, %c0_19] : memref<216x1024xf32, #tpu.memory_space<vmem>>, vector<8x1024xf32>
    tpu.vector_store %arg8[%c128, %c0_19], %33 {strides = array<i32>} : memref<216x1024xf32, #tpu.memory_space<vmem>>, vector<8x1024xf32>,
    %c1013_i32 = arith.constant 1013 : i32
    %35 = tpu.dynamic_rotate %1 by %c1013_i32 dim 1 : vector<8x1024xf32>, i32 -> vector<8x1024xf32>
    %c136 = arith.constant 136 : index
    %c0_20 = arith.constant 0 : index
    %36 = vector.load %arg8[%c136, %c0_20] : memref<216x1024xf32, #tpu.memory_space<vmem>>, vector<8x1024xf32>
    tpu.vector_store %arg8[%c136, %c0_20], %35 {strides = array<i32>} : memref<216x1024xf32, #tpu.memory_space<vmem>>, vector<8x1024xf32>,
    %c935_i32 = arith.constant 935 : i32
    %37 = tpu.dynamic_rotate %1 by %c935_i32 dim 1 : vector<8x1024xf32>, i32 -> vector<8x1024xf32>
    %c144 = arith.constant 144 : index
    %c0_21 = arith.constant 0 : index
    %38 = vector.load %arg8[%c144, %c0_21] : memref<216x1024xf32, #tpu.memory_space<vmem>>, vector<8x1024xf32>
    tpu.vector_store %arg8[%c144, %c0_21], %37 {strides = array<i32>} : memref<216x1024xf32, #tpu.memory_space<vmem>>, vector<8x1024xf32>,
    %c934_i32 = arith.constant 934 : i32
    %39 = tpu.dynamic_rotate %1 by %c934_i32 dim 1 : vector<8x1024xf32>, i32 -> vector<8x1024xf32>
    %c152 = arith.constant 152 : index
    %c0_22 = arith.constant 0 : index
    %40 = vector.load %arg8[%c152, %c0_22] : memref<216x1024xf32, #tpu.memory_space<vmem>>, vector<8x1024xf32>
    tpu.vector_store %arg8[%c152, %c0_22], %39 {strides = array<i32>} : memref<216x1024xf32, #tpu.memory_space<vmem>>, vector<8x1024xf32>,
    %c933_i32 = arith.constant 933 : i32
    %41 = tpu.dynamic_rotate %1 by %c933_i32 dim 1 : vector<8x1024xf32>, i32 -> vector<8x1024xf32>
    %c160 = arith.constant 160 : index
    %c0_23 = arith.constant 0 : index
    %42 = vector.load %arg8[%c160, %c0_23] : memref<216x1024xf32, #tpu.memory_space<vmem>>, vector<8x1024xf32>
    tpu.vector_store %arg8[%c160, %c0_23], %41 {strides = array<i32>} : memref<216x1024xf32, #tpu.memory_space<vmem>>, vector<8x1024xf32>,
    %c925_i32 = arith.constant 925 : i32
    %43 = tpu.dynamic_rotate %1 by %c925_i32 dim 1 : vector<8x1024xf32>, i32 -> vector<8x1024xf32>
    %c168 = arith.constant 168 : index
    %c0_24 = arith.constant 0 : index
    %44 = vector.load %arg8[%c168, %c0_24] : memref<216x1024xf32, #tpu.memory_space<vmem>>, vector<8x1024xf32>
    tpu.vector_store %arg8[%c168, %c0_24], %43 {strides = array<i32>} : memref<216x1024xf32, #tpu.memory_space<vmem>>, vector<8x1024xf32>,
    %c924_i32 = arith.constant 924 : i32
    %45 = tpu.dynamic_rotate %1 by %c924_i32 dim 1 : vector<8x1024xf32>, i32 -> vector<8x1024xf32>
    %c176 = arith.constant 176 : index
    %c0_25 = arith.constant 0 : index
    %46 = vector.load %arg8[%c176, %c0_25] : memref<216x1024xf32, #tpu.memory_space<vmem>>, vector<8x1024xf32>
    tpu.vector_store %arg8[%c176, %c0_25], %45 {strides = array<i32>} : memref<216x1024xf32, #tpu.memory_space<vmem>>, vector<8x1024xf32>,
    %c923_i32 = arith.constant 923 : i32
    %47 = tpu.dynamic_rotate %1 by %c923_i32 dim 1 : vector<8x1024xf32>, i32 -> vector<8x1024xf32>
    %c184 = arith.constant 184 : index
    %c0_26 = arith.constant 0 : index
    %48 = vector.load %arg8[%c184, %c0_26] : memref<216x1024xf32, #tpu.memory_space<vmem>>, vector<8x1024xf32>
    tpu.vector_store %arg8[%c184, %c0_26], %47 {strides = array<i32>} : memref<216x1024xf32, #tpu.memory_space<vmem>>, vector<8x1024xf32>,
    %c915_i32 = arith.constant 915 : i32
    %49 = tpu.dynamic_rotate %1 by %c915_i32 dim 1 : vector<8x1024xf32>, i32 -> vector<8x1024xf32>
    %c192 = arith.constant 192 : index
    %c0_27 = arith.constant 0 : index
    %50 = vector.load %arg8[%c192, %c0_27] : memref<216x1024xf32, #tpu.memory_space<vmem>>, vector<8x1024xf32>
    tpu.vector_store %arg8[%c192, %c0_27], %49 {strides = array<i32>} : memref<216x1024xf32, #tpu.memory_space<vmem>>, vector<8x1024xf32>,
    %c914_i32 = arith.constant 914 : i32
    %51 = tpu.dynamic_rotate %1 by %c914_i32 dim 1 : vector<8x1024xf32>, i32 -> vector<8x1024xf32>
    %c200 = arith.constant 200 : index
    %c0_28 = arith.constant 0 : index
    %52 = vector.load %arg8[%c200, %c0_28] : memref<216x1024xf32, #tpu.memory_space<vmem>>, vector<8x1024xf32>
    tpu.vector_store %arg8[%c200, %c0_28], %51 {strides = array<i32>} : memref<216x1024xf32, #tpu.memory_space<vmem>>, vector<8x1024xf32>,
    %c913_i32 = arith.constant 913 : i32
    %53 = tpu.dynamic_rotate %1 by %c913_i32 dim 1 : vector<8x1024xf32>, i32 -> vector<8x1024xf32>
    %c208 = arith.constant 208 : index
    %c0_29 = arith.constant 0 : index
    %54 = vector.load %arg8[%c208, %c0_29] : memref<216x1024xf32, #tpu.memory_space<vmem>>, vector<8x1024xf32>
    tpu.vector_store %arg8[%c208, %c0_29], %53 {strides = array<i32>} : memref<216x1024xf32, #tpu.memory_space<vmem>>, vector<8x1024xf32>,
    %c0_30 = arith.constant 0 : index
    %c0_31 = arith.constant 0 : index
    %55 = vector.load %arg2[%c0_30, %c0_31] : memref<8x216xf32, #tpu.memory_space<vmem>>, vector<8x216xf32>
    %c0_32 = arith.constant 0 : index
    %c0_33 = arith.constant 0 : index
    %56 = vector.load %arg8[%c0_32, %c0_33] : memref<216x1024xf32, #tpu.memory_space<vmem>>, vector<216x1024xf32>
    %cst = arith.constant dense<0.000000e+00> : vector<8x1024xf32>
    %57 = tpu.matmul %55, %56, %cst {dimension_numbers = #tpu.dot_dimension_numbers<[1], [0], [0], [1], [0, 0, 1, 1], [], []>} : vector<8x216xf32>, vector<216x1024xf32>, vector<8x1024xf32> -> vector<8x1024xf32>
    %c0_34 = arith.constant 0 : index
    %c0_35 = arith.constant 0 : index
    %58 = vector.load %arg3[%c0_34, %c0_35] : memref<8x1xf32, #tpu.memory_space<vmem>>, vector<8x1xf32>
    %59 = vector.broadcast %58 : vector<8x1xf32> to vector<8x1024xf32>
    %60 = arith.addf %57, %59 : vector<8x1024xf32>
    %c0_36 = arith.constant 0 : index
    %c0_37 = arith.constant 0 : index
    %61 = vector.load %arg4[%c0_36, %c0_37] : memref<1x1024xf32, #tpu.memory_space<vmem>>, vector<1x1024xf32>
    %62 = vector.broadcast %61 : vector<1x1024xf32> to vector<8x1024xf32>
    %63 = arith.mulf %60, %62 : vector<8x1024xf32>
    %cst_38 = arith.constant dense<0.000000e+00> : vector<8xf32>
    %64 = vector.multi_reduction <add>, %63, %cst_38 [1] : vector<8x1024xf32> to vector<8xf32>
    %65 = vector.shape_cast %64 : vector<8xf32> to vector<8x1xf32>
    %c0_39 = arith.constant 0 : index
    %c0_40 = arith.constant 0 : index
    %c0_41 = arith.constant 0 : index
    %66 = vector.load %arg6[%c0_39, %c0_40, %c0_41] : memref<1x8x1xf32, #tpu.memory_space<vmem>>, vector<1x8x1xf32>
    %67 = vector.shape_cast %66 : vector<1x8x1xf32> to vector<8x1xf32>
    %68 = vector.shape_cast %65 : vector<8x1xf32> to vector<1x8x1xf32>
    tpu.vector_store %arg6[%c0_39, %c0_40, %c0_41], %68 {strides = array<i32>} : memref<1x8x1xf32, #tpu.memory_space<vmem>>, vector<1x8x1xf32>,
    %69 = arith.mulf %63, %63 : vector<8x1024xf32>
    %cst_42 = arith.constant dense<0.000000e+00> : vector<8xf32>
    %70 = vector.multi_reduction <add>, %69, %cst_42 [1] : vector<8x1024xf32> to vector<8xf32>
    %71 = vector.shape_cast %70 : vector<8xf32> to vector<8x1xf32>
    %c0_43 = arith.constant 0 : index
    %c0_44 = arith.constant 0 : index
    %c0_45 = arith.constant 0 : index
    %72 = vector.load %arg7[%c0_43, %c0_44, %c0_45] : memref<1x8x1xf32, #tpu.memory_space<vmem>>, vector<1x8x1xf32>
    %73 = vector.shape_cast %72 : vector<1x8x1xf32> to vector<8x1xf32>
    %74 = vector.shape_cast %71 : vector<8x1xf32> to vector<1x8x1xf32>
    tpu.vector_store %arg7[%c0_43, %c0_44, %c0_45], %74 {strides = array<i32>} : memref<1x8x1xf32, #tpu.memory_space<vmem>>, vector<1x8x1xf32>,
    %75 = arith.truncf %63 : vector<8x1024xf32> to vector<8x1024xbf16>
    %c0_46 = arith.constant 0 : index
    %c0_47 = arith.constant 0 : index
    %c0_48 = arith.constant 0 : index
    %76 = vector.load %arg5[%c0_46, %c0_47, %c0_48] : memref<1x8x1024xbf16, #tpu.memory_space<vmem>>, vector<1x8x1024xbf16>
    %77 = vector.shape_cast %76 : vector<1x8x1024xbf16> to vector<8x1024xbf16>
    %78 = vector.shape_cast %75 : vector<8x1024xbf16> to vector<1x8x1024xbf16>
    tpu.vector_store %arg5[%c0_46, %c0_47, %c0_48], %78 {strides = array<i32>} : memref<1x8x1024xbf16, #tpu.memory_space<vmem>>, vector<1x8x1024xbf16>,
    return
  }
  func.func @transform_0(%arg0: i32) -> (i32, i32, i32) {
    %c0_i32 = arith.constant 0 : i32
    %c0_i32_0 = arith.constant 0 : i32
    %c0_i32_1 = arith.constant 0 : i32
    return %arg0, %c0_i32, %c0_i32_0 : i32, i32, i32
  }
  func.func @transform_1(%arg0: i32) -> (i32, i32) {
    %c0_i32 = arith.constant 0 : i32
    %c0_i32_0 = arith.constant 0 : i32
    %c0_i32_1 = arith.constant 0 : i32
    return %c0_i32, %c0_i32_0 : i32, i32
  }
  func.func @transform_2(%arg0: i32) -> (i32, i32) {
    %c0_i32 = arith.constant 0 : i32
    %c0_i32_0 = arith.constant 0 : i32
    %c0_i32_1 = arith.constant 0 : i32
    return %c0_i32, %c0_i32_0 : i32, i32
  }
  func.func @transform_3(%arg0: i32) -> (i32, i32) {
    %c0_i32 = arith.constant 0 : i32
    %c0_i32_0 = arith.constant 0 : i32
    %c0_i32_1 = arith.constant 0 : i32
    return %c0_i32, %c0_i32_0 : i32, i32
  }
  func.func @transform_4(%arg0: i32) -> (i32, i32, i32) {
    %c0_i32 = arith.constant 0 : i32
    %c0_i32_0 = arith.constant 0 : i32
    %c0_i32_1 = arith.constant 0 : i32
    return %arg0, %c0_i32, %c0_i32_0 : i32, i32, i32
  }
  func.func @transform_5(%arg0: i32) -> (i32, i32, i32) {
    %c0_i32 = arith.constant 0 : i32
    %c0_i32_0 = arith.constant 0 : i32
    %c0_i32_1 = arith.constant 0 : i32
    return %arg0, %c0_i32, %c0_i32_0 : i32, i32, i32
  }
  func.func @transform_6(%arg0: i32) -> (i32, i32, i32) {
    %c0_i32 = arith.constant 0 : i32
    %c0_i32_0 = arith.constant 0 : i32
    %c0_i32_1 = arith.constant 0 : i32
    return %arg0, %c0_i32, %c0_i32_0 : i32, i32, i32
  }
}

module attributes {stable_mosaic.version = 11 : i64} {
  func.func @conv2_kernel(%arg0: i32, %arg1: memref<1x8x1024xbf16, #tpu.memory_space<vmem>>, %arg2: memref<8x216xf32, #tpu.memory_space<vmem>>, %arg3: memref<8x1xf32, #tpu.memory_space<vmem>>, %arg4: memref<1x1024xf32, #tpu.memory_space<vmem>>, %arg5: memref<8x1xf32, #tpu.memory_space<vmem>>, %arg6: memref<8x1xf32, #tpu.memory_space<vmem>>, %arg7: memref<1x8x1024xbf16, #tpu.memory_space<vmem>>, %arg8: memref<1x8x1xf32, #tpu.memory_space<vmem>>, %arg9: memref<1x8x1xf32, #tpu.memory_space<vmem>>, %arg10: memref<216x1024xf32, #tpu.memory_space<vmem>>) attributes {dimension_semantics = [#tpu.dimension_semantics<parallel>], iteration_bounds = array<i64: 2>, scalar_prefetch = 0 : i64, scratch_operands = 1 : i64, tpu.core_type = #tpu.core_type<tc>, window_params = [{transform_indices = @transform_0, window_bounds = array<i64: 1, 8, 1024>}, {pipeline_mode = #tpu.pipeline_mode<synchronous>, transform_indices = @transform_1, window_bounds = array<i64: 8, 216>}, {pipeline_mode = #tpu.pipeline_mode<synchronous>, transform_indices = @transform_2, window_bounds = array<i64: 8, 1>}, {pipeline_mode = #tpu.pipeline_mode<synchronous>, transform_indices = @transform_3, window_bounds = array<i64: 1, 1024>}, {pipeline_mode = #tpu.pipeline_mode<synchronous>, transform_indices = @transform_4, window_bounds = array<i64: 8, 1>}, {pipeline_mode = #tpu.pipeline_mode<synchronous>, transform_indices = @transform_5, window_bounds = array<i64: 8, 1>}, {transform_indices = @transform_6, window_bounds = array<i64: 1, 8, 1024>}, {transform_indices = @transform_7, window_bounds = array<i64: 1, 8, 1>}, {transform_indices = @transform_8, window_bounds = array<i64: 1, 8, 1>}]} {
    %c0 = arith.constant 0 : index
    %c0_0 = arith.constant 0 : index
    %c0_1 = arith.constant 0 : index
    %0 = vector.load %arg1[%c0, %c0_0, %c0_1] : memref<1x8x1024xbf16, #tpu.memory_space<vmem>>, vector<1x8x1024xbf16>
    %1 = vector.shape_cast %0 : vector<1x8x1024xbf16> to vector<8x1024xbf16>
    %2 = arith.extf %1 : vector<8x1024xbf16> to vector<8x1024xf32>
    %c0_2 = arith.constant 0 : index
    %c0_3 = arith.constant 0 : index
    %3 = vector.load %arg5[%c0_2, %c0_3] : memref<8x1xf32, #tpu.memory_space<vmem>>, vector<8x1xf32>
    %4 = vector.broadcast %3 : vector<8x1xf32> to vector<8x1024xf32>
    %5 = arith.mulf %2, %4 : vector<8x1024xf32>
    %c0_4 = arith.constant 0 : index
    %c0_5 = arith.constant 0 : index
    %6 = vector.load %arg6[%c0_4, %c0_5] : memref<8x1xf32, #tpu.memory_space<vmem>>, vector<8x1xf32>
    %7 = vector.broadcast %6 : vector<8x1xf32> to vector<8x1024xf32>
    %8 = arith.addf %5, %7 : vector<8x1024xf32>
    %cst = arith.constant 0.000000e+00 : f32
    %9 = vector.broadcast %cst : f32 to vector<8x1024xf32>
    %10 = arith.maximumf %8, %9 : vector<8x1024xf32>
    %c0_6 = arith.constant 0 : index
    %c0_7 = arith.constant 0 : index
    %11 = vector.load %arg4[%c0_6, %c0_7] : memref<1x1024xf32, #tpu.memory_space<vmem>>, vector<1x1024xf32>
    %12 = vector.broadcast %11 : vector<1x1024xf32> to vector<8x1024xf32>
    %13 = arith.mulf %10, %12 : vector<8x1024xf32>
    %c111_i32 = arith.constant 111 : i32
    %14 = tpu.dynamic_rotate %13 by %c111_i32 dim 1 : vector<8x1024xf32>, i32 -> vector<8x1024xf32>
    %c0_8 = arith.constant 0 : index
    %c0_9 = arith.constant 0 : index
    %15 = vector.load %arg10[%c0_8, %c0_9] : memref<216x1024xf32, #tpu.memory_space<vmem>>, vector<8x1024xf32>
    tpu.vector_store %arg10[%c0_8, %c0_9], %14 {strides = array<i32>} : memref<216x1024xf32, #tpu.memory_space<vmem>>, vector<8x1024xf32>,
    %c110_i32 = arith.constant 110 : i32
    %16 = tpu.dynamic_rotate %13 by %c110_i32 dim 1 : vector<8x1024xf32>, i32 -> vector<8x1024xf32>
    %c8 = arith.constant 8 : index
    %c0_10 = arith.constant 0 : index
    %17 = vector.load %arg10[%c8, %c0_10] : memref<216x1024xf32, #tpu.memory_space<vmem>>, vector<8x1024xf32>
    tpu.vector_store %arg10[%c8, %c0_10], %16 {strides = array<i32>} : memref<216x1024xf32, #tpu.memory_space<vmem>>, vector<8x1024xf32>,
    %c109_i32 = arith.constant 109 : i32
    %18 = tpu.dynamic_rotate %13 by %c109_i32 dim 1 : vector<8x1024xf32>, i32 -> vector<8x1024xf32>
    %c16 = arith.constant 16 : index
    %c0_11 = arith.constant 0 : index
    %19 = vector.load %arg10[%c16, %c0_11] : memref<216x1024xf32, #tpu.memory_space<vmem>>, vector<8x1024xf32>
    tpu.vector_store %arg10[%c16, %c0_11], %18 {strides = array<i32>} : memref<216x1024xf32, #tpu.memory_space<vmem>>, vector<8x1024xf32>,
    %c101_i32 = arith.constant 101 : i32
    %20 = tpu.dynamic_rotate %13 by %c101_i32 dim 1 : vector<8x1024xf32>, i32 -> vector<8x1024xf32>
    %c24 = arith.constant 24 : index
    %c0_12 = arith.constant 0 : index
    %21 = vector.load %arg10[%c24, %c0_12] : memref<216x1024xf32, #tpu.memory_space<vmem>>, vector<8x1024xf32>
    tpu.vector_store %arg10[%c24, %c0_12], %20 {strides = array<i32>} : memref<216x1024xf32, #tpu.memory_space<vmem>>, vector<8x1024xf32>,
    %c100_i32 = arith.constant 100 : i32
    %22 = tpu.dynamic_rotate %13 by %c100_i32 dim 1 : vector<8x1024xf32>, i32 -> vector<8x1024xf32>
    %c32 = arith.constant 32 : index
    %c0_13 = arith.constant 0 : index
    %23 = vector.load %arg10[%c32, %c0_13] : memref<216x1024xf32, #tpu.memory_space<vmem>>, vector<8x1024xf32>
    tpu.vector_store %arg10[%c32, %c0_13], %22 {strides = array<i32>} : memref<216x1024xf32, #tpu.memory_space<vmem>>, vector<8x1024xf32>,
    %c99_i32 = arith.constant 99 : i32
    %24 = tpu.dynamic_rotate %13 by %c99_i32 dim 1 : vector<8x1024xf32>, i32 -> vector<8x1024xf32>
    %c40 = arith.constant 40 : index
    %c0_14 = arith.constant 0 : index
    %25 = vector.load %arg10[%c40, %c0_14] : memref<216x1024xf32, #tpu.memory_space<vmem>>, vector<8x1024xf32>
    tpu.vector_store %arg10[%c40, %c0_14], %24 {strides = array<i32>} : memref<216x1024xf32, #tpu.memory_space<vmem>>, vector<8x1024xf32>,
    %c91_i32 = arith.constant 91 : i32
    %26 = tpu.dynamic_rotate %13 by %c91_i32 dim 1 : vector<8x1024xf32>, i32 -> vector<8x1024xf32>
    %c48 = arith.constant 48 : index
    %c0_15 = arith.constant 0 : index
    %27 = vector.load %arg10[%c48, %c0_15] : memref<216x1024xf32, #tpu.memory_space<vmem>>, vector<8x1024xf32>
    tpu.vector_store %arg10[%c48, %c0_15], %26 {strides = array<i32>} : memref<216x1024xf32, #tpu.memory_space<vmem>>, vector<8x1024xf32>,
    %c90_i32 = arith.constant 90 : i32
    %28 = tpu.dynamic_rotate %13 by %c90_i32 dim 1 : vector<8x1024xf32>, i32 -> vector<8x1024xf32>
    %c56 = arith.constant 56 : index
    %c0_16 = arith.constant 0 : index
    %29 = vector.load %arg10[%c56, %c0_16] : memref<216x1024xf32, #tpu.memory_space<vmem>>, vector<8x1024xf32>
    tpu.vector_store %arg10[%c56, %c0_16], %28 {strides = array<i32>} : memref<216x1024xf32, #tpu.memory_space<vmem>>, vector<8x1024xf32>,
    %c89_i32 = arith.constant 89 : i32
    %30 = tpu.dynamic_rotate %13 by %c89_i32 dim 1 : vector<8x1024xf32>, i32 -> vector<8x1024xf32>
    %c64 = arith.constant 64 : index
    %c0_17 = arith.constant 0 : index
    %31 = vector.load %arg10[%c64, %c0_17] : memref<216x1024xf32, #tpu.memory_space<vmem>>, vector<8x1024xf32>
    tpu.vector_store %arg10[%c64, %c0_17], %30 {strides = array<i32>} : memref<216x1024xf32, #tpu.memory_space<vmem>>, vector<8x1024xf32>,
    %c11_i32 = arith.constant 11 : i32
    %32 = tpu.dynamic_rotate %13 by %c11_i32 dim 1 : vector<8x1024xf32>, i32 -> vector<8x1024xf32>
    %c72 = arith.constant 72 : index
    %c0_18 = arith.constant 0 : index
    %33 = vector.load %arg10[%c72, %c0_18] : memref<216x1024xf32, #tpu.memory_space<vmem>>, vector<8x1024xf32>
    tpu.vector_store %arg10[%c72, %c0_18], %32 {strides = array<i32>} : memref<216x1024xf32, #tpu.memory_space<vmem>>, vector<8x1024xf32>,
    %c10_i32 = arith.constant 10 : i32
    %34 = tpu.dynamic_rotate %13 by %c10_i32 dim 1 : vector<8x1024xf32>, i32 -> vector<8x1024xf32>
    %c80 = arith.constant 80 : index
    %c0_19 = arith.constant 0 : index
    %35 = vector.load %arg10[%c80, %c0_19] : memref<216x1024xf32, #tpu.memory_space<vmem>>, vector<8x1024xf32>
    tpu.vector_store %arg10[%c80, %c0_19], %34 {strides = array<i32>} : memref<216x1024xf32, #tpu.memory_space<vmem>>, vector<8x1024xf32>,
    %c9_i32 = arith.constant 9 : i32
    %36 = tpu.dynamic_rotate %13 by %c9_i32 dim 1 : vector<8x1024xf32>, i32 -> vector<8x1024xf32>
    %c88 = arith.constant 88 : index
    %c0_20 = arith.constant 0 : index
    %37 = vector.load %arg10[%c88, %c0_20] : memref<216x1024xf32, #tpu.memory_space<vmem>>, vector<8x1024xf32>
    tpu.vector_store %arg10[%c88, %c0_20], %36 {strides = array<i32>} : memref<216x1024xf32, #tpu.memory_space<vmem>>, vector<8x1024xf32>,
    %c1_i32 = arith.constant 1 : i32
    %38 = tpu.dynamic_rotate %13 by %c1_i32 dim 1 : vector<8x1024xf32>, i32 -> vector<8x1024xf32>
    %c96 = arith.constant 96 : index
    %c0_21 = arith.constant 0 : index
    %39 = vector.load %arg10[%c96, %c0_21] : memref<216x1024xf32, #tpu.memory_space<vmem>>, vector<8x1024xf32>
    tpu.vector_store %arg10[%c96, %c0_21], %38 {strides = array<i32>} : memref<216x1024xf32, #tpu.memory_space<vmem>>, vector<8x1024xf32>,
    %c104 = arith.constant 104 : index
    %c0_22 = arith.constant 0 : index
    %40 = vector.load %arg10[%c104, %c0_22] : memref<216x1024xf32, #tpu.memory_space<vmem>>, vector<8x1024xf32>
    tpu.vector_store %arg10[%c104, %c0_22], %13 {strides = array<i32>} : memref<216x1024xf32, #tpu.memory_space<vmem>>, vector<8x1024xf32>,
    %c1023_i32 = arith.constant 1023 : i32
    %41 = tpu.dynamic_rotate %13 by %c1023_i32 dim 1 : vector<8x1024xf32>, i32 -> vector<8x1024xf32>
    %c112 = arith.constant 112 : index
    %c0_23 = arith.constant 0 : index
    %42 = vector.load %arg10[%c112, %c0_23] : memref<216x1024xf32, #tpu.memory_space<vmem>>, vector<8x1024xf32>
    tpu.vector_store %arg10[%c112, %c0_23], %41 {strides = array<i32>} : memref<216x1024xf32, #tpu.memory_space<vmem>>, vector<8x1024xf32>,
    %c1015_i32 = arith.constant 1015 : i32
    %43 = tpu.dynamic_rotate %13 by %c1015_i32 dim 1 : vector<8x1024xf32>, i32 -> vector<8x1024xf32>
    %c120 = arith.constant 120 : index
    %c0_24 = arith.constant 0 : index
    %44 = vector.load %arg10[%c120, %c0_24] : memref<216x1024xf32, #tpu.memory_space<vmem>>, vector<8x1024xf32>
    tpu.vector_store %arg10[%c120, %c0_24], %43 {strides = array<i32>} : memref<216x1024xf32, #tpu.memory_space<vmem>>, vector<8x1024xf32>,
    %c1014_i32 = arith.constant 1014 : i32
    %45 = tpu.dynamic_rotate %13 by %c1014_i32 dim 1 : vector<8x1024xf32>, i32 -> vector<8x1024xf32>
    %c128 = arith.constant 128 : index
    %c0_25 = arith.constant 0 : index
    %46 = vector.load %arg10[%c128, %c0_25] : memref<216x1024xf32, #tpu.memory_space<vmem>>, vector<8x1024xf32>
    tpu.vector_store %arg10[%c128, %c0_25], %45 {strides = array<i32>} : memref<216x1024xf32, #tpu.memory_space<vmem>>, vector<8x1024xf32>,
    %c1013_i32 = arith.constant 1013 : i32
    %47 = tpu.dynamic_rotate %13 by %c1013_i32 dim 1 : vector<8x1024xf32>, i32 -> vector<8x1024xf32>
    %c136 = arith.constant 136 : index
    %c0_26 = arith.constant 0 : index
    %48 = vector.load %arg10[%c136, %c0_26] : memref<216x1024xf32, #tpu.memory_space<vmem>>, vector<8x1024xf32>
    tpu.vector_store %arg10[%c136, %c0_26], %47 {strides = array<i32>} : memref<216x1024xf32, #tpu.memory_space<vmem>>, vector<8x1024xf32>,
    %c935_i32 = arith.constant 935 : i32
    %49 = tpu.dynamic_rotate %13 by %c935_i32 dim 1 : vector<8x1024xf32>, i32 -> vector<8x1024xf32>
    %c144 = arith.constant 144 : index
    %c0_27 = arith.constant 0 : index
    %50 = vector.load %arg10[%c144, %c0_27] : memref<216x1024xf32, #tpu.memory_space<vmem>>, vector<8x1024xf32>
    tpu.vector_store %arg10[%c144, %c0_27], %49 {strides = array<i32>} : memref<216x1024xf32, #tpu.memory_space<vmem>>, vector<8x1024xf32>,
    %c934_i32 = arith.constant 934 : i32
    %51 = tpu.dynamic_rotate %13 by %c934_i32 dim 1 : vector<8x1024xf32>, i32 -> vector<8x1024xf32>
    %c152 = arith.constant 152 : index
    %c0_28 = arith.constant 0 : index
    %52 = vector.load %arg10[%c152, %c0_28] : memref<216x1024xf32, #tpu.memory_space<vmem>>, vector<8x1024xf32>
    tpu.vector_store %arg10[%c152, %c0_28], %51 {strides = array<i32>} : memref<216x1024xf32, #tpu.memory_space<vmem>>, vector<8x1024xf32>,
    %c933_i32 = arith.constant 933 : i32
    %53 = tpu.dynamic_rotate %13 by %c933_i32 dim 1 : vector<8x1024xf32>, i32 -> vector<8x1024xf32>
    %c160 = arith.constant 160 : index
    %c0_29 = arith.constant 0 : index
    %54 = vector.load %arg10[%c160, %c0_29] : memref<216x1024xf32, #tpu.memory_space<vmem>>, vector<8x1024xf32>
    tpu.vector_store %arg10[%c160, %c0_29], %53 {strides = array<i32>} : memref<216x1024xf32, #tpu.memory_space<vmem>>, vector<8x1024xf32>,
    %c925_i32 = arith.constant 925 : i32
    %55 = tpu.dynamic_rotate %13 by %c925_i32 dim 1 : vector<8x1024xf32>, i32 -> vector<8x1024xf32>
    %c168 = arith.constant 168 : index
    %c0_30 = arith.constant 0 : index
    %56 = vector.load %arg10[%c168, %c0_30] : memref<216x1024xf32, #tpu.memory_space<vmem>>, vector<8x1024xf32>
    tpu.vector_store %arg10[%c168, %c0_30], %55 {strides = array<i32>} : memref<216x1024xf32, #tpu.memory_space<vmem>>, vector<8x1024xf32>,
    %c924_i32 = arith.constant 924 : i32
    %57 = tpu.dynamic_rotate %13 by %c924_i32 dim 1 : vector<8x1024xf32>, i32 -> vector<8x1024xf32>
    %c176 = arith.constant 176 : index
    %c0_31 = arith.constant 0 : index
    %58 = vector.load %arg10[%c176, %c0_31] : memref<216x1024xf32, #tpu.memory_space<vmem>>, vector<8x1024xf32>
    tpu.vector_store %arg10[%c176, %c0_31], %57 {strides = array<i32>} : memref<216x1024xf32, #tpu.memory_space<vmem>>, vector<8x1024xf32>,
    %c923_i32 = arith.constant 923 : i32
    %59 = tpu.dynamic_rotate %13 by %c923_i32 dim 1 : vector<8x1024xf32>, i32 -> vector<8x1024xf32>
    %c184 = arith.constant 184 : index
    %c0_32 = arith.constant 0 : index
    %60 = vector.load %arg10[%c184, %c0_32] : memref<216x1024xf32, #tpu.memory_space<vmem>>, vector<8x1024xf32>
    tpu.vector_store %arg10[%c184, %c0_32], %59 {strides = array<i32>} : memref<216x1024xf32, #tpu.memory_space<vmem>>, vector<8x1024xf32>,
    %c915_i32 = arith.constant 915 : i32
    %61 = tpu.dynamic_rotate %13 by %c915_i32 dim 1 : vector<8x1024xf32>, i32 -> vector<8x1024xf32>
    %c192 = arith.constant 192 : index
    %c0_33 = arith.constant 0 : index
    %62 = vector.load %arg10[%c192, %c0_33] : memref<216x1024xf32, #tpu.memory_space<vmem>>, vector<8x1024xf32>
    tpu.vector_store %arg10[%c192, %c0_33], %61 {strides = array<i32>} : memref<216x1024xf32, #tpu.memory_space<vmem>>, vector<8x1024xf32>,
    %c914_i32 = arith.constant 914 : i32
    %63 = tpu.dynamic_rotate %13 by %c914_i32 dim 1 : vector<8x1024xf32>, i32 -> vector<8x1024xf32>
    %c200 = arith.constant 200 : index
    %c0_34 = arith.constant 0 : index
    %64 = vector.load %arg10[%c200, %c0_34] : memref<216x1024xf32, #tpu.memory_space<vmem>>, vector<8x1024xf32>
    tpu.vector_store %arg10[%c200, %c0_34], %63 {strides = array<i32>} : memref<216x1024xf32, #tpu.memory_space<vmem>>, vector<8x1024xf32>,
    %c913_i32 = arith.constant 913 : i32
    %65 = tpu.dynamic_rotate %13 by %c913_i32 dim 1 : vector<8x1024xf32>, i32 -> vector<8x1024xf32>
    %c208 = arith.constant 208 : index
    %c0_35 = arith.constant 0 : index
    %66 = vector.load %arg10[%c208, %c0_35] : memref<216x1024xf32, #tpu.memory_space<vmem>>, vector<8x1024xf32>
    tpu.vector_store %arg10[%c208, %c0_35], %65 {strides = array<i32>} : memref<216x1024xf32, #tpu.memory_space<vmem>>, vector<8x1024xf32>,
    %c0_36 = arith.constant 0 : index
    %c0_37 = arith.constant 0 : index
    %67 = vector.load %arg2[%c0_36, %c0_37] : memref<8x216xf32, #tpu.memory_space<vmem>>, vector<8x216xf32>
    %c0_38 = arith.constant 0 : index
    %c0_39 = arith.constant 0 : index
    %68 = vector.load %arg10[%c0_38, %c0_39] : memref<216x1024xf32, #tpu.memory_space<vmem>>, vector<216x1024xf32>
    %cst_40 = arith.constant dense<0.000000e+00> : vector<8x1024xf32>
    %69 = tpu.matmul %67, %68, %cst_40 {dimension_numbers = #tpu.dot_dimension_numbers<[1], [0], [0], [1], [0, 0, 1, 1], [], []>} : vector<8x216xf32>, vector<216x1024xf32>, vector<8x1024xf32> -> vector<8x1024xf32>
    %c0_41 = arith.constant 0 : index
    %c0_42 = arith.constant 0 : index
    %70 = vector.load %arg3[%c0_41, %c0_42] : memref<8x1xf32, #tpu.memory_space<vmem>>, vector<8x1xf32>
    %71 = vector.broadcast %70 : vector<8x1xf32> to vector<8x1024xf32>
    %72 = arith.addf %69, %71 : vector<8x1024xf32>
    %c0_43 = arith.constant 0 : index
    %c0_44 = arith.constant 0 : index
    %73 = vector.load %arg4[%c0_43, %c0_44] : memref<1x1024xf32, #tpu.memory_space<vmem>>, vector<1x1024xf32>
    %74 = vector.broadcast %73 : vector<1x1024xf32> to vector<8x1024xf32>
    %75 = arith.mulf %72, %74 : vector<8x1024xf32>
    %cst_45 = arith.constant dense<0.000000e+00> : vector<8xf32>
    %76 = vector.multi_reduction <add>, %75, %cst_45 [1] : vector<8x1024xf32> to vector<8xf32>
    %77 = vector.shape_cast %76 : vector<8xf32> to vector<8x1xf32>
    %c0_46 = arith.constant 0 : index
    %c0_47 = arith.constant 0 : index
    %c0_48 = arith.constant 0 : index
    %78 = vector.load %arg8[%c0_46, %c0_47, %c0_48] : memref<1x8x1xf32, #tpu.memory_space<vmem>>, vector<1x8x1xf32>
    %79 = vector.shape_cast %78 : vector<1x8x1xf32> to vector<8x1xf32>
    %80 = vector.shape_cast %77 : vector<8x1xf32> to vector<1x8x1xf32>
    tpu.vector_store %arg8[%c0_46, %c0_47, %c0_48], %80 {strides = array<i32>} : memref<1x8x1xf32, #tpu.memory_space<vmem>>, vector<1x8x1xf32>,
    %81 = arith.mulf %75, %75 : vector<8x1024xf32>
    %cst_49 = arith.constant dense<0.000000e+00> : vector<8xf32>
    %82 = vector.multi_reduction <add>, %81, %cst_49 [1] : vector<8x1024xf32> to vector<8xf32>
    %83 = vector.shape_cast %82 : vector<8xf32> to vector<8x1xf32>
    %c0_50 = arith.constant 0 : index
    %c0_51 = arith.constant 0 : index
    %c0_52 = arith.constant 0 : index
    %84 = vector.load %arg9[%c0_50, %c0_51, %c0_52] : memref<1x8x1xf32, #tpu.memory_space<vmem>>, vector<1x8x1xf32>
    %85 = vector.shape_cast %84 : vector<1x8x1xf32> to vector<8x1xf32>
    %86 = vector.shape_cast %83 : vector<8x1xf32> to vector<1x8x1xf32>
    tpu.vector_store %arg9[%c0_50, %c0_51, %c0_52], %86 {strides = array<i32>} : memref<1x8x1xf32, #tpu.memory_space<vmem>>, vector<1x8x1xf32>,
    %87 = arith.truncf %75 : vector<8x1024xf32> to vector<8x1024xbf16>
    %c0_53 = arith.constant 0 : index
    %c0_54 = arith.constant 0 : index
    %c0_55 = arith.constant 0 : index
    %88 = vector.load %arg7[%c0_53, %c0_54, %c0_55] : memref<1x8x1024xbf16, #tpu.memory_space<vmem>>, vector<1x8x1024xbf16>
    %89 = vector.shape_cast %88 : vector<1x8x1024xbf16> to vector<8x1024xbf16>
    %90 = vector.shape_cast %87 : vector<8x1024xbf16> to vector<1x8x1024xbf16>
    tpu.vector_store %arg7[%c0_53, %c0_54, %c0_55], %90 {strides = array<i32>} : memref<1x8x1024xbf16, #tpu.memory_space<vmem>>, vector<1x8x1024xbf16>,
    return
  }
  func.func @transform_0(%arg0: i32) -> (i32, i32, i32) {
    %c0_i32 = arith.constant 0 : i32
    %c0_i32_0 = arith.constant 0 : i32
    %c0_i32_1 = arith.constant 0 : i32
    return %arg0, %c0_i32, %c0_i32_0 : i32, i32, i32
  }
  func.func @transform_1(%arg0: i32) -> (i32, i32) {
    %c0_i32 = arith.constant 0 : i32
    %c0_i32_0 = arith.constant 0 : i32
    %c0_i32_1 = arith.constant 0 : i32
    return %c0_i32, %c0_i32_0 : i32, i32
  }
  func.func @transform_2(%arg0: i32) -> (i32, i32) {
    %c0_i32 = arith.constant 0 : i32
    %c0_i32_0 = arith.constant 0 : i32
    %c0_i32_1 = arith.constant 0 : i32
    return %c0_i32, %c0_i32_0 : i32, i32
  }
  func.func @transform_3(%arg0: i32) -> (i32, i32) {
    %c0_i32 = arith.constant 0 : i32
    %c0_i32_0 = arith.constant 0 : i32
    %c0_i32_1 = arith.constant 0 : i32
    return %c0_i32, %c0_i32_0 : i32, i32
  }
  func.func @transform_4(%arg0: i32) -> (i32, i32) {
    %c0_i32 = arith.constant 0 : i32
    %c0_i32_0 = arith.constant 0 : i32
    %c0_i32_1 = arith.constant 0 : i32
    return %c0_i32, %c0_i32_0 : i32, i32
  }
  func.func @transform_5(%arg0: i32) -> (i32, i32) {
    %c0_i32 = arith.constant 0 : i32
    %c0_i32_0 = arith.constant 0 : i32
    %c0_i32_1 = arith.constant 0 : i32
    return %c0_i32, %c0_i32_0 : i32, i32
  }
  func.func @transform_6(%arg0: i32) -> (i32, i32, i32) {
    %c0_i32 = arith.constant 0 : i32
    %c0_i32_0 = arith.constant 0 : i32
    %c0_i32_1 = arith.constant 0 : i32
    return %arg0, %c0_i32, %c0_i32_0 : i32, i32, i32
  }
  func.func @transform_7(%arg0: i32) -> (i32, i32, i32) {
    %c0_i32 = arith.constant 0 : i32
    %c0_i32_0 = arith.constant 0 : i32
    %c0_i32_1 = arith.constant 0 : i32
    return %arg0, %c0_i32, %c0_i32_0 : i32, i32, i32
  }
  func.func @transform_8(%arg0: i32) -> (i32, i32, i32) {
    %c0_i32 = arith.constant 0 : i32
    %c0_i32_0 = arith.constant 0 : i32
    %c0_i32_1 = arith.constant 0 : i32
    return %arg0, %c0_i32, %c0_i32_0 : i32, i32, i32
  }
}

module attributes {stable_mosaic.version = 11 : i64} {
  func.func @bn_add_relu_kernel(%arg0: i32, %arg1: memref<1x8x1024xbf16, #tpu.memory_space<vmem>>, %arg2: memref<1x8x1024xf32, #tpu.memory_space<vmem>>, %arg3: memref<8x1xf32, #tpu.memory_space<vmem>>, %arg4: memref<8x1xf32, #tpu.memory_space<vmem>>, %arg5: memref<1x8x1024xf32, #tpu.memory_space<vmem>>) attributes {dimension_semantics = [#tpu.dimension_semantics<parallel>], iteration_bounds = array<i64: 2>, scalar_prefetch = 0 : i64, scratch_operands = 0 : i64, tpu.core_type = #tpu.core_type<tc>, window_params = [{transform_indices = @transform_0, window_bounds = array<i64: 1, 8, 1024>}, {transform_indices = @transform_1, window_bounds = array<i64: 1, 8, 1024>}, {pipeline_mode = #tpu.pipeline_mode<synchronous>, transform_indices = @transform_2, window_bounds = array<i64: 8, 1>}, {pipeline_mode = #tpu.pipeline_mode<synchronous>, transform_indices = @transform_3, window_bounds = array<i64: 8, 1>}, {transform_indices = @transform_4, window_bounds = array<i64: 1, 8, 1024>}]} {
    %c0 = arith.constant 0 : index
    %c0_0 = arith.constant 0 : index
    %c0_1 = arith.constant 0 : index
    %0 = vector.load %arg1[%c0, %c0_0, %c0_1] : memref<1x8x1024xbf16, #tpu.memory_space<vmem>>, vector<1x8x1024xbf16>
    %1 = vector.shape_cast %0 : vector<1x8x1024xbf16> to vector<8x1024xbf16>
    %2 = arith.extf %1 : vector<8x1024xbf16> to vector<8x1024xf32>
    %c0_2 = arith.constant 0 : index
    %c0_3 = arith.constant 0 : index
    %3 = vector.load %arg3[%c0_2, %c0_3] : memref<8x1xf32, #tpu.memory_space<vmem>>, vector<8x1xf32>
    %4 = vector.broadcast %3 : vector<8x1xf32> to vector<8x1024xf32>
    %5 = arith.mulf %2, %4 : vector<8x1024xf32>
    %c0_4 = arith.constant 0 : index
    %c0_5 = arith.constant 0 : index
    %6 = vector.load %arg4[%c0_4, %c0_5] : memref<8x1xf32, #tpu.memory_space<vmem>>, vector<8x1xf32>
    %7 = vector.broadcast %6 : vector<8x1xf32> to vector<8x1024xf32>
    %8 = arith.addf %5, %7 : vector<8x1024xf32>
    %c0_6 = arith.constant 0 : index
    %c0_7 = arith.constant 0 : index
    %c0_8 = arith.constant 0 : index
    %9 = vector.load %arg2[%c0_6, %c0_7, %c0_8] : memref<1x8x1024xf32, #tpu.memory_space<vmem>>, vector<1x8x1024xf32>
    %10 = vector.shape_cast %9 : vector<1x8x1024xf32> to vector<8x1024xf32>
    %11 = arith.addf %8, %10 : vector<8x1024xf32>
    %cst = arith.constant 0.000000e+00 : f32
    %12 = vector.broadcast %cst : f32 to vector<8x1024xf32>
    %13 = arith.maximumf %11, %12 : vector<8x1024xf32>
    %c0_9 = arith.constant 0 : index
    %c0_10 = arith.constant 0 : index
    %c0_11 = arith.constant 0 : index
    %14 = vector.load %arg5[%c0_9, %c0_10, %c0_11] : memref<1x8x1024xf32, #tpu.memory_space<vmem>>, vector<1x8x1024xf32>
    %15 = vector.shape_cast %14 : vector<1x8x1024xf32> to vector<8x1024xf32>
    %16 = vector.shape_cast %13 : vector<8x1024xf32> to vector<1x8x1024xf32>
    tpu.vector_store %arg5[%c0_9, %c0_10, %c0_11], %16 {strides = array<i32>} : memref<1x8x1024xf32, #tpu.memory_space<vmem>>, vector<1x8x1024xf32>,
    return
  }
  func.func @transform_0(%arg0: i32) -> (i32, i32, i32) {
    %c0_i32 = arith.constant 0 : i32
    %c0_i32_0 = arith.constant 0 : i32
    %c0_i32_1 = arith.constant 0 : i32
    return %arg0, %c0_i32, %c0_i32_0 : i32, i32, i32
  }
  func.func @transform_1(%arg0: i32) -> (i32, i32, i32) {
    %c0_i32 = arith.constant 0 : i32
    %c0_i32_0 = arith.constant 0 : i32
    %c0_i32_1 = arith.constant 0 : i32
    return %arg0, %c0_i32, %c0_i32_0 : i32, i32, i32
  }
  func.func @transform_2(%arg0: i32) -> (i32, i32) {
    %c0_i32 = arith.constant 0 : i32
    %c0_i32_0 = arith.constant 0 : i32
    %c0_i32_1 = arith.constant 0 : i32
    return %c0_i32, %c0_i32_0 : i32, i32
  }
  func.func @transform_3(%arg0: i32) -> (i32, i32) {
    %c0_i32 = arith.constant 0 : i32
    %c0_i32_0 = arith.constant 0 : i32
    %c0_i32_1 = arith.constant 0 : i32
    return %c0_i32, %c0_i32_0 : i32, i32
  }
  func.func @transform_4(%arg0: i32) -> (i32, i32, i32) {
    %c0_i32 = arith.constant 0 : i32
    %c0_i32_0 = arith.constant 0 : i32
    %c0_i32_1 = arith.constant 0 : i32
    return %arg0, %c0_i32, %c0_i32_0 : i32, i32, i32
  }
}

</mosaic_0001>

<bundles_post_ra>
// kernel: residual_block_simplified.5
= control target key start
LH: loop header
LB: loop body
LE: loop exit
PB: predicated region body
PF: predicated region fallthrough
CT: control target
= control target key end

     0   :  { %9 = vsyncpa [#allocation3], 0  ;;  %s1086_s0 = inlined_call_operand.hbm [shape: bf16[2,8,1024], index: 0, kind: input, shape index: {}]   ;;  %s1087_s1 = inlined_call_operand.hbm [shape: f32[2,8,1024], index: 1, kind: input, shape index: {}]   ;;  %s1088_s2 = inlined_call_operand.hbm [shape: f32[8,1], index: 2, kind: input, shape index: {}]   ;;  %s1089_s3 = inlined_call_operand.hbm [shape: f32[8,1], index: 3, kind: input, shape index: {}]   ;;  %s1090_s4 = inlined_call_operand.hbm [shape: f32[2,8,1024], index: 4, kind: output, shape index: {}]  }
   0x1   :  { %11 = vsyncpa [#allocation3 + $0x1], 0 }
   0x2   :  { %12 = vsyncpa [#allocation6], 0 }
   0x3   :  { %14 = vsyncpa [#allocation6 + $0x1], 0 }
   0x4   :  { %15 = vsyncpa [#allocation9], 0 }
   0x5   :  { %16 = vsyncpa [#allocation4], 0 }
   0x6   :  { %18 = vsyncpa [#allocation4 + $0x1], 0  ;;  %s802_s15 = smov 0   ;;  %s804_s16 = smov 0  }
   0x7   :  { %s806_s17 = smov 0   ;;  %s808_s18 = smov 0  }
   0x8 LB: > { %s823_s19 = sadd.s32 4294967295, %s769_s18   ;;  %s476_s20 = sadd.s32 4294967294, %s769_s18   ;;  %s769_s18 = sphi %s808_s18, %s1114_s18   ;;  %s765_s17 = sphi %s806_s17, %s1113_s17   ;;  %s761_s16 = sphi %s804_s16, %s1112_s16   ;;  %s757_s15 = sphi %s802_s15, %s1111_s15  }
   0x9   : > { %p44_p0 = scmp.ne.s32.totalorder %s761_s16, %s757_s15  ;;  %p1091_p1 = scmp.eq.s32.totalorder %s823_s19, 0 }
   0xa   : > { %p142_p3 = scmp.eq.s32.totalorder %s476_s20, 1  ;;  %p477_p5 = scmp.ge.s32.totalorder %s769_s18, 1 }
   0xb   : > { %p832_p4 = por %p1091_p1, %p44_p0  ;;  %p149_p7 = scmp.lt.s32.totalorder %s769_s18, 3 }
   0xc   : > { %p837_p6 = por %p142_p3, %p44_p0  ;;  %s771_s24 = smov [#allocation7]  }
   0xd   : > { %s1095_s21 = scalar_select %p832_p4, 1, 0 }
   0xe   : > { %s1096_s22 = scalar_select %p837_p6, 1, 0 }
   0xf   : > { %p842_p8 = pnand %p477_p5, %p149_p7  ;;  %s162_s25 = sshll.u32 %s771_s24, 4  ;;  %s163_s25 = int_to_ptr.vmem [resolvable:$true] %s162_s25 }
  0x10   : > { %s772_s26 = smov [#allocation8]   ;;  %s858_s29 = sadd.s32 1, %s769_s18  }
  0x11   : > { %s1097_s23 = scalar_select %p842_p8, 1, 0 }
  0x12   : > { %p515_p10 = pneg %p842_p8  ;;  %s173_s27 = sshll.u32 %s772_s26, 4  ;;  %s855_s27 = int_to_ptr.vmem [resolvable:$true] %s173_s27 }
  0x13   : > { %s28_s30 = ssub.s32 %s769_s18, %s858_s29  ;;  %s575_s7 = scalar_lea.hbm %s1088_s2, 128 }
  0x14   : > { %p851_p11 = pnand %p515_p10, %p1091_p1  ;;  %p576_p12 = scmp.ne.s32.totalorder %s1088_s2, %s575_s7 }
  0x15   : > { %p582_p5 = scmp.lt.u32.totalorder %s575_s7, %s1088_s2 }
  0x16   : > { %p577_p13 = pneg %p851_p11 }
  0x18   : > { %p578_p0 = pnand %p577_p13, %p576_p12 }
  0x1a   : > { %p579_p3 = pneg %p578_p0 }
  0x1c   : > { %p584_p7 = pnand %p582_p5, %p579_p3 }
  0x1e   : > { %587 = shalt.err (!%p584_p7)
}
  0x1f   : > { %s588_s12 = scalar_lea.vmem %s163_s25, 128  ;;  %p596_p2 = scmp.lt.s32.totalorder %s163_s25, %s163_s25 }
  0x20   : > { %p589_p10 = scmp.ne.s32.totalorder %s163_s25, %s588_s12  ;;  %p597_p6 = scmp.lt.s32.totalorder %s588_s12, %s588_s12 }
  0x22   : > { %p591_p9 = pnand %p589_p10, %p577_p13  ;;  %p598_p4 = por %p597_p6, %p596_p2 }
  0x24   : > { %p592_p1 = pneg %p591_p9 }
  0x26   : > { %p599_p8 = pnand %p598_p4, %p592_p1 }
  0x28   : > { %602 = shalt.err (!%p599_p8)
}
  0x29   : > { %518 = dma.hbm_to_vmem [thread:$0]  (!%p851_p11), %s1088_s2, 128, %s163_s25, [#allocation6]  }
  0x2a   : > { %s603_s26 = scalar_lea.hbm %s1089_s3, 128 }
  0x2b   : > { %p604_p9 = scmp.ne.s32.totalorder %s1089_s3, %s603_s26  ;;  %p610_p4 = scmp.lt.u32.totalorder %s603_s26, %s1089_s3 }
  0x2d   : > { %p606_p2 = pnand %p604_p9, %p577_p13 }
  0x2f   : > { %p607_p1 = pneg %p606_p2 }
  0x31   : > { %p612_p6 = pnand %p610_p4, %p607_p1 }
  0x33   : > { %615 = shalt.err (!%p612_p6)
}
  0x34   : > { %s616_s25 = scalar_lea.vmem %s855_s27, 128  ;;  %p624_p3 = scmp.lt.s32.totalorder %s855_s27, %s855_s27 }
  0x35   : > { %p617_p8 = scmp.ne.s32.totalorder %s855_s27, %s616_s25  ;;  %p625_p5 = scmp.lt.s32.totalorder %s616_s25, %s616_s25 }
  0x37   : > { %p619_p12 = pnand %p617_p8, %p577_p13  ;;  %p626_p7 = por %p625_p5, %p624_p3 }
  0x39   : > { %p620_p0 = pneg %p619_p12 }
  0x3b   : > { %p627_p10 = pnand %p626_p7, %p620_p0 }
  0x3d   : > { %630 = shalt.err (!%p627_p10)
}
  0x3e   : > { %521 = dma.hbm_to_vmem [thread:$0]  (!%p851_p11), %s1089_s3, 128, %s855_s27, [#allocation9]  }
  0x3f   : > { %p29_p13 = scmp.eq.s32.totalorder %s28_s30, 0  ;;  %s31_s28 = sadd.s32 1, %s765_s17 }
  0x40   : > { %p38_p9 = scmp.ne.s32.totalorder %s765_s17, %s761_s16  ;;  %p39_p2 = scmp.eq.s32.totalorder %s769_s18, 0 }
  0x41   : > { %s917_s11 = scalar_select %p29_p13, %s765_s17, %s31_s28  }
  0x42   : > { %p40_p1 = por %p39_p2, %p38_p9  ;;  %p1099_p4 = scmp.eq.s32.totalorder %s823_s19, 1 }
  0x43   : > { %p535_p8 = scmp.lt.s32.totalorder %s769_s18, 2  ;;  %s927_s13 = sand.u32 1, %s765_s17  }
  0x44   : > { %p921_p6 = por %p1099_p4, %p38_p9  ;;  %s481_s27 = sshll.u32 %s927_s13, 5 }
  0x45   : > { %s498_s30 = sshll.u32 %s769_s18, 9  ;;  %s188_s26 = scalar_lea.vmem [#allocation2], %s481_s27 }
  0x46   : > { %s1100_s12 = scalar_select %p921_p6, 1, 0 }
  0x47   : > { %s934_s24 = scalar_lea.hbm %s1086_s0, %s498_s30  ;;  %s196_s5 = sshll.u32 %s188_s26, 4  ;;  %s936_s5 = int_to_ptr.vmem [resolvable:$true] %s196_s5 }
  0x48   : > { %p938_p11 = pnand %p535_p8, %p40_p1  ;;  %s203_s7 = sand.u32 1, %s769_s18  }
  0x49   : > { %s484_s8 = sshll.u32 %s927_s13, 6  ;;  %s185_s25 = scalar_lea.sflag [#allocation3], %s927_s13 }
  0x4a   : > { %s631_s9 = scalar_lea.hbm %s934_s24, 512  ;;  %p633_p0 = pneg %p938_p11 }
  0x4b   : > { %p632_p12 = scmp.ne.s32.totalorder %s934_s24, %s631_s9  ;;  %s636_s27 = scalar_lea.hbm %s1086_s0, 1024 }
  0x4c   : > { %p637_p7 = scmp.lt.u32.totalorder %s934_s24, %s1086_s0  ;;  %p638_p10 = scmp.lt.u32.totalorder %s636_s27, %s631_s9 }
  0x4d   : > { %p634_p3 = pnand %p633_p0, %p632_p12  ;;  %p640_p9 = scmp.lt.u32.totalorder %s631_s9, %s934_s24 }
  0x4e   : > { %p639_p13 = por %p638_p10, %p637_p7 }
  0x4f   : > { %p635_p5 = pneg %p634_p3 }
  0x50   : > { %p641_p2 = por %p640_p9, %p639_p13 }
  0x52   : > { %p642_p1 = pnand %p641_p2, %p635_p5 }
  0x54   : > { %645 = shalt.err (!%p642_p1)
}
  0x55   : > { %s646_s20 = scalar_lea.vmem %s936_s5, 512  ;;  %s773_s26 = smov [#allocation2]  }
  0x56   : > { %p647_p4 = scmp.ne.s32.totalorder %s936_s5, %s646_s20  ;;  %s651_s10 = sshll.u32 %s773_s26, 4  ;;  %s652_s10 = int_to_ptr.vmem [resolvable:$false] %s651_s10 }
  0x57   : > { %s653_s28 = scalar_lea.vmem %s652_s10, 1024  ;;  %p654_p3 = scmp.lt.s32.totalorder %s936_s5, %s652_s10 }
  0x58   : > { %p649_p8 = pnand %p647_p4, %p633_p0  ;;  %p655_p7 = scmp.lt.s32.totalorder %s653_s28, %s646_s20 }
  0x5a   : > { %p650_p12 = pneg %p649_p8  ;;  %p656_p10 = por %p655_p7, %p654_p3 }
  0x5c   : > { %p657_p13 = pnand %p656_p10, %p650_p12 }
  0x5e   : > { %660 = shalt.err (!%p657_p13)
}
  0x5f   : > { %525 = dma.hbm_to_vmem [thread:$0]  (!%p938_p11), %s934_s24, 512, %s936_s5, %s185_s25  }
  0x60   : > { %s499_s9 = sshll.u32 %s769_s18, 10  ;;  %s207_s20 = scalar_lea.vmem [#allocation5], %s484_s8 }
  0x61   : > { %s974_s14 = scalar_lea.hbm %s1087_s1, %s499_s9  ;;  %s215_s26 = sshll.u32 %s207_s20, 4  ;;  %s216_s26 = int_to_ptr.vmem [resolvable:$true] %s215_s26 }
  0x62   : > { %s204_s10 = scalar_lea.sflag [#allocation6], %s203_s7  ;;  %s661_s28 = scalar_lea.hbm %s974_s14, 1024 }
  0x63   : > { %p662_p5 = scmp.ne.s32.totalorder %s974_s14, %s661_s28  ;;  %s666_s25 = scalar_lea.hbm %s1087_s1, 2048 }
  0x64   : > { %p667_p1 = scmp.lt.u32.totalorder %s974_s14, %s1087_s1  ;;  %p668_p4 = scmp.lt.u32.totalorder %s666_s25, %s661_s28 }
  0x65   : > { %p664_p9 = pnand %p662_p5, %p633_p0  ;;  %p670_p12 = scmp.lt.u32.totalorder %s661_s28, %s974_s14 }
  0x66   : > { %p669_p8 = por %p668_p4, %p667_p1 }
  0x67   : > { %p665_p2 = pneg %p664_p9 }
  0x68   : > { %p671_p3 = por %p670_p12, %p669_p8 }
  0x6a   : > { %p672_p7 = pnand %p671_p3, %p665_p2 }
  0x6c   : > { %675 = shalt.err (!%p672_p7)
}
  0x6d   : > { %s676_s7 = scalar_lea.vmem %s216_s26, 1024  ;;  %s774_s8 = smov [#allocation5]  }
  0x6e   : > { %p677_p10 = scmp.ne.s32.totalorder %s216_s26, %s676_s7  ;;  %s681_s27 = sshll.u32 %s774_s8, 4  ;;  %s682_s27 = int_to_ptr.vmem [resolvable:$false] %s681_s27 }
  0x6f   : > { %s683_s30 = scalar_lea.vmem %s682_s27, 2048  ;;  %p684_p9 = scmp.lt.s32.totalorder %s216_s26, %s682_s27 }
  0x70   : > { %p679_p13 = pnand %p677_p10, %p633_p0  ;;  %p685_p6 = scmp.lt.s32.totalorder %s683_s30, %s676_s7 }
  0x72   : > { %p680_p5 = pneg %p679_p13  ;;  %p686_p1 = por %p685_p6, %p684_p9 }
  0x74   : > { %p687_p4 = pnand %p686_p1, %p680_p5 }
  0x76   : > { %690 = shalt.err (!%p687_p4)
}
  0x77   : > { %528 = dma.hbm_to_vmem [thread:$0]  (!%p938_p11), %s974_s14, 1024, %s216_s26, %s204_s10  }
  0x78   : > { %p1102_p2 = scmp.ne.s32.totalorder %s1097_s23, 0 }
  0x79   : > { %s1002_s20 = sand.u32 (!%p1102_p2), 1, %s761_s16   ;;  %p1103_p0 = scmp.ne.s32.totalorder (!%p1102_p2), %s1095_s21, 0 }
  0x7a   : > { %224 = sbr.rel (%p1102_p2) target bundleno = 296 (0x128), region = 36  ;;  %s488_s28 = sshll.u32 (!%p1102_p2), %s1002_s20, 5 }
  0x7b   : > { %s227_s24 = scalar_lea.sflag (!%p1102_p2), [#allocation3], %s1002_s20  ;;  %s230_s5 = scalar_lea.vmem (!%p1102_p2), [#allocation2], %s488_s28 }
  0x81   : > { %736 = dma.done.wait (%p1103_p0), %s227_s24, 512  }
  0x82   : > { %738 = vsyncadd (%p1103_p0), %s227_s24, 4294966784  ;;  %s235_s23 = sand.u32 1, %s823_s19   ;;  %s489_s6 = sshll.u32 %s1002_s20, 6 }
  0x83   : > { %s236_s14 = scalar_lea.sflag [#allocation6], %s235_s23  ;;  %s1014_s26 = scalar_lea.vmem [#allocation5], %s489_s6 }
  0x84   : > { %740 = dma.done.wait (%p1103_p0), %s236_s14, 1024  }
  0x85   : > { %742 = vsyncadd (%p1103_p0), %s236_s14, 4294966272  ;;  %p1104_p6 = scmp.eq.s32.totalorder %s823_s19, 0 }
  0x87   : > { %744 = dma.done.wait (%p1104_p6), [#allocation6], 128   ;;  %p1105_p11 = pmov %p1104_p6 }
  0x88   : > { %p1106_p8 = pmov %p1104_p6 }
  0x89   : > { %746 = vsyncadd (%p1105_p11), [#allocation6], 4294967168 }
  0x8a   : > { %748 = dma.done.wait (%p1106_p8), [#allocation9], 128   ;;  %p1107_p12 = pmov %p1104_p6 }
  0x8b   : > { %v775_v0 = vmov 0   ;;  %v289_v1 = vld [vmem:[#allocation7] sm:$0xff]  ;;  %v303_v2 = vld [vmem:[#allocation8] sm:$0xff]  ;;  %v279_v5 = vld [vmem:[%s230_s5 + $0x10] sm:$0xff]  ;;  %s500_s21 = sshll.u32 %s823_s19, 10  ;;  %s276_s10 = scalar_lea.vmem [#allocation10], %s489_s6 }
  0x8c   : > { %750 = vsyncadd (%p1107_p12), [#allocation9], 4294967168  ;;  %574 = vset.pattern.permute.xlu0 %v775_v0  ;;  %v277_v3 = vld [vmem:[%s230_s5] sm:$0xff]  ;;  %v278_v4 = vld [vmem:[%s230_s5 + $0x8] sm:$0xff]  ;;  %v285_v12 = vunpack.c.l.bf16 %v279_v5  ;;  %v286_v13 = vunpack.c.h.bf16 %v279_v5  ;;  %s364_s25 = sshll.u32 %s276_s10, 4  ;;  %s1042_s19 = scalar_lea.hbm %s1090_s4, %s500_s21  ;;  %s1044_s25 = int_to_ptr.vmem [resolvable:$true] %s364_s25 }
  0x8d   : > { %292 = vperm.xlu0 %574, %v289_v1   ;;  %v280_v6 = vld [vmem:[%s230_s5 + $0x18] sm:$0xff]  ;;  %v281_v7 = vunpack.c.l.bf16 %v277_v3  ;;  %v282_v8 = vunpack.c.h.bf16 %v277_v3  ;;  %v283_v9 = vunpack.c.l.bf16 %v278_v4  ;;  %v284_v10 = vunpack.c.h.bf16 %v278_v4  ;;  %v317_v16 = vld [vmem:[%s1014_s26] sm:$0xff]  ;;  %v318_v17 = vld [vmem:[%s1014_s26 + $0x8] sm:$0xff]  ;;  %s350_s7 = scalar_lea.sflag [#allocation4], %s1002_s20  ;;  %s691_s8 = scalar_lea.vmem %s1044_s25, 1024 }
  0x8e   : > { %v287_v14 = vunpack.c.l.bf16 %v280_v6  ;;  %v288_v15 = vunpack.c.h.bf16 %v280_v6  ;;  %v319_v22 = vld [vmem:[%s1014_s26 + $0x10] sm:$0xff]  ;;  %v320_v23 = vld [vmem:[%s1014_s26 + $0x18] sm:$0xff]  ;;  %v321_v24 = vld [vmem:[%s1014_s26 + $0x20] sm:$0xff]  ;;  %p692_p3 = scmp.ne.s32.totalorder %s1044_s25, %s691_s8  ;;  %p1108_p7 = scmp.ne.s32.totalorder %s1100_s12, 0 }
  0x8f   : > { %v322_v30 = vld [vmem:[%s1014_s26 + $0x28] sm:$0xff]  ;;  %v323_v31 = vld [vmem:[%s1014_s26 + $0x30] sm:$0xff]  ;;  %v324_v32 = vld [vmem:[%s1014_s26 + $0x38] sm:$0xff]  ;;  %s776_s27 = smov [#allocation10]  }
  0x90   : > { %p693_p10 = pnand %p692_p3, %p1108_p7  ;;  %s695_s30 = sshll.u32 %s776_s27, 4  ;;  %s696_s30 = int_to_ptr.vmem [resolvable:$false] %s695_s30 }
  0x91   : > { %306 = vperm.xlu0 %574, %v303_v2   ;;  %s697_s28 = scalar_lea.vmem %s696_s30, 2048  ;;  %p698_p5 = scmp.lt.s32.totalorder %s1044_s25, %s696_s30 }
  0x92   : > { %p694_p13 = pneg %p693_p10  ;;  %p699_p9 = scmp.lt.s32.totalorder %s697_s28, %s691_s8 }
  0x94   : > { %p700_p1 = por %p699_p9, %p698_p5 }
  0x96   : > { %p701_p4 = pnand %p700_p1, %p694_p13 }
 0x10c   : > { %v293_v11 = vpop.permute.xlu0 %292 }
 0x10d   : > { %v295_v18 = vmul.f32 %v293_v11, %v281_v7  ;;  %v296_v19 = vmul.f32 %v293_v11, %v282_v8  ;;  %v297_v20 = vmul.f32 %v293_v11, %v283_v9  ;;  %v298_v21 = vmul.f32 %v293_v11, %v284_v10 }
 0x10e   : > { %v299_v26 = vmul.f32 %v293_v11, %v285_v12  ;;  %v300_v27 = vmul.f32 %v293_v11, %v286_v13  ;;  %v301_v28 = vmul.f32 %v293_v11, %v287_v14  ;;  %v302_v29 = vmul.f32 %v293_v11, %v288_v15 }
 0x110   : > { %v307_v25 = vpop.permute.xlu0 %306 }
 0x111   : > { %v309_v33 = vadd.f32 %v307_v25, %v295_v18  ;;  %v310_v34 = vadd.f32 %v307_v25, %v296_v19  ;;  %v311_v35 = vadd.f32 %v307_v25, %v297_v20  ;;  %v312_v36 = vadd.f32 %v307_v25, %v298_v21 }
 0x112   : > { %v313_v37 = vadd.f32 %v307_v25, %v299_v26  ;;  %v314_v38 = vadd.f32 %v307_v25, %v300_v27  ;;  %v315_v39 = vadd.f32 %v307_v25, %v301_v28  ;;  %v316_v40 = vadd.f32 %v307_v25, %v302_v29 }
 0x113   : > { %v325_v41 = vadd.f32 %v317_v16, %v309_v33  ;;  %v326_v42 = vadd.f32 %v318_v17, %v310_v34  ;;  %v327_v43 = vadd.f32 %v319_v22, %v311_v35  ;;  %v328_v44 = vadd.f32 %v320_v23, %v312_v36 }
 0x114   : > { %v329_v45 = vadd.f32 %v321_v24, %v313_v37  ;;  %v330_v46 = vadd.f32 %v322_v30, %v314_v38  ;;  %v331_v47 = vadd.f32 %v323_v31, %v315_v39  ;;  %v332_v48 = vadd.f32 %v324_v32, %v316_v40 }
 0x115   : > { %v333_v49 = vmax.f32 %v325_v41, 0.0  ;;  %v334_v50 = vmax.f32 %v326_v42, 0.0  ;;  %v335_v51 = vmax.f32 %v327_v43, 0.0  ;;  %v336_v52 = vmax.f32 %v328_v44, 0.0 }
 0x116   : > { %v337_v53 = vmax.f32 %v329_v45, 0.0  ;;  %v338_v54 = vmax.f32 %v330_v46, 0.0  ;;  %v339_v55 = vmax.f32 %v331_v47, 0.0  ;;  %v340_v56 = vmax.f32 %v332_v48, 0.0 }
 0x117   : > { %341 = vst [vmem:[%s276_s10] sm:$0xff] %v333_v49  ;;  %342 = vst [vmem:[%s276_s10 + $0x8] sm:$0xff] %v334_v50 }
 0x118   : > { %343 = vst [vmem:[%s276_s10 + $0x10] sm:$0xff] %v335_v51  ;;  %344 = vst [vmem:[%s276_s10 + $0x18] sm:$0xff] %v336_v52 }
 0x119   : > { %345 = vst [vmem:[%s276_s10 + $0x20] sm:$0xff] %v337_v53  ;;  %346 = vst [vmem:[%s276_s10 + $0x28] sm:$0xff] %v338_v54 }
 0x11a   : > { %347 = vst [vmem:[%s276_s10 + $0x30] sm:$0xff] %v339_v55  ;;  %348 = vst [vmem:[%s276_s10 + $0x38] sm:$0xff] %v340_v56 }
 0x11b   : > { %704 = shalt.err (!%p701_p4)
}
 0x11c   : > { %s705_s20 = scalar_lea.hbm %s1042_s19, 1024  ;;  %s709_s23 = scalar_lea.hbm %s1090_s4, 2048 }
 0x11d   : > { %p706_p2 = scmp.ne.s32.totalorder %s1042_s19, %s705_s20  ;;  %p710_p11 = scmp.lt.u32.totalorder %s1042_s19, %s1090_s4 }
 0x11e   : > { %p711_p8 = scmp.lt.u32.totalorder %s709_s23, %s705_s20  ;;  %p713_p3 = scmp.lt.u32.totalorder %s705_s20, %s1042_s19 }
 0x11f   : > { %p707_p0 = pnand %p706_p2, %p1108_p7 }
 0x120   : > { %p712_p12 = por %p711_p8, %p710_p11 }
 0x121   : > { %p708_p6 = pneg %p707_p0 }
 0x122   : > { %p714_p10 = por %p713_p3, %p712_p12 }
 0x124   : > { %p715_p13 = pnand %p714_p10, %p708_p6 }
 0x126   : > { %718 = shalt.err (!%p715_p13)
}
 0x127   : > { %513 = dma.vmem_to_hbm [thread:$0]  (%p1108_p7), %s1044_s25, 1024, %s1042_s19, %s350_s7  }
 0x128 PF: > { %s376_s26 = sand.u32 1, %s757_s15   ;;  %p1109_p5 = scmp.ne.s32.totalorder %s1096_s22, 0 }
 0x129   : > { %p1110_p9 = scmp.ge.s32.totalorder %s769_s18, 2  ;;  %s377_s21 = scalar_lea.sflag [#allocation4], %s376_s26 }
 0x12b   : > { %p530_p1 = pnand %p1110_p9, %p1109_p5 }
 0x12d   : > { %752 = dma.done.wait (!%p530_p1), %s377_s21, 1024  }
 0x12e   : > { %754 = vsyncadd (!%p530_p1), %s377_s21, 4294966272  ;;  %p21_p4 = scmp.ge.s32.totalorder %s858_s29, 4   ;;  %s1111_s15 = smov %s761_s16 }
 0x12f   : > { %s1112_s16 = smov %s765_s17  ;;  %s1113_s17 = smov %s917_s11 }
 0x130   : > { %s1114_s18 = smov %s858_s29  ;;  %23 = sbr.rel (!%p21_p4) target bundleno = 8 (0x8), region = 102 }
 0x137   :  { %382 = vsyncpa [#allocation3], 1 }
 0x138   :  { %384 = vsyncpa [#allocation3 + $0x1], 1 }
 0x139   :  { %385 = vsyncpa [#allocation6], 1 }
 0x13a   :  { %387 = vsyncpa [#allocation6 + $0x1], 1 }
 0x13b   :  { %388 = vsyncpa [#allocation9], 1 }
 0x13c   :  { %389 = vsyncpa [#allocation4], 1 }
 0x13d   :  { %391 = vsyncpa [#allocation4 + $0x1], 1 }

// kernel: residual_block_simplified.4
= control target key start
LH: loop header
LB: loop body
LE: loop exit
PB: predicated region body
PF: predicated region fallthrough
CT: control target
= control target key end

     0   :  { %s5013_s0 = inlined_call_operand.hbm [shape: bf16[2,8,1024], index: 0, kind: input, shape index: {}]   ;;  %s5014_s1 = inlined_call_operand.hbm [shape: f32[8,216], index: 1, kind: input, shape index: {}]   ;;  %s5015_s2 = inlined_call_operand.hbm [shape: f32[8,1], index: 2, kind: input, shape index: {}]   ;;  %s5016_s3 = inlined_call_operand.hbm [shape: f32[1,1024], index: 3, kind: input, shape index: {}]   ;;  %s5017_s4 = inlined_call_operand.hbm [shape: f32[8,1], index: 4, kind: input, shape index: {}]   ;;  %s5018_s5 = inlined_call_operand.hbm [shape: f32[8,1], index: 5, kind: input, shape index: {}]   ;;  %s5019_s6 = inlined_call_operand.hbm [shape: bf16[2,8,1024], index: 6, kind: output, shape index: {0}]   ;;  %s5020_s7 = inlined_call_operand.hbm [shape: f32[2,8,1], index: 7, kind: output, shape index: {1}]   ;;  %s5021_s8 = inlined_call_operand.hbm [shape: f32[2,8,1], index: 8, kind: output, shape index: {2}]  }
   0x1   :  { %5131 = sst [smem:[#allocation50_spill]] %s5013_s0 }
   0x2   :  { %14 = vsyncpa [#allocation4], 0 }
   0x3   :  { %16 = vsyncpa [#allocation4 + $0x1], 0 }
   0x4   :  { %17 = vsyncpa [#allocation7], 0 }
   0x5   :  { %18 = vsyncpa [#allocation10], 0 }
   0x6   :  { %19 = vsyncpa [#allocation13], 0 }
   0x7   :  { %20 = vsyncpa [#allocation5], 0 }
   0x8   :  { %22 = vsyncpa [#allocation5 + $0x1], 0 }
   0x9   :  { %23 = vsyncpa [#allocation16], 0 }
   0xa   :  { %25 = vsyncpa [#allocation16 + $0x1], 0  ;;  %s3444_s27 = smov 0   ;;  %s3446_s28 = smov 0  }
   0xb   :  { %s3448_s29 = smov 0   ;;  %s3450_s30 = smov 0  }
   0xc LB: > { %s3363_s9 = smov [#allocation6]   ;;  %s3465_s11 = sadd.s32 4294967295, %s3361_s30   ;;  %s3361_s30 = sphi %s3450_s30, %s5316_s30   ;;  %s3357_s29 = sphi %s3448_s29, %s5315_s29   ;;  %s3353_s28 = sphi %s3446_s28, %s5314_s28   ;;  %s3349_s27 = sphi %s3444_s27, %s5313_s27  }
   0xd   : > { %s258_s10 = sshll.u32 %s3363_s9, 4  ;;  %p2227_p0 = scmp.ge.s32.totalorder %s3361_s30, 1  ;;  %s3470_s10 = int_to_ptr.vmem [resolvable:$true] %s258_s10 }
   0xe   : > { %p5022_p1 = scmp.eq.s32.totalorder %s3465_s11, 0  ;;  %p245_p2 = scmp.lt.s32.totalorder %s3361_s30, 3 }
   0xf   : > { %s3364_s13 = smov [#allocation9]   ;;  %s3365_s15 = smov [#allocation8]  }
  0x10   : > { %p3472_p3 = pnand %p2227_p0, %p245_p2  ;;  %s280_s14 = sshll.u32 %s3364_s13, 4  ;;  %s3479_s14 = int_to_ptr.vmem [resolvable:$true] %s280_s14 }
  0x11   : > { %s269_s16 = sshll.u32 %s3365_s15, 4  ;;  %s3366_s18 = smov [#allocation11]   ;;  %s3487_s16 = int_to_ptr.vmem [resolvable:$true] %s269_s16 }
  0x12   : > { %s5132_s12 = scalar_select %p3472_p3, 1, 0 }
  0x13   : > { %p2506_p5 = pneg %p3472_p3  ;;  %s3489_s19 = sshll.u32 %s3366_s18, 4  ;;  %s292_s19 = int_to_ptr.vmem [resolvable:$true] %s3489_s19 }
  0x14   : > { %s3053_s22 = scalar_lea.hbm %s5014_s1, 256 }
  0x15   : > { %p3483_p6 = pnand %p2506_p5, %p5022_p1  ;;  %p3054_p7 = scmp.ne.s32.totalorder %s5014_s1, %s3053_s22 }
  0x16   : > { %p3060_p11 = scmp.lt.u32.totalorder %s3053_s22, %s5014_s1 }
  0x17   : > { %p3499_p8 = pneg %p3483_p6 }
  0x19   : > { %p3056_p9 = pnand %p3499_p8, %p3054_p7 }
  0x1b   : > { %p3057_p10 = pneg %p3056_p9 }
  0x1d   : > { %p3062_p12 = pnand %p3060_p11, %p3057_p10 }
  0x1f   : > { %3065 = shalt.err (!%p3062_p12)
}
  0x20   : > { %s3066_s13 = scalar_lea.vmem %s3470_s10, 256  ;;  %p3074_p5 = scmp.lt.s32.totalorder %s3470_s10, %s3470_s10 }
  0x21   : > { %p3067_p13 = scmp.ne.s32.totalorder %s3470_s10, %s3066_s13  ;;  %p3075_p4 = scmp.lt.s32.totalorder %s3066_s13, %s3066_s13 }
  0x23   : > { %p3069_p0 = pnand %p3067_p13, %p3499_p8  ;;  %p3076_p7 = por %p3075_p4, %p3074_p5 }
  0x25   : > { %p3070_p2 = pneg %p3069_p0 }
  0x27   : > { %p3077_p9 = pnand %p3076_p7, %p3070_p2 }
  0x29   : > { %3080 = shalt.err (!%p3077_p9)
}
  0x2a   : > { %2509 = dma.hbm_to_vmem [thread:$0]  (!%p3483_p6), %s5014_s1, 256, %s3470_s10, [#allocation7]  }
  0x2b   : > { %s3081_s22 = scalar_lea.hbm %s5016_s3, 128 }
  0x2c   : > { %p3082_p10 = scmp.ne.s32.totalorder %s5016_s3, %s3081_s22  ;;  %p3088_p12 = scmp.lt.u32.totalorder %s3081_s22, %s5016_s3 }
  0x2e   : > { %p3084_p4 = pnand %p3082_p10, %p3499_p8 }
  0x30   : > { %p3085_p11 = pneg %p3084_p4 }
  0x32   : > { %p3090_p13 = pnand %p3088_p12, %p3085_p11 }
  0x34   : > { %3093 = shalt.err (!%p3090_p13)
}
  0x35   : > { %s3094_s10 = scalar_lea.vmem %s3479_s14, 128  ;;  %p3102_p7 = scmp.lt.s32.totalorder %s3479_s14, %s3479_s14 }
  0x36   : > { %p3095_p0 = scmp.ne.s32.totalorder %s3479_s14, %s3094_s10  ;;  %p3103_p9 = scmp.lt.s32.totalorder %s3094_s10, %s3094_s10 }
  0x38   : > { %p3097_p2 = pnand %p3095_p0, %p3499_p8  ;;  %p3104_p10 = por %p3103_p9, %p3102_p7 }
  0x3a   : > { %p3098_p5 = pneg %p3097_p2 }
  0x3c   : > { %p3105_p4 = pnand %p3104_p10, %p3098_p5 }
  0x3e   : > { %3108 = shalt.err (!%p3105_p4)
}
  0x3f   : > { %2515 = dma.hbm_to_vmem [thread:$0]  (!%p3483_p6), %s5016_s3, 128, %s3479_s14, [#allocation10]  }
  0x40   : > { %s3109_s21 = scalar_lea.hbm %s5015_s2, 128 }
  0x41   : > { %p3110_p11 = scmp.ne.s32.totalorder %s5015_s2, %s3109_s21  ;;  %p3116_p0 = scmp.lt.u32.totalorder %s3109_s21, %s5015_s2 }
  0x43   : > { %p3112_p12 = pnand %p3110_p11, %p3499_p8 }
  0x45   : > { %p3113_p13 = pneg %p3112_p12 }
  0x47   : > { %p3118_p2 = pnand %p3116_p0, %p3113_p13 }
  0x49   : > { %3121 = shalt.err (!%p3118_p2)
}
  0x4a   : > { %s3122_s14 = scalar_lea.vmem %s3487_s16, 128  ;;  %p3130_p10 = scmp.lt.s32.totalorder %s3487_s16, %s3487_s16 }
  0x4b   : > { %p3123_p5 = scmp.ne.s32.totalorder %s3487_s16, %s3122_s14  ;;  %p3131_p4 = scmp.lt.s32.totalorder %s3122_s14, %s3122_s14 }
  0x4d   : > { %p3125_p7 = pnand %p3123_p5, %p3499_p8  ;;  %p3132_p11 = por %p3131_p4, %p3130_p10 }
  0x4f   : > { %p3126_p9 = pneg %p3125_p7 }
  0x51   : > { %p3133_p12 = pnand %p3132_p11, %p3126_p9 }
  0x53   : > { %3136 = shalt.err (!%p3133_p12)
}
  0x54   : > { %2512 = dma.hbm_to_vmem [thread:$0]  (!%p3483_p6), %s5015_s2, 128, %s3487_s16, [#allocation7]  }
  0x55   : > { %s3367_s13 = smov [#allocation12]   ;;  %s3137_s21 = scalar_lea.hbm %s5017_s4, 128 }
  0x56   : > { %s302_s15 = sshll.u32 %s3367_s13, 4  ;;  %p3138_p13 = scmp.ne.s32.totalorder %s5017_s4, %s3137_s21  ;;  %s303_s15 = int_to_ptr.vmem [resolvable:$true] %s302_s15 }
  0x57   : > { %p3144_p5 = scmp.lt.u32.totalorder %s3137_s21, %s5017_s4 }
  0x58   : > { %p3140_p0 = pnand %p3138_p13, %p3499_p8 }
  0x5a   : > { %p3141_p2 = pneg %p3140_p0 }
  0x5c   : > { %p3146_p7 = pnand %p3144_p5, %p3141_p2 }
  0x5e   : > { %3149 = shalt.err (!%p3146_p7)
}
  0x5f   : > { %s3150_s16 = scalar_lea.vmem %s292_s19, 128  ;;  %p3158_p11 = scmp.lt.s32.totalorder %s292_s19, %s292_s19 }
  0x60   : > { %p3151_p9 = scmp.ne.s32.totalorder %s292_s19, %s3150_s16  ;;  %p3159_p12 = scmp.lt.s32.totalorder %s3150_s16, %s3150_s16 }
  0x62   : > { %p3153_p10 = pnand %p3151_p9, %p3499_p8  ;;  %p3160_p1 = por %p3159_p12, %p3158_p11 }
  0x64   : > { %p3154_p4 = pneg %p3153_p10 }
  0x66   : > { %p3161_p3 = pnand %p3160_p1, %p3154_p4 }
  0x68   : > { %3164 = shalt.err (!%p3161_p3)
}
  0x69   : > { %2518 = dma.hbm_to_vmem [thread:$0]  (!%p3483_p6), %s5017_s4, 128, %s292_s19, [#allocation10]  }
  0x6a   : > { %s3165_s18 = scalar_lea.hbm %s5018_s5, 128 }
  0x6b   : > { %p3166_p13 = scmp.ne.s32.totalorder %s5018_s5, %s3165_s18  ;;  %p3172_p3 = scmp.lt.u32.totalorder %s3165_s18, %s5018_s5 }
  0x6d   : > { %p3168_p0 = pnand %p3166_p13, %p3499_p8 }
  0x6f   : > { %p3169_p1 = pneg %p3168_p0 }
  0x71   : > { %p3174_p2 = pnand %p3172_p3, %p3169_p1 }
  0x73   : > { %3177 = shalt.err (!%p3174_p2)
}
  0x74   : > { %s3178_s24 = scalar_lea.vmem %s303_s15, 128  ;;  %p3186_p10 = scmp.lt.s32.totalorder %s303_s15, %s303_s15 }
  0x75   : > { %p3179_p5 = scmp.ne.s32.totalorder %s303_s15, %s3178_s24  ;;  %p3187_p4 = scmp.lt.s32.totalorder %s3178_s24, %s3178_s24 }
  0x77   : > { %p3181_p7 = pnand %p3179_p5, %p3499_p8  ;;  %p3188_p11 = por %p3187_p4, %p3186_p10 }
  0x79   : > { %p3182_p9 = pneg %p3181_p7 }
  0x7b   : > { %p3189_p12 = pnand %p3188_p11, %p3182_p9 }
  0x7d   : > { %3192 = shalt.err (!%p3189_p12)
}
  0x7e   : > { %2521 = dma.hbm_to_vmem [thread:$0]  (!%p3483_p6), %s5018_s5, 128, %s303_s15, [#allocation13]  }
  0x7f   : > { %s5024_s17 = sadd.s32 4294967294, %s3361_s30   ;;  %s3605_s25 = sadd.s32 1, %s3361_s30  }
  0x80   : > { %s38_s16 = sadd.s32 1, %s3357_s29  ;;  %s35_s14 = ssub.s32 %s3361_s30, %s3605_s25 }
  0x81   : > { %p45_p8 = scmp.ne.s32.totalorder %s3357_s29, %s3353_s28  ;;  %p36_p13 = scmp.eq.s32.totalorder %s35_s14, 0 }
  0x82   : > { %p46_p0 = scmp.eq.s32.totalorder %s3361_s30, 0  ;;  %p51_p1 = scmp.ne.s32.totalorder %s3353_s28, %s3349_s27 }
  0x83   : > { %p180_p3 = scmp.eq.s32.totalorder %s3465_s11, 1  ;;  %p5135_p5 = scmp.eq.s32.totalorder %s3465_s11, 0 }
  0x84   : > { %s3617_s9 = scalar_select %p36_p13, %s3357_s29, %s38_s16  }
  0x85   : > { %p47_p2 = por %p46_p0, %p45_p8  ;;  %p3621_p7 = por %p5135_p5, %p51_p1 }
  0x86   : > { %p3625_p6 = por %p180_p3, %p45_p8  ;;  %p186_p9 = scmp.eq.s32.totalorder %s5024_s17, 1 }
  0x87   : > { %p2541_p10 = scmp.lt.s32.totalorder %s3361_s30, 2  ;;  %s313_s13 = sand.u32 1, %s3357_s29  }
  0x88   : > { %s5137_s15 = scalar_select %p3625_p6, 1, 0 }
  0x89   : > { %p3633_p4 = por %p186_p9, %p51_p1  ;;  %s2234_s20 = sshll.u32 %s313_s13, 5 }
  0x8a   : > { %s2264_s21 = sshll.u32 %s3361_s30, 9  ;;  %s5139_s0 = sld [smem:[#allocation50_spill]] }
  0x8b   : > { %s5138_s18 = scalar_select %p3633_p4, 1, 0 }
  0x8c   : > { %s317_s19 = scalar_lea.vmem [#allocation3], %s2234_s20  ;;  %p3643_p11 = pnand %p2541_p10, %p47_p2 }
  0x8d   : > { %s325_s26 = sshll.u32 %s317_s19, 4  ;;  %s314_s14 = scalar_lea.sflag [#allocation4], %s313_s13  ;;  %s3647_s26 = int_to_ptr.vmem [resolvable:$true] %s325_s26 }
  0x8e   : > { %p3195_p8 = pneg %p3643_p11 }
  0x90   : > { %s3641_s24 = scalar_lea.hbm %s5139_s0, %s2264_s21  ;;  %s3198_s22 = scalar_lea.hbm %s5139_s0, 1024 }
  0x91   : > { %s3193_s17 = scalar_lea.hbm %s3641_s24, 512  ;;  %p3199_p1 = scmp.lt.u32.totalorder %s3641_s24, %s5139_s0 }
  0x92   : > { %p3194_p12 = scmp.ne.s32.totalorder %s3641_s24, %s3193_s17  ;;  %p3200_p3 = scmp.lt.u32.totalorder %s3198_s22, %s3193_s17 }
  0x93   : > { %p3202_p5 = scmp.lt.u32.totalorder %s3193_s17, %s3641_s24 }
  0x94   : > { %p3196_p13 = pnand %p3195_p8, %p3194_p12  ;;  %p3201_p2 = por %p3200_p3, %p3199_p1 }
  0x96   : > { %p3197_p0 = pneg %p3196_p13  ;;  %p3203_p9 = por %p3202_p5, %p3201_p2 }
  0x98   : > { %p3204_p10 = pnand %p3203_p9, %p3197_p0 }
  0x9a   : > { %3207 = shalt.err (!%p3204_p10)
}
  0x9b   : > { %s3208_s13 = scalar_lea.vmem %s3647_s26, 512  ;;  %s3368_s21 = smov [#allocation3]  }
  0x9c   : > { %p3209_p12 = scmp.ne.s32.totalorder %s3647_s26, %s3208_s13  ;;  %s3213_s20 = sshll.u32 %s3368_s21, 4  ;;  %s3214_s20 = int_to_ptr.vmem [resolvable:$false] %s3213_s20 }
  0x9d   : > { %s3215_s23 = scalar_lea.vmem %s3214_s20, 1024  ;;  %p3216_p6 = scmp.lt.s32.totalorder %s3647_s26, %s3214_s20 }
  0x9e   : > { %p3211_p13 = pnand %p3209_p12, %p3195_p8  ;;  %p3217_p1 = scmp.lt.s32.totalorder %s3215_s23, %s3208_s13 }
  0xa0   : > { %p3212_p4 = pneg %p3211_p13  ;;  %p3218_p3 = por %p3217_p1, %p3216_p6 }
  0xa2   : > { %p3219_p2 = pnand %p3218_p3, %p3212_p4 }
  0xa4   : > { %3222 = shalt.err (!%p3219_p2)
}
  0xa5   : > { %2525 = dma.hbm_to_vmem [thread:$0]  (!%p3643_p11), %s3641_s24, 512, %s3647_s26, %s314_s14  }
  0xa6   : > { %p5141_p0 = scmp.ne.s32.totalorder %s5132_s12, 0 }
  0xa8   : > { %334 = sbr.rel (%p5141_p0) target bundleno = 1088 (0x440), region = 44 }
  0xaf   : > { %s3677_s17 = sand.u32 1, %s3353_s28  }
  0xb0   : > { %s5026_s22 = sshll.u32 %s3677_s17, 5  ;;  %s337_s19 = scalar_lea.sflag [#allocation4], %s3677_s17 }
  0xb1   : > { %s340_s13 = scalar_lea.vmem [#allocation3], %s5026_s22 }
  0xb2   : > { %3324 = dma.done.wait (%p3621_p7), %s337_s19, 512  }
  0xb3   : > { %3326 = vsyncadd (%p3621_p7), %s337_s19, 4294966784  ;;  %p5142_p6 = scmp.eq.s32.totalorder %s3465_s11, 0 }
  0xb5   : > { %3328 = dma.done.wait (%p5142_p6), [#allocation7], 384   ;;  %p5143_p4 = pmov %p5142_p6 }
  0xb7   : > { %3330 = vsyncadd (%p5143_p4), [#allocation7], 4294966912  ;;  %p5144_p11 = pmov %p5143_p4 }
  0xb8   : > { %p5145_p8 = pmov %p5143_p4 }
  0xb9   : > { %3332 = dma.done.wait (%p5144_p11), [#allocation10], 256  }
  0xba   : > { %3334 = vsyncadd (%p5145_p8), [#allocation10], 4294967040  ;;  %p5146_p5 = pmov %p5143_p4 }
  0xbb   : > { %p5147_p9 = pmov %p5143_p4 }
  0xbc   : > { %3336 = dma.done.wait (%p5146_p5), [#allocation13], 128  }
  0xbd   : > { %3338 = vsyncadd (%p5147_p9), [#allocation13], 4294967168  ;;  %v3369_v0 = vmov 0   ;;  %v415_v1 = vld [vmem:[#allocation11] sm:$0xff]  ;;  %v429_v2 = vld [vmem:[#allocation12] sm:$0xff]  ;;  %v453_v3 = vlaneseq  ;;  %s3370_s12 = smov 111  }
  0xbe   : > { %2612 = vset.pattern.permute.xlu0 %v3369_v0  ;;  %v403_v5 = vld [vmem:[%s340_s13] sm:$0xff]  ;;  %v404_v6 = vld [vmem:[%s340_s13 + $0x8] sm:$0xff]  ;;  %v405_v7 = vld [vmem:[%s340_s13 + $0x10] sm:$0xff]  ;;  %s3371_s10 = smov 110   ;;  %s3372_s24 = smov 109   ;;  %vm1593_vm6 = vcmask 719872  }
  0xbf   : > { %418 = vperm.xlu0 %2612, %v415_v1   ;;  %v3700_v4 = vshrl.u32 %v453_v3, 7  ;;  %v406_v8 = vld [vmem:[%s340_s13 + $0x18] sm:$0xff]  ;;  %v407_v18 = vunpack.c.l.bf16 %v403_v5  ;;  %v408_v19 = vunpack.c.h.bf16 %v403_v5  ;;  %v409_v20 = vunpack.c.l.bf16 %v404_v6  ;;  %s3373_s26 = smov 101   ;;  %s3374_s16 = smov 100  }
  0xc0   : > { %v451_v13 = vld [vmem:[#allocation9] sm:$0xff]  ;;  %v410_v21 = vunpack.c.h.bf16 %v404_v6  ;;  %v411_v23 = vunpack.c.l.bf16 %v405_v7  ;;  %v412_v24 = vunpack.c.h.bf16 %v405_v7  ;;  %v413_v25 = vunpack.c.l.bf16 %v406_v8  ;;  %s3375_s14 = smov 99   ;;  %s3376_s21 = smov 91  }
  0xc1   : > { %5148 = vst [vmem:[#allocation24_spill] sm:$0xff] %v3700_v4  ;;  %v5055_v9 = vsub.s32 0, %v3700_v4  ;;  %v5054_v10 = vsub.s32 1, %v3700_v4  ;;  %v5053_v11 = vsub.s32 2, %v3700_v4  ;;  %v5052_v12 = vsub.s32 3, %v3700_v4  ;;  %s5027_s20 = smov 90  }
  0xc2   : > { %v5051_v14 = vsub.s32 4, %v3700_v4  ;;  %v5050_v15 = vsub.s32 5, %v3700_v4  ;;  %v5049_v16 = vsub.s32 6, %v3700_v4  ;;  %v5048_v17 = vsub.s32 7, %v3700_v4  ;;  %s3378_s23 = smov 89   ;;  %s5028_s19 = smov 11  }
  0xc3   : > { %432 = vperm.xlu0 %2612, %v429_v2   ;;  %v414_v26 = vunpack.c.h.bf16 %v406_v8  ;;  %v456_v27 = vrot.slane %v451_v13, %v5055_v9  ;;  %v460_v28 = vrot.slane %v451_v13, %v5054_v10  ;;  %v464_v29 = vrot.slane %v451_v13, %v5053_v11  ;;  %s5029_s13 = smov 10   ;;  %s5030_s22 = smov 9  }
  0xc4   : > { %v468_v30 = vrot.slane %v451_v13, %v5052_v12  ;;  %v472_v31 = vrot.slane %v451_v13, %v5051_v14  ;;  %v476_v32 = vrot.slane %v451_v13, %v5050_v15  ;;  %v480_v33 = vrot.slane %v451_v13, %v5049_v16  ;;  %p5309_p10 = scmp.ne.s32.totalorder %s5137_s15, 0 }
  0xc5   : > { %v484_v34 = vrot.slane %v451_v13, %v5048_v17 }
 0x13e   : > { %v419_v22 = vpop.permute.xlu0 %418 }
 0x13f   : > { %v421_v35 = vmul.f32 %v419_v22, %v407_v18  ;;  %v422_v36 = vmul.f32 %v419_v22, %v408_v19  ;;  %v423_v37 = vmul.f32 %v419_v22, %v409_v20  ;;  %v424_v38 = vmul.f32 %v419_v22, %v410_v21 }
 0x140   : > { %v425_v39 = vmul.f32 %v419_v22, %v411_v23  ;;  %v426_v40 = vmul.f32 %v419_v22, %v412_v24  ;;  %v427_v41 = vmul.f32 %v419_v22, %v413_v25  ;;  %v428_v42 = vmul.f32 %v419_v22, %v414_v26 }
 0x141   : > { %v3834_v19 = vand.u32 127, %v453_v3 }
 0x142   : > { %v433_v43 = vpop.permute.xlu0 %432 }
 0x143   : > { %v435_v44 = vadd.f32 %v433_v43, %v421_v35  ;;  %v436_v45 = vadd.f32 %v433_v43, %v422_v36  ;;  %v437_v46 = vadd.f32 %v433_v43, %v423_v37  ;;  %v438_v47 = vadd.f32 %v433_v43, %v424_v38 }
 0x144   : > { %v439_v48 = vadd.f32 %v433_v43, %v425_v39  ;;  %v440_v49 = vadd.f32 %v433_v43, %v426_v40  ;;  %v441_v50 = vadd.f32 %v433_v43, %v427_v41  ;;  %v442_v51 = vadd.f32 %v433_v43, %v428_v42 }
 0x145   : > { %v443_v52 = vmax.f32 %v435_v44, 0.0  ;;  %v444_v53 = vmax.f32 %v436_v45, 0.0  ;;  %v445_v54 = vmax.f32 %v437_v46, 0.0  ;;  %v446_v55 = vmax.f32 %v438_v47, 0.0 }
 0x146   : > { %v447_v56 = vmax.f32 %v439_v48, 0.0  ;;  %v448_v57 = vmax.f32 %v440_v49, 0.0  ;;  %v449_v58 = vmax.f32 %v441_v50, 0.0  ;;  %v450_v59 = vmax.f32 %v442_v51, 0.0 }
 0x147   : > { %v3726_v60 = vmul.f32 %v456_v27, %v443_v52  ;;  %v3728_v61 = vmul.f32 %v460_v28, %v444_v53  ;;  %v3730_v62 = vmul.f32 %v464_v29, %v445_v54  ;;  %v3740_v5 = vmul.f32 %v468_v30, %v446_v55 }
 0x148   : > { %v3732_v63 = vmul.f32 %v476_v32, %v448_v57  ;;  %v3734_v0 = vmul.f32 %v480_v33, %v449_v58  ;;  %v3736_v1 = vmul.f32 %v484_v34, %v450_v59  ;;  %v3742_v6 = vmul.f32 %v472_v31, %v447_v56 }
 0x149   : > { %v2613_v2 = vpack.i.bf16 %v3728_v61, %v3726_v60  ;;  %v3788_v13 = vpack.i.bf16 %v3730_v62, %v3728_v61  ;;  %v3795_v18 = vpack.i.bf16 %v3740_v5, %v3726_v60  ;;  %vm519_vm0 = vcmp.lt.s32.totalorder %v3834_v19, 111 }
 0x14a   : > { %5149 = vst [vmem:[#allocation25_spill] sm:$0xff] %v3742_v6  ;;  %v2623_v7 = vpack.i.bf16 %v3730_v62, %v3736_v1  ;;  %v2633_v8 = vpack.i.bf16 %v3742_v6, %v3740_v5  ;;  %vm552_vm1 = vcmp.lt.s32.totalorder %v3834_v19, 110  ;;  %vm585_vm2 = vcmp.lt.s32.totalorder %v3834_v19, 109 }
 0x14b   : > { %2614 = vrot.lane.b32.xlu1 %v2613_v2, %s3370_s12  ;;  %vm618_vm3 = vcmp.lt.s32.totalorder %v3834_v19, 101  ;;  %vm651_vm4 = vcmp.lt.s32.totalorder %v3834_v19, 100  ;;  %vm684_vm5 = vcmp.lt.s32.totalorder %v3834_v19, 99  ;;  %vm717_vm7 = vcmp.lt.s32.totalorder %v3834_v19, 91 }
 0x14c   : > { %2624 = vrot.lane.b32.xlu0 %v2623_v7, %s3370_s12  ;;  %vm750_vm8 = vcmp.lt.s32.totalorder %v3834_v19, 90  ;;  %vm783_vm9 = vcmp.lt.s32.totalorder %v3834_v19, 89  ;;  %vm816_vm10 = vcmp.lt.s32.totalorder %v3834_v19, 11  ;;  %vm849_vm11 = vcmp.lt.s32.totalorder %v3834_v19, 10 }
 0x14d   : > { %vm5109_vm12 = vcmp.lt.s32.totalorder %v3834_v19, 9  ;;  %vm5086_vm13 = vcmp.lt.s32.totalorder %v3834_v19, 1  ;;  %vm5094_vm14 = vcmp.lt.s32.totalorder %v3834_v19, 119  ;;  %vm5087_vm15 = vcmp.lt.s32.totalorder %v3834_v19, 127 }
 0x14f   : > { %2619 = vrot.lane.b32.xlu1 %v2613_v2, %s3371_s10 }
 0x150   : > { %2634 = vrot.lane.b32.xlu0 %v2633_v8, %s3370_s12 }
 0x153   : > { %2629 = vrot.lane.b32.xlu1 %v2623_v7, %s3371_s10 }
 0x154   : > { %2644 = vrot.lane.b32.xlu0 %v2613_v2, %s3372_s24 }
 0x157   : > { %2639 = vrot.lane.b32.xlu1 %v2633_v8, %s3371_s10 }
 0x158   : > { %2654 = vrot.lane.b32.xlu0 %v2623_v7, %s3372_s24 }
 0x15b   : > { %2649 = vrot.lane.b32.xlu1 %v2613_v2, %s3373_s26 }
 0x15c   : > { %2664 = vrot.lane.b32.xlu0 %v2633_v8, %s3372_s24 }
 0x15f   : > { %2659 = vrot.lane.b32.xlu1 %v2623_v7, %s3373_s26 }
 0x160   : > { %2674 = vrot.lane.b32.xlu0 %v2613_v2, %s3374_s16 }
 0x163   : > { %2669 = vrot.lane.b32.xlu1 %v2633_v8, %s3373_s26 }
 0x164   : > { %2684 = vrot.lane.b32.xlu0 %v2623_v7, %s3374_s16 }
 0x167   : > { %2679 = vrot.lane.b32.xlu1 %v2613_v2, %s3375_s14 }
 0x168   : > { %2694 = vrot.lane.b32.xlu0 %v2633_v8, %s3374_s16 }
 0x16b   : > { %2689 = vrot.lane.b32.xlu1 %v2623_v7, %s3375_s14 }
 0x16c   : > { %2704 = vrot.lane.b32.xlu0 %v2613_v2, %s3376_s21 }
 0x16f   : > { %2699 = vrot.lane.b32.xlu1 %v2633_v8, %s3375_s14 }
 0x170   : > { %2714 = vrot.lane.b32.xlu0 %v2623_v7, %s3376_s21 }
 0x173   : > { %2709 = vrot.lane.b32.xlu1 %v2613_v2, %s5027_s20 }
 0x174   : > { %2724 = vrot.lane.b32.xlu0 %v2633_v8, %s3376_s21 }
 0x177   : > { %2719 = vrot.lane.b32.xlu1 %v2623_v7, %s5027_s20 }
 0x178   : > { %2734 = vrot.lane.b32.xlu0 %v2613_v2, %s3378_s23 }
 0x17b   : > { %2729 = vrot.lane.b32.xlu1 %v2633_v8, %s5027_s20  ;;  %s5031_s20 = smov 1  }
 0x17c   : > { %2744 = vrot.lane.b32.xlu0 %v2623_v7, %s3378_s23 }
 0x17f   : > { %2739 = vrot.lane.b32.xlu1 %v2613_v2, %s5028_s19 }
 0x180   : > { %2754 = vrot.lane.b32.xlu0 %v2633_v8, %s3378_s23 }
 0x183   : > { %2749 = vrot.lane.b32.xlu1 %v2623_v7, %s5028_s19 }
 0x184   : > { %2764 = vrot.lane.b32.xlu0 %v2613_v2, %s5029_s13 }
 0x187   : > { %2759 = vrot.lane.b32.xlu1 %v2633_v8, %s5028_s19  ;;  %s5034_s19 = smov 119  }
 0x188   : > { %2774 = vrot.lane.b32.xlu0 %v2623_v7, %s5029_s13 }
 0x18b   : > { %2769 = vrot.lane.b32.xlu1 %v2613_v2, %s5030_s22 }
 0x18c   : > { %2784 = vrot.lane.b32.xlu0 %v2633_v8, %s5029_s13  ;;  %s5032_s13 = smov 127  }
 0x18f   : > { %2779 = vrot.lane.b32.xlu1 %v2623_v7, %s5030_s22 }
 0x190   : > { %2794 = vrot.lane.b32.xlu0 %v2613_v2, %s5031_s20 }
 0x193   : > { %2789 = vrot.lane.b32.xlu1 %v2633_v8, %s5030_s22  ;;  %s5038_s22 = smov 117  }
 0x194   : > { %2804 = vrot.lane.b32.xlu0 %v2633_v8, %s5031_s20 }
 0x197   : > { %2799 = vrot.lane.b32.xlu1 %v2623_v7, %s5031_s20  ;;  %s5036_s20 = smov 118  }
 0x198   : > { %2814 = vrot.lane.b32.xlu0 %v3788_v13, %s5034_s19 }
 0x19b   : > { %2809 = vrot.lane.b32.xlu1 %v3788_v13, %s5032_s13 }
 0x19c   : > { %2824 = vrot.lane.b32.xlu0 %v3795_v18, %s5034_s19 }
 0x19f   : > { %2819 = vrot.lane.b32.xlu1 %v3795_v18, %s5032_s13 }
 0x1a0   : > { %981 = vrot.lane.b32.xlu0 %v3742_v6, %s5034_s19  ;;  %s3388_s19 = smov 39  }
 0x1a3   : > { %948 = vrot.lane.b32.xlu1 %v3742_v6, %s5032_s13  ;;  %s3387_s13 = smov 38  }
 0x1a4   : > { %2834 = vrot.lane.b32.xlu0 %v3788_v13, %s5038_s22 }
 0x1a7   : > { %2829 = vrot.lane.b32.xlu1 %v3788_v13, %s5036_s20 }
 0x1a8   : > { %2844 = vrot.lane.b32.xlu0 %v3795_v18, %s5038_s22 }
 0x1ab   : > { %2839 = vrot.lane.b32.xlu1 %v3795_v18, %s5036_s20 }
 0x1ac   : > { %1047 = vrot.lane.b32.xlu0 %v3742_v6, %s5038_s22  ;;  %s5042_s22 = smov 37  }
 0x1af   : > { %1014 = vrot.lane.b32.xlu1 %v3742_v6, %s5036_s20  ;;  %s5040_s20 = smov 29  }
 0x1b0   : > { %2854 = vrot.lane.b32.xlu0 %v3788_v13, %s3387_s13 }
 0x1b3   : > { %2849 = vrot.lane.b32.xlu1 %v3788_v13, %s3388_s19 }
 0x1b4   : > { %2864 = vrot.lane.b32.xlu0 %v3795_v18, %s3387_s13 }
 0x1b7   : > { %2859 = vrot.lane.b32.xlu1 %v3795_v18, %s3388_s19 }
 0x1b8   : > { %1113 = vrot.lane.b32.xlu0 %v3742_v6, %s3387_s13 }
 0x1bb   : > { %1080 = vrot.lane.b32.xlu1 %v3742_v6, %s3388_s19 }
 0x1bc   : > { %2874 = vrot.lane.b32.xlu0 %v3788_v13, %s5040_s20 }
 0x1bd   : > { %v2615_v20 = vpop.permute.xlu1 %2614 }
 0x1be   : > { %v3836_v21 = vpop.permute.xlu0 %2624  ;;  %v2617_v22 = vunpack.i.h.bf16 %v2615_v20  ;;  %v2616_v23 = vunpack.i.l.bf16 %v2615_v20 }
 0x1bf   : > { %2869 = vrot.lane.b32.xlu1 %v3788_v13, %s5042_s22  ;;  %v5071_v27 = vunpack.i.l.bf16 %v3836_v21  ;;  %v2627_v39 = vunpack.i.h.bf16 %v3836_v21 }
 0x1c0   : > { %2884 = vrot.lane.b32.xlu0 %v3795_v18, %s5040_s20  ;;  %v526_v28 = vsel %vm519_vm0, %v2616_v23, %v2617_v22 }
 0x1c1   : > { %v2620_v24 = vpop.permute.xlu1 %2619  ;;  %v527_v37 = vsel %vm519_vm0, %v5071_v27, %v2616_v23  ;;  %v525_v54 = vsel %vm519_vm0, %v2617_v22, %v2627_v39 }
 0x1c2   : > { %v3844_v25 = vpop.permute.xlu0 %2634  ;;  %v2622_v3 = vunpack.i.h.bf16 %v2620_v24  ;;  %v2621_v26 = vunpack.i.l.bf16 %v2620_v24 }
 0x1c3   : > { %2879 = vrot.lane.b32.xlu1 %v3795_v18, %s5042_s22  ;;  %v5076_v34 = vunpack.i.h.bf16 %v3844_v25  ;;  %v2636_v35 = vunpack.i.l.bf16 %v3844_v25 }
 0x1c4   : > { %1179 = vrot.lane.b32.xlu0 %v3742_v6, %s5040_s20  ;;  %v559_v29 = vsel %vm552_vm1, %v2621_v26, %v2622_v3  ;;  %s5044_s20 = smov 27  }
 0x1c5   : > { %v3855_v30 = vpop.permute.xlu1 %2629  ;;  %v2270_v31 = vpack.c.bf16 %v559_v29, %v526_v28  ;;  %v3886_v45 = vsel %vm519_vm0, %v2636_v35, %v5076_v34  ;;  %v524_v46 = vsel %vm519_vm0, %v2627_v39, %v2636_v35 }
 0x1c6   : > { %v3857_v32 = vpop.permute.xlu0 %2644  ;;  %v5069_v33 = vunpack.i.l.bf16 %v3855_v30  ;;  %v2632_v36 = vunpack.i.h.bf16 %v3855_v30 }
 0x1c7   : > { %1146 = vrot.lane.b32.xlu1 %v3742_v6, %s5042_s22  ;;  %2271 = vmatprep.subr.bf16.mxu0 %v2270_v31  ;;  %s5046_s22 = smov 28   ;;  %v2647_v48 = vunpack.i.h.bf16 %v3857_v32  ;;  %v2646_v49 = vunpack.i.l.bf16 %v3857_v32 }
 0x1c8   : > { %2894 = vrot.lane.b32.xlu0 %v3788_v13, %s5044_s20  ;;  %v560_v38 = vsel %vm552_vm1, %v5069_v33, %v2621_v26  ;;  %v558_v47 = vsel %vm552_vm1, %v2622_v3, %v2632_v36 }
 0x1c9   : > { %v3876_v40 = vpop.permute.xlu1 %2639  ;;  %v2272_v41 = vpack.c.bf16 %v560_v38, %v527_v37  ;;  %v2324_v59 = vpack.c.bf16 %v558_v47, %v525_v54  ;;  %v592_v7 = vsel %vm585_vm2, %v2646_v49, %v2647_v48 }
 0x1ca   : > { %v3878_v42 = vpop.permute.xlu0 %2654  ;;  %v5075_v43 = vunpack.i.h.bf16 %v3876_v40  ;;  %v2641_v44 = vunpack.i.l.bf16 %v3876_v40 }
 0x1cb   : > { %2889 = vrot.lane.b32.xlu1 %v3788_v13, %s5046_s22  ;;  %2273 = vmatpush1.bf16.msra.mxu0 %v2272_v41  ;;  %v5064_v2 = vunpack.i.l.bf16 %v3878_v42  ;;  %v2657_v32 = vunpack.i.h.bf16 %v3878_v42 }
 0x1cc   : > { %v3901_v50 = vsel %vm552_vm1, %v2641_v44, %v5075_v43  ;;  %2904 = vrot.lane.b32.xlu0 %v3795_v18, %s5044_s20  ;;  %v557_v51 = vsel %vm552_vm1, %v2632_v36, %v2641_v44 }
 0x1cd   : > { %v2650_v52 = vpop.permute.xlu1 %2649  ;;  %v2322_v53 = vpack.c.bf16 %v557_v51, %v524_v46  ;;  %v593_v29 = vsel %vm585_vm2, %v5064_v2, %v2646_v49  ;;  %v591_v54 = vsel %vm585_vm2, %v2647_v48, %v2657_v32 }
 0x1ce   : > { %v3912_v56 = vpop.permute.xlu0 %2664  ;;  %v2652_v57 = vunpack.i.h.bf16 %v2650_v52  ;;  %v2651_v58 = vunpack.i.l.bf16 %v2650_v52 }
 0x1cf   : > { %2899 = vrot.lane.b32.xlu1 %v3795_v18, %s5046_s22  ;;  %2323 = vmatprep.subr.bf16.mxu1 %v2322_v53  ;;  %v5073_v3 = vunpack.i.h.bf16 %v3912_v56  ;;  %v2666_v26 = vunpack.i.l.bf16 %v3912_v56 }
 0x1d0   : > { %1245 = vrot.lane.b32.xlu0 %v3742_v6, %s5044_s20  ;;  %2325 = vmatpush1.bf16.msra.mxu1 %v2324_v59  ;;  %v625_v8 = vsel %vm618_vm3, %v2651_v58, %v2652_v57  ;;  %s3393_s20 = smov 18  }
 0x1d1   : > { %v3923_v20 = vpop.permute.xlu1 %2659  ;;  %v2274_v22 = vpack.c.bf16 %v625_v8, %v592_v7  ;;  %v3954_v41 = vsel %vm585_vm2, %v2666_v26, %v5073_v3  ;;  %v590_v44 = vsel %vm585_vm2, %v2657_v32, %v2666_v26 }
 0x1d2   : > { %v3925_v23 = vpop.permute.xlu0 %2674  ;;  %v5066_v24 = vunpack.i.l.bf16 %v3923_v20  ;;  %v2662_v28 = vunpack.i.h.bf16 %v3923_v20 }
 0x1d3   : > { %1212 = vrot.lane.b32.xlu1 %v3742_v6, %s5046_s22  ;;  %2275 = vmatprep.subr.bf16.mxu0 %v2274_v22  ;;  %s3394_s22 = smov 19   ;;  %v2677_v47 = vunpack.i.h.bf16 %v3925_v23  ;;  %v2676_v49 = vunpack.i.l.bf16 %v3925_v23 }
 0x1d4   : > { %2914 = vrot.lane.b32.xlu0 %v3788_v13, %s3393_s20  ;;  %v626_v31 = vsel %vm618_vm3, %v5066_v24, %v2651_v58  ;;  %v624_v46 = vsel %vm618_vm3, %v2652_v57, %v2662_v28 }
 0x1d5   : > { %v3944_v35 = vpop.permute.xlu1 %2669  ;;  %v2276_v36 = vpack.c.bf16 %v626_v31, %v593_v29  ;;  %v2328_v8 = vpack.c.bf16 %v624_v46, %v591_v54  ;;  %v658_v48 = vsel %vm651_vm4, %v2676_v49, %v2677_v47  ;;  %v3998_v31 = vpack.i.bf16 %v3734_v0, %v3732_v63 }
 0x1d6   : > { %v3946_v37 = vpop.permute.xlu0 %2684  ;;  %v5072_v38 = vunpack.i.h.bf16 %v3944_v35  ;;  %v2671_v39 = vunpack.i.l.bf16 %v3944_v35 }
 0x1d7   : > { %2909 = vrot.lane.b32.xlu1 %v3788_v13, %s3394_s22  ;;  %2277 = vmatpush1.bf16.msra.mxu0 %v2276_v36  ;;  %v5060_v22 = vunpack.i.l.bf16 %v3946_v37 }
 0x1d8   : > { %v3969_v51 = vsel %vm618_vm3, %v2671_v39, %v5072_v38  ;;  %2924 = vrot.lane.b32.xlu0 %v3795_v18, %s3393_s20  ;;  %v623_v13 = vsel %vm618_vm3, %v2662_v28, %v2671_v39 }
 0x1d9   : > { %v2680_v52 = vpop.permute.xlu1 %2679  ;;  %v2326_v53 = vpack.c.bf16 %v623_v13, %v590_v44  ;;  %v4005_v44 = vld [vmem:[#allocation6 + $0x8] sm:$0xff]  ;;  %v659_v46 = vsel %vm651_vm4, %v5060_v22, %v2676_v49 }
 0x1da   : > { %v3980_v58 = vpop.permute.xlu0 %2694  ;;  %v2682_v59 = vunpack.i.h.bf16 %v2680_v52  ;;  %v2681_v7 = vunpack.i.l.bf16 %v2680_v52  ;;  %2247 = vmatprep.mubr.msk.f32.mxu0 %vm1593_vm6, %v4005_v44  ;;  %v2687_v52 = vunpack.i.h.bf16 %v3946_v37  ;;  %2248 = vmatprep.mubr.msk.f32.mxu1 %vm1593_vm6, %v4005_v44 }
 0x1db   : > { %2919 = vrot.lane.b32.xlu1 %v3795_v18, %s3394_s22  ;;  %2327 = vmatprep.subr.bf16.mxu1 %v2326_v53  ;;  %v5063_v32 = vunpack.i.h.bf16 %v3980_v58  ;;  %v2696_v36 = vunpack.i.l.bf16 %v3980_v58 }
 0x1dc   : > { %1311 = vrot.lane.b32.xlu0 %v3742_v6, %s3393_s20  ;;  %2329 = vmatpush1.bf16.msra.mxu1 %v2328_v8  ;;  %v691_v23 = vsel %vm684_vm5, %v2681_v7, %v2682_v59 }
 0x1dd   : > { %v3991_v26 = vpop.permute.xlu1 %2689  ;;  %v2278_v28 = vpack.c.bf16 %v691_v23, %v658_v48  ;;  %v656_v23 = vsel %vm651_vm4, %v2687_v52, %v2696_v36 }
 0x1de   : > { %v3993_v29 = vpop.permute.xlu0 %2704  ;;  %v5056_v18 = vunpack.i.l.bf16 %v3991_v26  ;;  %v2692_v39 = vunpack.i.h.bf16 %v3991_v26 }
 0x1df   : > { %1278 = vrot.lane.b32.xlu1 %v3742_v6, %s3394_s22  ;;  %2279 = vmatprep.subr.bf16.mxu0 %v2278_v28 }
 0x1e0   : > { %2934 = vrot.lane.b32.xlu0 %v3998_v31, %s3371_s10  ;;  %v692_v13 = vsel %vm684_vm5, %v5056_v18, %v2681_v7  ;;  %v4032_v7 = vsel %vm651_vm4, %v2696_v36, %v5063_v32  ;;  %v690_v28 = vsel %vm684_vm5, %v2682_v59, %v2692_v39  ;;  %v657_v59 = vsel %vm651_vm4, %v2677_v47, %v2687_v52  ;;  %s5150_s10 = smov 90  }
 0x1e1   : > { %v4020_v53 = vpop.permute.xlu1 %2699  ;;  %v2280_v54 = vpack.c.bf16 %v692_v13, %v659_v46  ;;  %v2707_v46 = vunpack.i.h.bf16 %v3993_v29  ;;  %v2706_v13 = vunpack.i.l.bf16 %v3993_v29  ;;  %v2332_v11 = vpack.c.bf16 %v690_v28, %v657_v59 }
 0x1e2   : > { %v4024_v8 = vpop.permute.xlu0 %2714  ;;  %v5062_v49 = vunpack.i.h.bf16 %v4020_v53  ;;  %v2701_v48 = vunpack.i.l.bf16 %v4020_v53 }
 0x1e3   : > { %2929 = vrot.lane.b32.xlu1 %v3998_v31, %s3370_s12  ;;  %2281 = vmatpush1.bf16.msra.mxu0 %v2280_v54  ;;  %s3395_s12 = smov 17   ;;  %v724_v47 = vsel %vm717_vm7, %v2706_v13, %v2707_v46 }
 0x1e4   : > { %v4047_v17 = vsel %vm684_vm5, %v2701_v48, %v5062_v49  ;;  %1340 = vrot.lane.b32.xlu0 %v3730_v62, %s3395_s12  ;;  %v689_v36 = vsel %vm684_vm5, %v2692_v39, %v2701_v48  ;;  %v5058_v39 = vunpack.i.l.bf16 %v4024_v8 }
 0x1e5   : > { %v2710_v54 = vpop.permute.xlu1 %2709  ;;  %v2330_v16 = vpack.c.bf16 %v689_v36, %v656_v23 }
 0x1e6   : > { %v4058_v15 = vpop.permute.xlu0 %2724  ;;  %v2712_v14 = vunpack.i.h.bf16 %v2710_v54  ;;  %v2711_v12 = vunpack.i.l.bf16 %v2710_v54 }
 0x1e7   : > { %1338 = vrot.lane.b32.xlu1 %v3728_v61, %s3395_s12  ;;  %2331 = vmatprep.subr.bf16.mxu1 %v2330_v16  ;;  %v5059_v16 = vunpack.i.h.bf16 %v4058_v15  ;;  %v2726_v54 = vunpack.i.l.bf16 %v4058_v15 }
 0x1e8   : > { %2939 = vrot.lane.b32.xlu0 %v3998_v31, %s3372_s24  ;;  %2333 = vmatpush1.bf16.msra.mxu1 %v2332_v11  ;;  %v757_v52 = vsel %vm750_vm8, %v2711_v12, %v2712_v14  ;;  %v725_v11 = vsel %vm717_vm7, %v5058_v39, %v2706_v13  ;;  %s5151_s24 = smov 10  }
 0x1e9   : > { %v4069_v48 = vpop.permute.xlu1 %2719  ;;  %v2282_v23 = vpack.c.bf16 %v757_v52, %v724_v47  ;;  %v2717_v52 = vunpack.i.h.bf16 %v4024_v8  ;;  %v4100_v13 = vsel %vm717_vm7, %v2726_v54, %v5059_v16 }
 0x1ea   : > { %v4071_v28 = vpop.permute.xlu0 %2734  ;;  %v5057_v36 = vunpack.i.l.bf16 %v4069_v48  ;;  %v2722_v59 = vunpack.i.h.bf16 %v4069_v48 }
 0x1eb   : > { %1336 = vrot.lane.b32.xlu1 %v3726_v60, %s3395_s12  ;;  %2283 = vmatprep.subr.bf16.mxu0 %v2282_v23 }
 0x1ec   : > { %1342 = vrot.lane.b32.xlu0 %v3740_v5, %s3395_s12  ;;  %v758_v47 = vsel %vm750_vm8, %v5057_v36, %v2711_v12  ;;  %v722_v12 = vsel %vm717_vm7, %v2717_v52, %v2726_v54  ;;  %v2736_v36 = vunpack.i.l.bf16 %v4071_v28 }
 0x1ed   : > { %v4090_v10 = vpop.permute.xlu1 %2729  ;;  %v2284_v9 = vpack.c.bf16 %v758_v47, %v725_v11  ;;  %v756_v11 = vsel %vm750_vm8, %v2712_v14, %v2722_v59  ;;  %v2737_v47 = vunpack.i.h.bf16 %v4071_v28  ;;  %v723_v14 = vsel %vm717_vm7, %v2707_v46, %v2717_v52 }
 0x1ee   : > { %v4092_v29 = vpop.permute.xlu0 %2744  ;;  %v5061_v23 = vunpack.i.h.bf16 %v4090_v10  ;;  %v2731_v18 = vunpack.i.l.bf16 %v4090_v10  ;;  %v2336_v32 = vpack.c.bf16 %v756_v11, %v723_v14 }
 0x1ef   : > { %2944 = vrot.lane.b32.xlu1 %v3998_v31, %s3373_s26  ;;  %2285 = vmatpush1.bf16.msra.mxu0 %v2284_v9  ;;  %v790_v46 = vsel %vm783_vm9, %v2736_v36, %v2737_v47  ;;  %s5152_s26 = smov 11  }
 0x1f0   : > { %v4115_v39 = vsel %vm750_vm8, %v2731_v18, %v5061_v23  ;;  %2949 = vrot.lane.b32.xlu0 %v3998_v31, %s3374_s16  ;;  %v755_v9 = vsel %vm750_vm8, %v2722_v59, %v2731_v18  ;;  %v5068_v18 = vunpack.i.l.bf16 %v4092_v29  ;;  %s5153_s16 = smov 1  }
 0x1f1   : > { %v2740_v54 = vpop.permute.xlu1 %2739  ;;  %v2334_v16 = vpack.c.bf16 %v755_v9, %v722_v12 }
 0x1f2   : > { %v4126_v22 = vpop.permute.xlu0 %2754  ;;  %v2742_v23 = vunpack.i.h.bf16 %v2740_v54  ;;  %v2741_v49 = vunpack.i.l.bf16 %v2740_v54  ;;  %v791_v54 = vsel %vm783_vm9, %v5068_v18, %v2736_v36 }
 0x1f3   : > { %v5065_v2 = vunpack.i.h.bf16 %v4126_v22  ;;  %v2756_v57 = vunpack.i.l.bf16 %v4126_v22  ;;  %1344 = vrot.lane.b32.xlu1 %v3742_v6, %s3395_s12  ;;  %2335 = vmatprep.subr.bf16.mxu1 %v2334_v16 }
 0x1f4   : > { %2959 = vrot.lane.b32.xlu0 %v3998_v31, %s3376_s21  ;;  %2337 = vmatpush1.bf16.msra.mxu1 %v2336_v32  ;;  %v823_v59 = vsel %vm816_vm10, %v2741_v49, %v2742_v23  ;;  %s5155_s21 = smov 119  }
 0x1f5   : > { %v4143_v52 = vsel %vm783_vm9, %v2756_v57, %v5065_v2  ;;  %v4145_v12 = vpop.permute.xlu1 %2749  ;;  %v2286_v16 = vpack.c.bf16 %v823_v59, %v790_v46  ;;  %v2747_v46 = vunpack.i.h.bf16 %v4092_v29 }
 0x1f6   : > { %v4147_v11 = vpop.permute.xlu0 %2764  ;;  %v5067_v9 = vunpack.i.l.bf16 %v4145_v12  ;;  %v2752_v32 = vunpack.i.h.bf16 %v4145_v12 }
 0x1f7   : > { %2954 = vrot.lane.b32.xlu1 %v3998_v31, %s3375_s14  ;;  %2287 = vmatprep.subr.bf16.mxu0 %v2286_v16  ;;  %s5154_s14 = smov 9  }
 0x1f8   : > { %2969 = vrot.lane.b32.xlu0 %v3998_v31, %s3378_s23  ;;  %v824_v14 = vsel %vm816_vm10, %v5067_v9, %v2741_v49  ;;  %v788_v49 = vsel %vm783_vm9, %v2747_v46, %v2756_v57  ;;  %v822_v36 = vsel %vm816_vm10, %v2742_v23, %v2752_v32  ;;  %s5157_s23 = smov 127  }
 0x1f9   : > { %v4164_v59 = vpop.permute.xlu1 %2759  ;;  %v2288_v28 = vpack.c.bf16 %v824_v14, %v791_v54  ;;  %v2767_v54 = vunpack.i.h.bf16 %v4147_v11  ;;  %v2766_v14 = vunpack.i.l.bf16 %v4147_v11  ;;  %v789_v11 = vsel %vm783_vm9, %v2737_v47, %v2747_v46 }
 0x1fa   : > { %v4166_v2 = vpop.permute.xlu0 %2774  ;;  %v5070_v16 = vunpack.i.h.bf16 %v4164_v59  ;;  %v2761_v24 = vunpack.i.l.bf16 %v4164_v59  ;;  %v2340_v38 = vpack.c.bf16 %v822_v36, %v789_v11 }
 0x1fb   : > { %2964 = vrot.lane.b32.xlu1 %v3998_v31, %s5150_s10  ;;  %2289 = vmatpush1.bf16.msra.mxu0 %v2288_v28  ;;  %v856_v47 = vsel %vm849_vm11, %v2766_v14, %v2767_v54  ;;  %s5158_s10 = smov 117  }
 0x1fc   : > { %v4183_v9 = vsel %vm816_vm10, %v2761_v24, %v5070_v16  ;;  %2979 = vrot.lane.b32.xlu0 %v3998_v31, %s5151_s24  ;;  %v821_v28 = vsel %vm816_vm10, %v2752_v32, %v2761_v24  ;;  %v5079_v24 = vunpack.i.l.bf16 %v4166_v2  ;;  %s5160_s24 = smov 118  }
 0x1fd   : > { %v2770_v23 = vpop.permute.xlu1 %2769  ;;  %v2338_v18 = vpack.c.bf16 %v821_v28, %v788_v49 }
 0x1fe   : > { %v4194_v33 = vpop.permute.xlu0 %2784  ;;  %v2772_v16 = vunpack.i.h.bf16 %v2770_v23  ;;  %v2771_v27 = vunpack.i.l.bf16 %v2770_v23 }
 0x1ff   : > { %v5074_v3 = vunpack.i.h.bf16 %v4194_v33  ;;  %v2786_v55 = vunpack.i.l.bf16 %v4194_v33  ;;  %2974 = vrot.lane.b32.xlu1 %v3998_v31, %s5152_s26  ;;  %2339 = vmatprep.subr.bf16.mxu1 %v2338_v18  ;;  %s5164_s26 = smov 29  }
 0x200   : > { %2989 = vrot.lane.b32.xlu0 %v3998_v31, %s5153_s16  ;;  %2341 = vmatpush1.bf16.msra.mxu1 %v2340_v38  ;;  %v889_v32 = vsel %vm5109_vm12, %v2771_v27, %v2772_v16  ;;  %s5171_s16 = smov 28  }
 0x201   : > { %v4211_v46 = vsel %vm849_vm11, %v2786_v55, %v5074_v3  ;;  %v4213_v49 = vpop.permute.xlu1 %2779  ;;  %v2290_v18 = vpack.c.bf16 %v889_v32, %v856_v47  ;;  %v857_v47 = vsel %vm849_vm11, %v5079_v24, %v2766_v14 }
 0x202   : > { %v2795_v36 = vpop.permute.xlu0 %2794  ;;  %v5080_v28 = vunpack.i.l.bf16 %v4213_v49  ;;  %v2782_v11 = vunpack.i.h.bf16 %v4213_v49 }
 0x203   : > { %v2797_v38 = vunpack.i.h.bf16 %v2795_v36  ;;  %v2796_v23 = vunpack.i.l.bf16 %v2795_v36  ;;  %2984 = vrot.lane.b32.xlu1 %v3998_v31, %s5154_s14  ;;  %2291 = vmatprep.subr.bf16.mxu0 %v2290_v18  ;;  %v2777_v36 = vunpack.i.h.bf16 %v4166_v2 }
 0x204   : > { %2999 = vrot.lane.b32.xlu0 %v3998_v31, %s5155_s21  ;;  %v890_v32 = vsel %vm5109_vm12, %v5080_v28, %v2771_v27 }
 0x205   : > { %v4231_v57 = vpop.permute.xlu1 %2789  ;;  %v2292_v3 = vpack.c.bf16 %v890_v32, %v857_v47  ;;  %v922_v18 = vsel %vm5086_vm13, %v2796_v23, %v2797_v38  ;;  %v888_v47 = vsel %vm5109_vm12, %v2772_v16, %v2782_v11 }
 0x206   : > { %v4235_v43 = vpop.permute.xlu0 %2804  ;;  %v5081_v34 = vunpack.i.h.bf16 %v4231_v57  ;;  %v2791_v4 = vunpack.i.l.bf16 %v4231_v57  ;;  %v2294_v14 = vpack.c.bf16 %v3728_v61, %v922_v18  ;;  %v854_v61 = vsel %vm849_vm11, %v2777_v36, %v2786_v55 }
 0x207   : > { %5156 = vst [vmem:[#allocation26_spill] sm:$0xff] %v4235_v43  ;;  %v5084_v24 = vunpack.i.h.bf16 %v4235_v43  ;;  %v2806_v27 = vunpack.i.l.bf16 %v4235_v43  ;;  %2994 = vrot.lane.b32.xlu1 %v3998_v31, %s5157_s23  ;;  %2293 = vmatpush1.bf16.msra.mxu0 %v2292_v3 }
 0x208   : > { %v4250_v32 = vsel %vm5109_vm12, %v2791_v4, %v5081_v34  ;;  %987 = vrot.lane.b32.xlu0 %v3736_v1, %s5155_s21  ;;  %2295 = vmatprep.subr.bf16.mxu0 %v2294_v14  ;;  %v887_v18 = vsel %vm5109_vm12, %v2782_v11, %v2791_v4  ;;  %v855_v14 = vsel %vm849_vm11, %v2767_v54, %v2777_v36  ;;  %vm5125_vm12 = vcmp.lt.s32.totalorder %v3834_v19, 28 }
 0x209   : > { %v4262_v3 = vsel %vm5086_vm13, %v2806_v27, %v5084_v24  ;;  %v4266_v28 = vpop.permute.xlu1 %2799  ;;  %v2342_v34 = vpack.c.bf16 %v887_v18, %v854_v61  ;;  %v2344_v11 = vpack.c.bf16 %v888_v47, %v855_v14 }
 0x20a   : > { %v2815_v6 = vpop.permute.xlu0 %2814  ;;  %v2802_v55 = vunpack.i.h.bf16 %v4266_v28  ;;  %v5089_v4 = vunpack.i.l.bf16 %v4266_v28 }
 0x20b   : > { %v2817_v43 = vunpack.i.h.bf16 %v2815_v6  ;;  %954 = vrot.lane.b32.xlu1 %v3736_v1, %s5157_s23  ;;  %2343 = vmatprep.subr.bf16.mxu1 %v2342_v34  ;;  %v2816_v16 = vunpack.i.l.bf16 %v2815_v6 }
 0x20c   : > { %3009 = vrot.lane.b32.xlu0 %v3998_v31, %s5158_s10  ;;  %2345 = vmatpush1.bf16.msra.mxu1 %v2344_v11  ;;  %v923_v54 = vsel %vm5086_vm13, %v5089_v4, %v2796_v23  ;;  %v920_v36 = vsel %vm5086_vm13, %v2802_v55, %v2806_v27  ;;  %v921_v47 = vsel %vm5086_vm13, %v2797_v38, %v2802_v55  ;;  %vm5102_vm13 = vcmp.lt.s32.totalorder %v3834_v19, 117 }
 0x20d   : > { %v2810_v61 = vpop.permute.xlu1 %2809  ;;  %v2296_v34 = vpack.c.bf16 %v3726_v60, %v923_v54  ;;  %v2346_v6 = vpack.c.bf16 %v3740_v5, %v920_v36  ;;  %v2348_v18 = vpack.c.bf16 %v3730_v62, %v921_v47  ;;  %v995_v62 = vsel %vm5094_vm14, %v2816_v16, %v2817_v43 }
 0x20e   : > { %v4289_v14 = vpop.permute.xlu0 %2824  ;;  %v2812_v11 = vunpack.i.h.bf16 %v2810_v61  ;;  %v2811_v24 = vunpack.i.l.bf16 %v2810_v61 }
 0x20f   : > { %5159 = vst [vmem:[#allocation27_spill] sm:$0xff] %v4289_v14  ;;  %3004 = vrot.lane.b32.xlu1 %v3998_v31, %s5160_s24  ;;  %2297 = vmatpush1.bf16.msra.mxu0 %v2296_v34  ;;  %v5085_v23 = vunpack.i.l.bf16 %v4289_v14  ;;  %v2827_v36 = vunpack.i.h.bf16 %v4289_v14 }
 0x210   : > { %1053 = vrot.lane.b32.xlu0 %v3736_v1, %s5158_s10  ;;  %2347 = vmatprep.subr.bf16.mxu1 %v2346_v6  ;;  %v962_v60 = vsel %vm5087_vm15, %v2811_v24, %v2812_v11 }
 0x211   : > { %2349 = vmatpush1.bf16.msra.mxu1 %v2348_v18  ;;  %v4300_v5 = vpop.permute.xlu1 %2819  ;;  %v2298_v38 = vpack.c.bf16 %v995_v62, %v962_v60  ;;  %v996_v61 = vsel %vm5094_vm14, %v5085_v23, %v2816_v16  ;;  %v994_v16 = vsel %vm5094_vm14, %v2817_v43, %v2827_v36 }
 0x212   : > { %v4302_v27 = vpop.permute.xlu0 %981  ;;  %v2822_v55 = vunpack.i.h.bf16 %v4300_v5  ;;  %v5088_v54 = vunpack.i.l.bf16 %v4300_v5 }
 0x213   : > { %5161 = vst [vmem:[#allocation28_spill] sm:$0xff] %v4302_v27  ;;  %1020 = vrot.lane.b32.xlu1 %v3736_v1, %s5160_s24  ;;  %2299 = vmatprep.subr.bf16.mxu0 %v2298_v38  ;;  %v993_v60 = vsel %vm5094_vm14, %v2827_v36, %v4302_v27  ;;  %vm5108_vm14 = vcmp.lt.s32.totalorder %v3834_v19, 38  ;;  %s1997_s24 = scalar_lea.sflag [#allocation5], %s3677_s17 }
 0x214   : > { %3019 = vrot.lane.b32.xlu0 %v3998_v31, %s3387_s13  ;;  %v963_v47 = vsel %vm5087_vm15, %v5088_v54, %v2811_v24  ;;  %v961_v18 = vsel %vm5087_vm15, %v2812_v11, %v2822_v55 }
 0x215   : > { %v4319_v34 = vpop.permute.xlu1 %948  ;;  %v2300_v6 = vpack.c.bf16 %v996_v61, %v963_v47  ;;  %v2352_v11 = vpack.c.bf16 %v994_v16, %v961_v18 }
 0x216   : > { %5162 = vst [vmem:[#allocation29_spill] sm:$0xff] %v4319_v34  ;;  %v2835_v62 = vpop.permute.xlu0 %2834  ;;  %v960_v24 = vsel %vm5087_vm15, %v2822_v55, %v4319_v34  ;;  %vm5095_vm15 = vcmp.lt.s32.totalorder %v3834_v19, 118 }
 0x217   : > { %v2350_v38 = vpack.c.bf16 %v993_v60, %v960_v24  ;;  %3014 = vrot.lane.b32.xlu1 %v3998_v31, %s3388_s19  ;;  %2301 = vmatpush1.bf16.msra.mxu0 %v2300_v6  ;;  %v2837_v47 = vunpack.i.h.bf16 %v2835_v62  ;;  %v2836_v61 = vunpack.i.l.bf16 %v2835_v62 }
 0x218   : > { %1119 = vrot.lane.b32.xlu0 %v3736_v1, %s3387_s13  ;;  %s5169_s13 = smov 27  }
 0x219   : > { %v2830_v23 = vpop.permute.xlu1 %2829  ;;  %2351 = vmatprep.subr.bf16.mxu1 %v2350_v38  ;;  %v1061_v6 = vsel %vm5102_vm13, %v2836_v61, %v2837_v47 }
 0x21a   : > { %v4337_v55 = vpop.permute.xlu0 %2844  ;;  %v2832_v60 = vunpack.i.h.bf16 %v2830_v23  ;;  %v2831_v24 = vunpack.i.l.bf16 %v2830_v23  ;;  %2353 = vmatpush1.bf16.msra.mxu1 %v2352_v11 }
 0x21b   : > { %5163 = vst [vmem:[#allocation30_spill] sm:$0xff] %v4337_v55  ;;  %1086 = vrot.lane.b32.xlu1 %v3736_v1, %s3388_s19  ;;  %v5093_v43 = vunpack.i.l.bf16 %v4337_v55  ;;  %v2847_v11 = vunpack.i.h.bf16 %v4337_v55  ;;  %s5167_s19 = smov 37  }
 0x21c   : > { %3029 = vrot.lane.b32.xlu0 %v3998_v31, %s5164_s26  ;;  %v1028_v36 = vsel %vm5095_vm15, %v2831_v24, %v2832_v60 }
 0x21d   : > { %v4348_v18 = vpop.permute.xlu1 %2839  ;;  %v2302_v62 = vpack.c.bf16 %v1061_v6, %v1028_v36  ;;  %v1062_v6 = vsel %vm5102_vm13, %v5093_v43, %v2836_v61  ;;  %v1060_v61 = vsel %vm5102_vm13, %v2837_v47, %v2847_v11 }
 0x21e   : > { %5165 = vst [vmem:[#allocation31_spill] sm:$0xff] %v4348_v18  ;;  %v4350_v38 = vpop.permute.xlu0 %1047  ;;  %v2842_v23 = vunpack.i.h.bf16 %v4348_v18  ;;  %v5092_v16 = vunpack.i.l.bf16 %v4348_v18 }
 0x21f   : > { %5166 = vst [vmem:[#allocation32_spill] sm:$0xff] %v4350_v38  ;;  %3024 = vrot.lane.b32.xlu1 %v3998_v31, %s5167_s19  ;;  %2303 = vmatprep.subr.bf16.mxu0 %v2302_v62  ;;  %v1059_v62 = vsel %vm5102_vm13, %v2847_v11, %v4350_v38  ;;  %vm5118_vm13 = vcmp.lt.s32.totalorder %v3834_v19, 29 }
 0x220   : > { %1185 = vrot.lane.b32.xlu0 %v3736_v1, %s5164_s26  ;;  %v1029_v36 = vsel %vm5095_vm15, %v5092_v16, %v2831_v24  ;;  %v1027_v27 = vsel %vm5095_vm15, %v2832_v60, %v2842_v23 }
 0x221   : > { %v4367_v54 = vpop.permute.xlu1 %1014  ;;  %v2304_v4 = vpack.c.bf16 %v1062_v6, %v1029_v36  ;;  %v2356_v60 = vpack.c.bf16 %v1060_v61, %v1027_v27 }
 0x222   : > { %5168 = vst [vmem:[#allocation33_spill] sm:$0xff] %v4367_v54  ;;  %v2855_v14 = vpop.permute.xlu0 %2854  ;;  %v1026_v24 = vsel %vm5095_vm15, %v2842_v23, %v4367_v54  ;;  %vm5103_vm15 = vcmp.lt.s32.totalorder %v3834_v19, 39 }
 0x223   : > { %v2354_v16 = vpack.c.bf16 %v1059_v62, %v1026_v24  ;;  %1152 = vrot.lane.b32.xlu1 %v3736_v1, %s5167_s19  ;;  %2305 = vmatpush1.bf16.msra.mxu0 %v2304_v4  ;;  %v2857_v36 = vunpack.i.h.bf16 %v2855_v14  ;;  %v2856_v6 = vunpack.i.l.bf16 %v2855_v14  ;;  %s3396_s19 = smov [#allocation14]  }
 0x224   : > { %3039 = vrot.lane.b32.xlu0 %v3998_v31, %s5169_s13 }
 0x225   : > { %v2850_v43 = vpop.permute.xlu1 %2849  ;;  %2355 = vmatprep.subr.bf16.mxu1 %v2354_v16  ;;  %v1127_v27 = vsel %vm5108_vm14, %v2856_v6, %v2857_v36 }
 0x226   : > { %v4385_v23 = vpop.permute.xlu0 %2864  ;;  %v2852_v62 = vunpack.i.h.bf16 %v2850_v43  ;;  %v2851_v24 = vunpack.i.l.bf16 %v2850_v43  ;;  %2357 = vmatpush1.bf16.msra.mxu1 %v2356_v60 }
 0x227   : > { %5170 = vst [vmem:[#allocation34_spill] sm:$0xff] %v4385_v23  ;;  %3034 = vrot.lane.b32.xlu1 %v3998_v31, %s5171_s16  ;;  %v5101_v4 = vunpack.i.l.bf16 %v4385_v23  ;;  %v2867_v60 = vunpack.i.h.bf16 %v4385_v23 }
 0x228   : > { %1251 = vrot.lane.b32.xlu0 %v3736_v1, %s5169_s13  ;;  %v1094_v14 = vsel %vm5103_vm15, %v2851_v24, %v2852_v62  ;;  %s3227_s13 = sshll.u32 %s3396_s19, 4  ;;  %s3228_s13 = int_to_ptr.vmem [resolvable:$false] %s3227_s13 }
 0x229   : > { %v4396_v47 = vpop.permute.xlu1 %2859  ;;  %v2306_v16 = vpack.c.bf16 %v1127_v27, %v1094_v14  ;;  %v1128_v27 = vsel %vm5108_vm14, %v5101_v4, %v2856_v6  ;;  %v1126_v6 = vsel %vm5108_vm14, %v2857_v36, %v2867_v60 }
 0x22a   : > { %5172 = vst [vmem:[#allocation35_spill] sm:$0xff] %v4396_v47  ;;  %v4398_v11 = vpop.permute.xlu0 %1113  ;;  %v2862_v43 = vunpack.i.h.bf16 %v4396_v47  ;;  %v5100_v61 = vunpack.i.l.bf16 %v4396_v47 }
 0x22b   : > { %5173 = vst [vmem:[#allocation36_spill] sm:$0xff] %v4398_v11  ;;  %1218 = vrot.lane.b32.xlu1 %v3736_v1, %s5171_s16  ;;  %2307 = vmatprep.subr.bf16.mxu0 %v2306_v16  ;;  %v1125_v16 = vsel %vm5108_vm14, %v2867_v60, %v4398_v11  ;;  %vm1253_vm14 = vcmp.lt.s32.totalorder %v3834_v19, 27  ;;  %s3229_s16 = scalar_lea.vmem %s3228_s13, 1024 }
 0x22c   : > { %3049 = vrot.lane.b32.xlu0 %v3998_v31, %s3393_s20  ;;  %v1095_v14 = vsel %vm5103_vm15, %v5100_v61, %v2851_v24  ;;  %v1093_v54 = vsel %vm5103_vm15, %v2852_v62, %v2862_v43 }
 0x22d   : > { %v4415_v18 = vpop.permute.xlu1 %1080  ;;  %v2308_v55 = vpack.c.bf16 %v1128_v27, %v1095_v14  ;;  %v2360_v62 = vpack.c.bf16 %v1126_v6, %v1093_v54 }
 0x22e   : > { %5174 = vst [vmem:[#allocation37_spill] sm:$0xff] %v4415_v18  ;;  %v2875_v38 = vpop.permute.xlu0 %2874  ;;  %v1092_v24 = vsel %vm5103_vm15, %v2862_v43, %v4415_v18  ;;  %vm5117_vm15 = vcmp.lt.s32.totalorder %v3834_v19, 37 }
 0x22f   : > { %v2358_v61 = vpack.c.bf16 %v1125_v16, %v1092_v24  ;;  %3044 = vrot.lane.b32.xlu1 %v3998_v31, %s3394_s22  ;;  %2309 = vmatpush1.bf16.msra.mxu0 %v2308_v55  ;;  %v2877_v14 = vunpack.i.h.bf16 %v2875_v38  ;;  %v2876_v27 = vunpack.i.l.bf16 %v2875_v38 }
 0x230   : > { %1317 = vrot.lane.b32.xlu0 %v3736_v1, %s3393_s20 }
 0x231   : > { %v2870_v4 = vpop.permute.xlu1 %2869  ;;  %2359 = vmatprep.subr.bf16.mxu1 %v2358_v61  ;;  %v1193_v38 = vsel %vm5118_vm13, %v2876_v27, %v2877_v14  ;;  %v1587_v61 = vld [vmem:[#allocation8] sm:$0xff] }
 0x232   : > { %v4433_v43 = vpop.permute.xlu0 %2884  ;;  %v2872_v16 = vunpack.i.h.bf16 %v2870_v4  ;;  %v2871_v31 = vunpack.i.l.bf16 %v2870_v4  ;;  %2361 = vmatpush1.bf16.msra.mxu1 %v2360_v62 }
 0x233   : > { %5175 = vst [vmem:[#allocation38_spill] sm:$0xff] %v4433_v43  ;;  %1284 = vrot.lane.b32.xlu1 %v3736_v1, %s3394_s22  ;;  %v2887_v62 = vunpack.i.h.bf16 %v4433_v43  ;;  %s5302_s22 = sshll.u32 %s3677_s17, 5 }
 0x234   : > { %1348 = vrot.lane.b32.xlu0 %v3734_v0, %s3395_s12  ;;  %v1160_v54 = vsel %vm5117_vm15, %v2871_v31, %v2872_v16  ;;  %s4881_s20 = scalar_lea.vmem [#allocation14], %s5302_s22 }
 0x235   : > { %v4444_v36 = vpop.permute.xlu1 %2879  ;;  %v2310_v60 = vpack.c.bf16 %v1193_v38, %v1160_v54  ;;  %v5178_v54 = vunpack.i.l.bf16 %v4433_v43  ;;  %s2021_s14 = sshll.u32 %s4881_s20, 4  ;;  %s2022_s14 = int_to_ptr.vmem [resolvable:$true] %s2021_s14 }
 0x236   : > { %5176 = vst [vmem:[#allocation39_spill] sm:$0xff] %v4444_v36  ;;  %v4446_v4 = vpop.permute.xlu0 %1179  ;;  %v2882_v24 = vunpack.i.h.bf16 %v4444_v36  ;;  %v5107_v6 = vunpack.i.l.bf16 %v4444_v36  ;;  %s3223_s26 = scalar_lea.vmem %s2022_s14, 512  ;;  %p3230_p1 = scmp.lt.s32.totalorder %s2022_s14, %s3228_s13 }
 0x237   : > { %5177 = vst [vmem:[#allocation40_spill] sm:$0xff] %v4446_v4  ;;  %1346 = vrot.lane.b32.xlu1 %v3732_v63, %s3395_s12  ;;  %2311 = vmatprep.subr.bf16.mxu0 %v2310_v60  ;;  %v1194_v38 = vsel %vm5118_vm13, %v5178_v54, %v2876_v27  ;;  %v1192_v27 = vsel %vm5118_vm13, %v2877_v14, %v2887_v62  ;;  %p3224_p7 = scmp.ne.s32.totalorder %s2022_s14, %s3223_s26  ;;  %p3231_p3 = scmp.lt.s32.totalorder %s3229_s16, %s3223_s26 }
 0x238   : > { %1590 = vperm.xlu0 %2612, %v1587_v61   ;;  %v1161_v55 = vsel %vm5117_vm15, %v5107_v6, %v2871_v31  ;;  %v1159_v18 = vsel %vm5117_vm15, %v2872_v16, %v2882_v24  ;;  %v1191_v61 = vsel %vm5118_vm13, %v2887_v62, %v4446_v4  ;;  %vm1286_vm13 = vcmp.lt.s32.totalorder %v3834_v19, 19 }
 0x239   : > { %v4461_v47 = vpop.permute.xlu1 %1146  ;;  %v2312_v23 = vpack.c.bf16 %v1194_v38, %v1161_v55  ;;  %v2364_v16 = vpack.c.bf16 %v1192_v27, %v1159_v18  ;;  %p3225_p12 = pnand %p3224_p7, %p5309_p10  ;;  %p3232_p2 = por %p3231_p3, %p3230_p1 }
 0x23a   : > { %5179 = vst [vmem:[#allocation41_spill] sm:$0xff] %v4461_v47  ;;  %v2895_v60 = vpop.permute.xlu0 %2894  ;;  %v1158_v31 = vsel %vm5117_vm15, %v2882_v24, %v4461_v47  ;;  %vm1319_vm15 = vcmp.lt.s32.totalorder %v3834_v19, 18 }
 0x23b   : > { %v2362_v6 = vpack.c.bf16 %v1191_v61, %v1158_v31  ;;  %1350 = vrot.lane.b32.xlu1 %v3736_v1, %s3395_s12  ;;  %2313 = vmatpush1.bf16.msra.mxu0 %v2312_v23  ;;  %v2897_v55 = vunpack.i.h.bf16 %v2895_v60  ;;  %v2896_v54 = vunpack.i.l.bf16 %v2895_v60  ;;  %s2269_s12 = sshll.u32 %s3465_s11, 9  ;;  %p3226_p13 = pneg %p3225_p12 }
 0x23c   : > { %s4904_s10 = scalar_lea.hbm %s5019_s6, %s2269_s12 }
 0x23d   : > { %v2890_v38 = vpop.permute.xlu1 %2889  ;;  %2363 = vmatprep.subr.bf16.mxu1 %v2362_v6  ;;  %v1259_v14 = vsel %vm1253_vm14, %v2896_v54, %v2897_v55  ;;  %p3233_p0 = pnand %p3232_p2, %p3226_p13 }
 0x23e   : > { %v4477_v36 = vpop.permute.xlu0 %2904  ;;  %v2892_v24 = vunpack.i.h.bf16 %v2890_v38  ;;  %v2891_v61 = vunpack.i.l.bf16 %v2890_v38  ;;  %2365 = vmatpush1.bf16.msra.mxu1 %v2364_v16 }
 0x23f   : > { %5180 = vst [vmem:[#allocation42_spill] sm:$0xff] %v4477_v36  ;;  %v5115_v31 = vunpack.i.l.bf16 %v4477_v36  ;;  %v2907_v38 = vunpack.i.h.bf16 %v4477_v36 }
 0x240   : > { %v1226_v23 = vsel %vm5125_vm12, %v2891_v61, %v2892_v24 }
 0x241   : > { %v4484_v18 = vpop.permute.xlu1 %2899  ;;  %v2314_v6 = vpack.c.bf16 %v1259_v14, %v1226_v23  ;;  %v1260_v43 = vsel %vm1253_vm14, %v5115_v31, %v2896_v54  ;;  %v1258_v54 = vsel %vm1253_vm14, %v2897_v55, %v2907_v38 }
 0x242   : > { %5181 = vst [vmem:[#allocation43_spill] sm:$0xff] %v4484_v18  ;;  %v4486_v62 = vpop.permute.xlu0 %1245  ;;  %v2902_v60 = vunpack.i.h.bf16 %v4484_v18  ;;  %v5114_v27 = vunpack.i.l.bf16 %v4484_v18 }
 0x243   : > { %5182 = vst [vmem:[#allocation44_spill] sm:$0xff] %v4486_v62  ;;  %2315 = vmatprep.subr.bf16.mxu0 %v2314_v6  ;;  %v1257_v6 = vsel %vm1253_vm14, %v2907_v38, %v4486_v62 }
 0x244   : > { %v1227_v16 = vsel %vm5125_vm12, %v5114_v27, %v2891_v61  ;;  %v1225_v47 = vsel %vm5125_vm12, %v2892_v24, %v2902_v60 }
 0x245   : > { %v4499_v23 = vpop.permute.xlu1 %1212  ;;  %v2316_v14 = vpack.c.bf16 %v1260_v43, %v1227_v16  ;;  %v2368_v43 = vpack.c.bf16 %v1258_v54, %v1225_v47 }
 0x246   : > { %5183 = vst [vmem:[#allocation45_spill] sm:$0xff] %v4499_v23  ;;  %v2915_v4 = vpop.permute.xlu0 %2914  ;;  %v1224_v61 = vsel %vm5125_vm12, %v2902_v60, %v4499_v23  ;;  %vm1352_vm12 = vcmp.lt.s32.totalorder %v3834_v19, 17 }
 0x247   : > { %v2366_v27 = vpack.c.bf16 %v1257_v6, %v1224_v61  ;;  %2317 = vmatpush1.bf16.msra.mxu0 %v2316_v14  ;;  %v2917_v31 = vunpack.i.h.bf16 %v2915_v4  ;;  %v2916_v18 = vunpack.i.l.bf16 %v2915_v4 }
 0x249   : > { %v2910_v16 = vpop.permute.xlu1 %2909  ;;  %2367 = vmatprep.subr.bf16.mxu1 %v2366_v27  ;;  %v1325_v4 = vsel %vm1319_vm15, %v2916_v18, %v2917_v31 }
 0x24a   : > { %v4513_v24 = vpop.permute.xlu0 %2924  ;;  %v2912_v36 = vunpack.i.h.bf16 %v2910_v16  ;;  %v2911_v62 = vunpack.i.l.bf16 %v2910_v16  ;;  %2369 = vmatpush1.bf16.msra.mxu1 %v2368_v43 }
 0x24b   : > { %5184 = vst [vmem:[#allocation46_spill] sm:$0xff] %v4513_v24  ;;  %v5123_v60 = vunpack.i.l.bf16 %v4513_v24  ;;  %v2927_v61 = vunpack.i.h.bf16 %v4513_v24 }
 0x24c   : > { %v1292_v14 = vsel %vm1286_vm13, %v2911_v62, %v2912_v36 }
 0x24d   : > { %v4520_v47 = vpop.permute.xlu1 %2919  ;;  %v2318_v55 = vpack.c.bf16 %v1325_v4, %v1292_v14  ;;  %v1326_v43 = vsel %vm1319_vm15, %v5123_v60, %v2916_v18  ;;  %v1324_v18 = vsel %vm1319_vm15, %v2917_v31, %v2927_v61 }
 0x24e   : > { %5185 = vst [vmem:[#allocation47_spill] sm:$0xff] %v4520_v47  ;;  %v4522_v27 = vpop.permute.xlu0 %1311  ;;  %v2922_v38 = vunpack.i.h.bf16 %v4520_v47  ;;  %v5122_v6 = vunpack.i.l.bf16 %v4520_v47 }
 0x24f   : > { %5186 = vst [vmem:[#allocation48_spill] sm:$0xff] %v4522_v27  ;;  %2319 = vmatprep.subr.bf16.mxu0 %v2318_v55  ;;  %v1323_v55 = vsel %vm1319_vm15, %v2927_v61, %v4522_v27 }
 0x250   : > { %v1293_v54 = vsel %vm1286_vm13, %v5122_v6, %v2911_v62  ;;  %v1291_v4 = vsel %vm1286_vm13, %v2912_v36, %v2922_v38 }
 0x251   : > { %v4535_v16 = vpop.permute.xlu1 %1278  ;;  %v2320_v14 = vpack.c.bf16 %v1326_v43, %v1293_v54  ;;  %v2372_v60 = vpack.c.bf16 %v1324_v18, %v1291_v4 }
 0x252   : > { %5187 = vst [vmem:[#allocation49_spill] sm:$0xff] %v4535_v16  ;;  %v2935_v23 = vpop.permute.xlu0 %2934  ;;  %v1290_v62 = vsel %vm1286_vm13, %v2922_v38, %v4535_v16  ;;  %v5188_v38 = vunpack.i.h.bf16 %v3844_v25 }
 0x253   : > { %v2370_v6 = vpack.c.bf16 %v1323_v55, %v1290_v62  ;;  %2321 = vmatpush1.bf16.msra.mxu0 %v2320_v14  ;;  %v2936_v43 = vunpack.i.l.bf16 %v2935_v23 }
 0x255   : > { %v2930_v47 = vpop.permute.xlu1 %2929  ;;  %2371 = vmatprep.subr.bf16.mxu1 %v2370_v6  ;;  %v4556_v6 = vld [vmem:[#allocation6] sm:$0xff] }
 0x256   : > { %v1341_v54 = vpop.permute.xlu0 %1340  ;;  %2373 = vmatpush1.bf16.msra.mxu1 %v2372_v60  ;;  %v2931_v36 = vunpack.i.l.bf16 %v2930_v47  ;;  %v5189_v60 = vunpack.i.h.bf16 %v3876_v40  ;;  %v2932_v25 = vunpack.i.h.bf16 %v2930_v47  ;;  %v2937_v40 = vunpack.i.h.bf16 %v2935_v23 }
 0x258   : > { %v522_v31 = vsel %vm519_vm0, %v5188_v38, %v2931_v36  ;;  %v555_v14 = vsel %vm552_vm1, %v5189_v60, %v2936_v43  ;;  %v5190_v38 = vpack.c.bf16 %v3901_v50, %v3886_v45  ;;  %v5193_v45 = vunpack.i.l.bf16 %v3836_v21 }
 0x259   : > { %v1339_v24 = vpop.permute.xlu1 %1338  ;;  %v521_v23 = vsel %vm519_vm0, %v2931_v36, %v2932_v25  ;;  %v5195_v21 = vunpack.i.l.bf16 %v3923_v20  ;;  %v554_v36 = vsel %vm552_vm1, %v2936_v43, %v2937_v40  ;;  %v5196_v20 = vpack.c.bf16 %v3969_v51, %v3954_v41 }
 0x25a   : > { %v2940_v27 = vpop.permute.xlu0 %2939  ;;  %v1358_v11 = vsel %vm1352_vm12, %v1339_v24, %v1341_v54  ;;  %v520_v50 = vsel %vm519_vm0, %v2932_v25, %v5193_v45  ;;  %v5198_v51 = vunpack.i.h.bf16 %v3980_v58  ;;  %vm5216_vm0 = vcmp.lt.s32.totalorder %v3834_v19, 9 }
 0x25b   : > { %1649 = vmatprep.subr.mxu0 %v1358_v11  ;;  %v2374_v11 = vpack.c.bf16 %v555_v14, %v522_v31  ;;  %v2941_v62 = vunpack.i.l.bf16 %v2940_v27  ;;  %v5191_v31 = vunpack.i.h.bf16 %v3912_v56  ;;  %v5192_v14 = vunpack.i.h.bf16 %v3944_v35 }
 0x25c   : > { %v5194_v35 = vunpack.i.l.bf16 %v3855_v30 }
 0x25d   : > { %v4554_v61 = vpop.permute.xlu1 %1336  ;;  %v588_v47 = vsel %vm585_vm2, %v5191_v31, %v2941_v62 }
 0x25e   : > { %v1343_v4 = vpop.permute.xlu0 %1342  ;;  %v1359_v55 = vsel %vm1352_vm12, %v4554_v61, %v1339_v24  ;;  %v2942_v24 = vunpack.i.h.bf16 %v2940_v27 }
 0x25f   : > { %1650 = vmatpush1.msra.mxu0 %v1359_v55 }
 0x260   : > { %1662 = vmatmul.mubr.f32.vlgmr.msra.gmra.mrb[0].mxu0 %v4556_v6  ;;  %2375 = vmatprep.subr.bf16.mxu0 %v2374_v11 }
 0x261   : > { %v2945_v18 = vpop.permute.xlu1 %2944  ;;  %2377 = vmatpush1.bf16.msra.mxu0 %v5190_v38  ;;  %2249 = vmatprep.mubr.msk.f32.mxu0 %vm1593_vm6, %v4005_v44  ;;  %v553_v38 = vsel %vm552_vm1, %v2937_v40, %v5194_v35  ;;  %v5197_v35 = vunpack.i.l.bf16 %v3878_v42  ;;  %vm5218_vm1 = vmmov %vm5216_vm0 }
 0x262   : > { %v2950_v60 = vpop.permute.xlu0 %2949  ;;  %v2947_v16 = vunpack.i.h.bf16 %v2945_v18  ;;  %v2946_v34 = vunpack.i.l.bf16 %v2945_v18 }
 0x263   : > { %v2951_v25 = vunpack.i.l.bf16 %v2950_v60  ;;  %v2952_v30 = vunpack.i.h.bf16 %v2950_v60  ;;  %v586_v43 = vsel %vm585_vm2, %v2942_v24, %v5197_v35  ;;  %v5203_v35 = vpack.c.bf16 %v4047_v17, %v4032_v7 }
 0x264   : > { %v621_v55 = vsel %vm618_vm3, %v5192_v14, %v2946_v34  ;;  %v619_v31 = vsel %vm618_vm3, %v2947_v16, %v5195_v21  ;;  %v2426_v14 = vpack.c.bf16 %v553_v38, %v520_v50  ;;  %v620_v45 = vsel %vm618_vm3, %v2946_v34, %v2947_v16  ;;  %vm5222_vm3 = vmmov %vm5216_vm0 }
 0x265   : > { %v4585_v11 = vpop.permute.xlu1 %1344  ;;  %v2378_v27 = vpack.c.bf16 %v621_v55, %v588_v47  ;;  %v1357_v47 = vsel %vm1352_vm12, %v1341_v54, %v1343_v4  ;;  %v2428_v55 = vpack.c.bf16 %v554_v36, %v521_v23  ;;  %v2430_v54 = vpack.c.bf16 %v619_v31, %v586_v43 }
 0x266   : > { %v2960_v56 = vpop.permute.xlu0 %2959  ;;  %v1356_v18 = vsel %vm1352_vm12, %v1343_v4, %v4585_v11  ;;  %v587_v4 = vsel %vm585_vm2, %v2941_v62, %v2942_v24  ;;  %v654_v50 = vsel %vm651_vm4, %v5198_v51, %v2951_v25  ;;  %v5200_v24 = vunpack.i.l.bf16 %v3946_v37 }
 0x267   : > { %1720 = vmatprep.subr.mxu1 %v1356_v18  ;;  %2379 = vmatprep.subr.bf16.mxu0 %v2378_v27  ;;  %v2432_v42 = vpack.c.bf16 %v620_v45, %v587_v4  ;;  %v2961_v41 = vunpack.i.l.bf16 %v2960_v56  ;;  %v2962_v23 = vunpack.i.h.bf16 %v2960_v56  ;;  %v5199_v27 = vunpack.i.h.bf16 %v4020_v53 }
 0x268   : > { %1721 = vmatpush1.msra.mxu1 %v1357_v47  ;;  %2381 = vmatpush1.bf16.msra.mxu0 %v5196_v20  ;;  %v652_v18 = vsel %vm651_vm4, %v2952_v30, %v5200_v24  ;;  %v653_v37 = vsel %vm651_vm4, %v2951_v25, %v2952_v30  ;;  %v5204_v43 = vunpack.i.h.bf16 %v4090_v10  ;;  %v5205_v30 = vunpack.i.l.bf16 %v4024_v8 }
 0x269   : > { %v2955_v40 = vpop.permute.xlu1 %2954  ;;  %1733 = vmatmul.mubr.f32.vlgmr.msra.gmra.mrb[0].mxu1 %v4556_v6  ;;  %2427 = vmatprep.subr.bf16.mxu1 %v2426_v14  ;;  %v719_v10 = vsel %vm717_vm7, %v2961_v41, %v2962_v23  ;;  %v5207_v51 = vunpack.i.h.bf16 %v4126_v22  ;;  %v5209_v24 = vpack.c.bf16 %v4115_v39, %v4100_v13  ;;  %v5211_v22 = vunpack.i.l.bf16 %v4145_v12 }
 0x26a   : > { %v4614_v60 = vpop.permute.xlu0 %2969  ;;  %v2957_v34 = vunpack.i.h.bf16 %v2955_v40  ;;  %v2956_v16 = vunpack.i.l.bf16 %v2955_v40  ;;  %2429 = vmatpush1.bf16.msra.mxu1 %v2428_v55  ;;  %2250 = vmatprep.mubr.msk.f32.mxu1 %vm1593_vm6, %v4005_v44  ;;  %v5201_v44 = vunpack.i.l.bf16 %v3991_v26  ;;  %v5202_v55 = vunpack.i.h.bf16 %v4058_v15 }
 0x26b   : > { %2431 = vmatprep.subr.bf16.mxu1 %v2430_v54  ;;  %v2972_v14 = vunpack.i.h.bf16 %v4614_v60  ;;  %v2971_v26 = vunpack.i.l.bf16 %v4614_v60  ;;  %v718_v40 = vsel %vm717_vm7, %v2962_v23, %v5205_v30  ;;  %v5206_v15 = vunpack.i.l.bf16 %v4069_v48 }
 0x26c   : > { %v687_v62 = vsel %vm684_vm5, %v5199_v27, %v2956_v16  ;;  %v685_v38 = vsel %vm684_vm5, %v2957_v34, %v5201_v44  ;;  %v686_v58 = vsel %vm684_vm5, %v2956_v16, %v2957_v34  ;;  %v720_v45 = vsel %vm717_vm7, %v5202_v55, %v2961_v41 }
 0x26d   : > { %v2965_v21 = vpop.permute.xlu1 %2964  ;;  %v2382_v56 = vpack.c.bf16 %v687_v62, %v654_v50  ;;  %v2434_v31 = vpack.c.bf16 %v685_v38, %v652_v18  ;;  %v2436_v20 = vpack.c.bf16 %v686_v58, %v653_v37  ;;  %v786_v50 = vsel %vm783_vm9, %v5207_v51, %v2971_v26 }
 0x26e   : > { %v4636_v53 = vpop.permute.xlu0 %2979  ;;  %v2967_v36 = vunpack.i.h.bf16 %v2965_v21  ;;  %v2966_v47 = vunpack.i.l.bf16 %v2965_v21  ;;  %2433 = vmatpush1.bf16.msra.mxu1 %v2432_v42  ;;  %v5208_v27 = vunpack.i.l.bf16 %v4092_v29  ;;  %v5210_v18 = vunpack.i.h.bf16 %v4164_v59 }
 0x26f   : > { %2383 = vmatprep.subr.bf16.mxu0 %v2382_v56  ;;  %2435 = vmatprep.subr.bf16.mxu1 %v2434_v31  ;;  %v2982_v42 = vunpack.i.h.bf16 %v4636_v53  ;;  %v2981_v48 = vunpack.i.l.bf16 %v4636_v53  ;;  %v785_v59 = vsel %vm783_vm9, %v2971_v26, %v2972_v14  ;;  %v5212_v12 = vunpack.i.h.bf16 %v4194_v33 }
 0x270   : > { %2385 = vmatpush1.bf16.msra.mxu0 %v5203_v35  ;;  %v753_v25 = vsel %vm750_vm8, %v5204_v43, %v2966_v47  ;;  %v751_v54 = vsel %vm750_vm8, %v2967_v36, %v5206_v15  ;;  %v752_v4 = vsel %vm750_vm8, %v2966_v47, %v2967_v36  ;;  %v784_v41 = vsel %vm783_vm9, %v2972_v14, %v5208_v27  ;;  %v5219_v35 = vld [vmem:[#allocation26_spill] sm:$0xff] }
 0x271   : > { %v2975_v17 = vpop.permute.xlu1 %2974  ;;  %v2386_v7 = vpack.c.bf16 %v753_v25, %v720_v45  ;;  %v2438_v60 = vpack.c.bf16 %v751_v54, %v718_v40  ;;  %v2440_v23 = vpack.c.bf16 %v752_v4, %v719_v10  ;;  %v852_v36 = vsel %vm849_vm11, %v5212_v12, %v2981_v48  ;;  %v5243_v12 = vld [vmem:[#allocation33_spill] sm:$0xff] }
 0x272   : > { %v2990_v34 = vpop.permute.xlu0 %2989  ;;  %v2977_v16 = vunpack.i.h.bf16 %v2975_v17  ;;  %v2976_v8 = vunpack.i.l.bf16 %v2975_v17  ;;  %2437 = vmatpush1.bf16.msra.mxu1 %v2436_v20  ;;  %v5213_v47 = vunpack.i.l.bf16 %v4166_v2  ;;  %v5214_v45 = vpack.c.bf16 %v4183_v9, %v4143_v52 }
 0x273   : > { %2387 = vmatprep.subr.bf16.mxu0 %v2386_v7  ;;  %2439 = vmatprep.subr.bf16.mxu1 %v2438_v60  ;;  %v2991_v62 = vunpack.i.l.bf16 %v2990_v34  ;;  %v2992_v31 = vunpack.i.h.bf16 %v2990_v34  ;;  %v5215_v20 = vunpack.i.h.bf16 %v4231_v57  ;;  %v5217_v33 = vunpack.i.l.bf16 %v4213_v49 }
 0x274   : > { %2389 = vmatpush1.bf16.msra.mxu0 %v5209_v24  ;;  %v819_v44 = vsel %vm816_vm10, %v5210_v18, %v2976_v8  ;;  %v817_v38 = vsel %vm816_vm10, %v2977_v16, %v5211_v22  ;;  %v818_v29 = vsel %vm816_vm10, %v2976_v8, %v2977_v16  ;;  %v850_v37 = vsel %vm849_vm11, %v2982_v42, %v5213_v47  ;;  %v5238_v22 = vld [vmem:[#allocation28_spill] sm:$0xff] }
 0x275   : > { %v2985_v58 = vpop.permute.xlu1 %2984  ;;  %v2390_v21 = vpack.c.bf16 %v819_v44, %v786_v50  ;;  %v2442_v56 = vpack.c.bf16 %v817_v38, %v784_v41  ;;  %v2444_v55 = vpack.c.bf16 %v818_v29, %v785_v59  ;;  %v5220_v2 = vunpack.i.h.bf16 %v5219_v35  ;;  %v5232_v41 = vld [vmem:[#allocation29_spill] sm:$0xff] }
 0x276   : > { %v3000_v53 = vpop.permute.xlu0 %2999  ;;  %v2987_v39 = vunpack.i.h.bf16 %v2985_v58  ;;  %v2986_v13 = vunpack.i.l.bf16 %v2985_v58  ;;  %2441 = vmatpush1.bf16.msra.mxu1 %v2440_v23  ;;  %vm5221_vm2 = vcmp.lt.s32.totalorder %v3834_v19, 1  ;;  %v5223_v49 = vunpack.i.l.bf16 %v4266_v28 }
 0x277   : > { %2391 = vmatprep.subr.bf16.mxu0 %v2390_v21  ;;  %2443 = vmatprep.subr.bf16.mxu1 %v2442_v56  ;;  %v918_v43 = vsel %vm5221_vm2, %v5220_v2, %v2991_v62  ;;  %v3002_v25 = vunpack.i.h.bf16 %v3000_v53  ;;  %v3001_v40 = vunpack.i.l.bf16 %v3000_v53  ;;  %vm5224_vm4 = vmmov %vm5221_vm2  ;;  %v851_v7 = vsel %vm849_vm11, %v2981_v48, %v2982_v42  ;;  %v5228_v42 = vld [vmem:[#allocation25_spill] sm:$0xff] }
 0x278   : > { %2393 = vmatpush1.bf16.msra.mxu0 %v5214_v45  ;;  %v885_v14 = vsel %vm5216_vm0, %v5215_v20, %v2986_v13  ;;  %v883_v26 = vsel %vm5218_vm1, %v2987_v39, %v5217_v33  ;;  %v884_v52 = vsel %vm5222_vm3, %v2986_v13, %v2987_v39  ;;  %v916_v17 = vsel %vm5224_vm4, %v2992_v31, %v5223_v49  ;;  %vm5225_vm5 = vmmov %vm5221_vm2  ;;  %v5241_v13 = vld [vmem:[#allocation32_spill] sm:$0xff]  ;;  %v5248_v33 = vld [vmem:[#allocation30_spill] sm:$0xff] }
 0x279   : > { %v2995_v9 = vpop.permute.xlu1 %2994  ;;  %v2394_v30 = vpack.c.bf16 %v885_v14, %v852_v36  ;;  %v2446_v57 = vpack.c.bf16 %v883_v26, %v850_v37  ;;  %v2398_v60 = vpack.c.bf16 %v3732_v63, %v918_v43  ;;  %v917_v10 = vsel %vm5225_vm5, %v2991_v62, %v2992_v31  ;;  %v5234_v62 = vld [vmem:[#allocation27_spill] sm:$0xff] }
 0x27a   : > { %v988_v15 = vpop.permute.xlu0 %987  ;;  %v2997_v54 = vunpack.i.h.bf16 %v2995_v9  ;;  %v2996_v4 = vunpack.i.l.bf16 %v2995_v9  ;;  %2445 = vmatpush1.bf16.msra.mxu1 %v2444_v55  ;;  %v2448_v34 = vpack.c.bf16 %v884_v52, %v851_v7  ;;  %v5226_v16 = vpack.c.bf16 %v4250_v32, %v4211_v46  ;;  %v5255_v7 = vld [vmem:[#allocation36_spill] sm:$0xff] }
 0x27b   : > { %2395 = vmatprep.subr.bf16.mxu0 %v2394_v30  ;;  %2447 = vmatprep.subr.bf16.mxu1 %v2446_v57  ;;  %vm5227_vm6 = vcmp.lt.s32.totalorder %v3834_v19, 127  ;;  %v2450_v51 = vpack.c.bf16 %v3736_v1, %v916_v17  ;;  %v2400_v48 = vpack.c.bf16 %v5228_v42, %v4262_v3  ;;  %v5229_v63 = vunpack.i.l.bf16 %v4300_v5 }
 0x27c   : > { %2397 = vmatpush1.bf16.msra.mxu0 %v5226_v16  ;;  %v958_v28 = vsel %vm5227_vm6, %v2996_v4, %v2997_v54  ;;  %vm5230_vm7 = vmmov %vm5227_vm6  ;;  %vm5231_vm8 = vcmp.lt.s32.totalorder %v3834_v19, 119  ;;  %v2452_v32 = vpack.c.bf16 %v3734_v0, %v917_v10  ;;  %v5235_v3 = vunpack.i.l.bf16 %v5234_v62  ;;  %v5257_v10 = vld [vmem:[#allocation37_spill] sm:$0xff] }
 0x27d   : > { %v955_v8 = vpop.permute.xlu1 %954  ;;  %2399 = vmatprep.subr.bf16.mxu0 %v2398_v60  ;;  %v991_v46 = vsel %vm5231_vm8, %v3001_v40, %v3002_v25  ;;  %vm5233_vm9 = vmmov %vm5227_vm6  ;;  %vm5242_vm2 = vcmp.lt.s32.totalorder %v3834_v19, 117  ;;  %vm5244_vm3 = vcmp.lt.s32.totalorder %v3834_v19, 118  ;;  %v5249_v26 = vunpack.i.l.bf16 %v5248_v33 }
 0x27e   : > { %v3010_v50 = vpop.permute.xlu0 %3009  ;;  %v964_v27 = vsel %vm5230_vm7, %v955_v8, %v5229_v63  ;;  %2449 = vmatpush1.bf16.msra.mxu1 %v2448_v34  ;;  %v959_v23 = vsel %vm5233_vm9, %v5232_v41, %v2996_v4  ;;  %v2402_v1 = vpack.c.bf16 %v991_v46, %v958_v28  ;;  %vm5236_vm10 = vmmov %vm5231_vm8  ;;  %v5266_v41 = vld [vmem:[#allocation35_spill] sm:$0xff] }
 0x27f   : > { %2451 = vmatprep.subr.bf16.mxu1 %v2450_v51  ;;  %v997_v5 = vsel %vm5236_vm10, %v988_v15, %v5235_v3  ;;  %v3012_v24 = vunpack.i.h.bf16 %v3010_v50  ;;  %v3011_v18 = vunpack.i.l.bf16 %v3010_v50  ;;  %vm5237_vm11 = vmmov %vm5227_vm6  ;;  %vm5256_vm10 = vcmp.lt.s32.totalorder %v3834_v19, 38  ;;  %v5262_v50 = vld [vmem:[#allocation34_spill] sm:$0xff] }
 0x280   : > { %v957_v44 = vsel %vm5237_vm11, %v2997_v54, %v955_v8  ;;  %2401 = vmatpush1.bf16.msra.mxu0 %v2400_v48  ;;  %vm5239_vm0 = vmmov %vm5231_vm8  ;;  %v2454_v38 = vpack.c.bf16 %v997_v5, %v964_v27  ;;  %vm5258_vm11 = vcmp.lt.s32.totalorder %v3834_v19, 39  ;;  %v5263_v63 = vunpack.i.l.bf16 %v5262_v50 }
 0x281   : > { %v992_v0 = vsel %vm5239_vm0, %v5238_v22, %v3001_v40  ;;  %v3005_v29 = vpop.permute.xlu1 %3004  ;;  %2403 = vmatprep.subr.bf16.mxu0 %v2402_v1  ;;  %vm5240_vm1 = vmmov %vm5239_vm0  ;;  %v1058_v59 = vsel %vm5242_vm2, %v5241_v13, %v3011_v18 }
 0x282   : > { %v990_v58 = vsel %vm5240_vm1, %v3002_v25, %v988_v15  ;;  %v2404_v21 = vpack.c.bf16 %v992_v0, %v959_v23  ;;  %v1054_v56 = vpop.permute.xlu0 %1053  ;;  %v3007_v31 = vunpack.i.h.bf16 %v3005_v29  ;;  %v3006_v53 = vunpack.i.l.bf16 %v3005_v29  ;;  %2453 = vmatpush1.bf16.msra.mxu1 %v2452_v32  ;;  %vm5245_vm4 = vmmov %vm5244_vm3  ;;  %v5252_v25 = vld [vmem:[#allocation31_spill] sm:$0xff] }
 0x283   : > { %v2456_v39 = vpack.c.bf16 %v990_v58, %v957_v44  ;;  %2455 = vmatprep.subr.bf16.mxu1 %v2454_v38  ;;  %vm5246_vm5 = vmmov %vm5242_vm2  ;;  %v5253_v52 = vunpack.i.l.bf16 %v5252_v25  ;;  %v5267_v23 = vunpack.i.l.bf16 %v5266_v41  ;;  %v5269_v38 = vld [vmem:[#allocation40_spill] sm:$0xff]  ;;  %v5271_v58 = vld [vmem:[#allocation41_spill] sm:$0xff] }
 0x284   : > { %v1025_v36 = vsel %vm5244_vm3, %v5243_v12, %v3006_v53  ;;  %2405 = vmatpush1.bf16.msra.mxu0 %v2404_v21  ;;  %v1024_v47 = vsel %vm5245_vm4, %v3006_v53, %v3007_v31  ;;  %v1057_v37 = vsel %vm5246_vm5, %v3011_v18, %v3012_v24  ;;  %vm5247_vm6 = vmmov %vm5242_vm2  ;;  %v5276_v12 = vld [vmem:[#allocation38_spill] sm:$0xff] }
 0x285   : > { %v2408_v55 = vpack.c.bf16 %v1058_v59, %v1025_v36  ;;  %v1021_v45 = vpop.permute.xlu1 %1020  ;;  %v2406_v20 = vpack.c.bf16 %v1057_v37, %v1024_v47  ;;  %v1056_v14 = vsel %vm5247_vm6, %v3012_v24, %v1054_v56  ;;  %vm5250_vm7 = vmmov %vm5242_vm2  ;;  %vm5270_vm6 = vcmp.lt.s32.totalorder %v3834_v19, 29 }
 0x286   : > { %v1063_v35 = vsel %vm5250_vm7, %v1054_v56, %v5249_v26  ;;  %v3020_v2 = vpop.permute.xlu0 %3019  ;;  %vm5251_vm8 = vmmov %vm5244_vm3  ;;  %2457 = vmatpush1.bf16.msra.mxu1 %v2456_v39  ;;  %vm5272_vm7 = vcmp.lt.s32.totalorder %v3834_v19, 37  ;;  %v5277_v36 = vunpack.i.l.bf16 %v5276_v12 }
 0x287   : > { %v1023_v43 = vsel %vm5251_vm8, %v3007_v31, %v1021_v45  ;;  %vm5254_vm9 = vmmov %vm5244_vm3  ;;  %2407 = vmatprep.subr.bf16.mxu0 %v2406_v20  ;;  %v3022_v40 = vunpack.i.h.bf16 %v3020_v2  ;;  %v3021_v15 = vunpack.i.l.bf16 %v3020_v2 }
 0x288   : > { %v1030_v9 = vsel %vm5254_vm9, %v1021_v45, %v5253_v52  ;;  %v2460_v57 = vpack.c.bf16 %v1056_v14, %v1023_v43  ;;  %2409 = vmatpush1.bf16.msra.mxu0 %v2408_v55  ;;  %vm5259_vm0 = vmmov %vm5258_vm11  ;;  %v5280_v45 = vld [vmem:[#allocation39_spill] sm:$0xff] }
 0x289   : > { %v2458_v30 = vpack.c.bf16 %v1063_v35, %v1030_v9  ;;  %v3015_v54 = vpop.permute.xlu1 %3014  ;;  %v1124_v60 = vsel %vm5256_vm10, %v5255_v7, %v3021_v15  ;;  %vm5260_vm1 = vmmov %vm5256_vm10  ;;  %v5281_v20 = vunpack.i.l.bf16 %v5280_v45 }
 0x28a   : > { %v1120_v4 = vpop.permute.xlu0 %1119  ;;  %v3017_v49 = vunpack.i.h.bf16 %v3015_v54  ;;  %v3016_v17 = vunpack.i.l.bf16 %v3015_v54  ;;  %v1123_v28 = vsel %vm5260_vm1, %v3021_v15, %v3022_v40  ;;  %vm5261_vm2 = vmmov %vm5260_vm1 }
 0x28b   : > { %2459 = vmatprep.subr.bf16.mxu1 %v2458_v30  ;;  %v1122_v48 = vsel %vm5261_vm2, %v3022_v40, %v1120_v4  ;;  %vm5264_vm3 = vmmov %vm5260_vm1  ;;  %v5283_v30 = vld [vmem:[#allocation44_spill] sm:$0xff]  ;;  %v5284_v40 = vld [vmem:[#allocation45_spill] sm:$0xff]  ;;  %vm5285_vm2 = vcmp.lt.s32.totalorder %v3834_v19, 28 }
 0x28c   : > { %2461 = vmatpush1.bf16.msra.mxu1 %v2460_v57  ;;  %v1091_v34 = vsel %vm5258_vm11, %v5257_v10, %v3016_v17  ;;  %v1090_v16 = vsel %vm5259_vm0, %v3016_v17, %v3017_v49  ;;  %v1129_v27 = vsel %vm5264_vm3, %v1120_v4, %v5263_v63  ;;  %vm5265_vm4 = vmmov %vm5259_vm0  ;;  %v5287_v10 = vld [vmem:[#allocation42_spill] sm:$0xff] }
 0x28d   : > { %v2412_v8 = vpack.c.bf16 %v1124_v60, %v1091_v34  ;;  %v1087_v51 = vpop.permute.xlu1 %1086  ;;  %v2410_v42 = vpack.c.bf16 %v1123_v28, %v1090_v16  ;;  %vm5268_vm5 = vmmov %vm5259_vm0  ;;  %v5288_v34 = vunpack.i.l.bf16 %v5287_v10 }
 0x28e   : > { %v3030_v46 = vpop.permute.xlu0 %3029  ;;  %v1089_v32 = vsel %vm5265_vm4, %v3017_v49, %v1087_v51  ;;  %v1096_v1 = vsel %vm5268_vm5, %v1087_v51, %v5267_v23  ;;  %vm5273_vm8 = vmmov %vm5272_vm7  ;;  %v5290_v51 = vld [vmem:[#allocation43_spill] sm:$0xff] }
 0x28f   : > { %v2462_v62 = vpack.c.bf16 %v1129_v27, %v1096_v1  ;;  %v2464_v3 = vpack.c.bf16 %v1122_v48, %v1089_v32  ;;  %2411 = vmatprep.subr.bf16.mxu0 %v2410_v42  ;;  %v3032_v5 = vunpack.i.h.bf16 %v3030_v46  ;;  %v3031_v24 = vunpack.i.l.bf16 %v3030_v46  ;;  %vm5274_vm9 = vmmov %vm5270_vm6 }
 0x290   : > { %2413 = vmatpush1.bf16.msra.mxu0 %v2412_v8  ;;  %vm5275_vm10 = vmmov %vm5270_vm6  ;;  %v5291_v42 = vunpack.i.l.bf16 %v5290_v51 }
 0x291   : > { %v3025_v18 = vpop.permute.xlu1 %3024  ;;  %2463 = vmatprep.subr.bf16.mxu1 %v2462_v62  ;;  %v1190_v29 = vsel %vm5270_vm6, %v5269_v38, %v3031_v24  ;;  %v1189_v31 = vsel %vm5274_vm9, %v3031_v24, %v3032_v5  ;;  %vm5278_vm11 = vmmov %vm5270_vm6  ;;  %v5293_v62 = vld [vmem:[#allocation48_spill] sm:$0xff] }
 0x292   : > { %v1186_v44 = vpop.permute.xlu0 %1185  ;;  %v3027_v22 = vunpack.i.h.bf16 %v3025_v18  ;;  %v3026_v0 = vunpack.i.l.bf16 %v3025_v18  ;;  %2465 = vmatpush1.bf16.msra.mxu1 %v2464_v3  ;;  %vm5279_vm0 = vmmov %vm5272_vm7 }
 0x293   : > { %v1188_v59 = vsel %vm5275_vm10, %v3032_v5, %v1186_v44  ;;  %v1195_v47 = vsel %vm5278_vm11, %v1186_v44, %v5277_v36  ;;  %vm5282_vm1 = vmmov %vm5279_vm0  ;;  %v5294_v5 = vld [vmem:[#allocation49_spill] sm:$0xff] }
 0x294   : > { %v1157_v21 = vsel %vm5272_vm7, %v5271_v58, %v3026_v0  ;;  %v1156_v56 = vsel %vm5273_vm8, %v3026_v0, %v3027_v22  ;;  %vm5286_vm3 = vmmov %vm5285_vm2  ;;  %v5295_v58 = vld [vmem:[#allocation46_spill] sm:$0xff] }
 0x295   : > { %v2416_v53 = vpack.c.bf16 %v1190_v29, %v1157_v21  ;;  %v1153_v39 = vpop.permute.xlu1 %1152  ;;  %v2414_v13 = vpack.c.bf16 %v1189_v31, %v1156_v56  ;;  %vm5289_vm4 = vmmov %vm5285_vm2  ;;  %v5296_v21 = vunpack.i.l.bf16 %v5295_v58 }
 0x296   : > { %v3040_v37 = vpop.permute.xlu0 %3039  ;;  %v1155_v55 = vsel %vm5279_vm0, %v3027_v22, %v1153_v39  ;;  %v1162_v14 = vsel %vm5282_vm1, %v1153_v39, %v5281_v20  ;;  %vm5292_vm5 = vmmov %vm5285_vm2 }
 0x297   : > { %v2466_v33 = vpack.c.bf16 %v1195_v47, %v1162_v14  ;;  %v2468_v26 = vpack.c.bf16 %v1188_v59, %v1155_v55  ;;  %2415 = vmatprep.subr.bf16.mxu0 %v2414_v13  ;;  %v3042_v35 = vunpack.i.h.bf16 %v3040_v37  ;;  %v3041_v2 = vunpack.i.l.bf16 %v3040_v37 }
 0x298   : > { %2417 = vmatpush1.bf16.msra.mxu0 %v2416_v53  ;;  %v5297_v53 = vld [vmem:[#allocation47_spill] sm:$0xff] }
 0x299   : > { %v3035_v43 = vpop.permute.xlu1 %3034  ;;  %2467 = vmatprep.subr.bf16.mxu1 %v2466_v33  ;;  %v1256_v57 = vsel %vm1253_vm14, %v5283_v30, %v3041_v2  ;;  %v1255_v4 = vsel %vm1253_vm14, %v3041_v2, %v3042_v35  ;;  %v5298_v39 = vunpack.i.l.bf16 %v5297_v53  ;;  %v5299_v33 = vld [vmem:[#allocation24_spill] sm:$0xff] }
 0x29a   : > { %v1252_v25 = vpop.permute.xlu0 %1251  ;;  %v3037_v52 = vunpack.i.h.bf16 %v3035_v43  ;;  %v3036_v9 = vunpack.i.l.bf16 %v3035_v43  ;;  %2469 = vmatpush1.bf16.msra.mxu1 %v2468_v26  ;;  %v5300_v26 = vsub.s32 0, %v5299_v33  ;;  %v5308_v58 = vsub.s32 7, %v5299_v33 }
 0x29b   : > { %v1254_v60 = vsel %vm1253_vm14, %v3042_v35, %v1252_v25  ;;  %v1261_v16 = vsel %vm1253_vm14, %v1252_v25, %v5288_v34  ;;  %v5301_v25 = vsub.s32 1, %v5299_v33 }
 0x29c   : > { %v1223_v15 = vsel %vm5285_vm2, %v5284_v40, %v3036_v9  ;;  %v1222_v54 = vsel %vm5286_vm3, %v3036_v9, %v3037_v52 }
 0x29d   : > { %v2420_v49 = vpack.c.bf16 %v1256_v57, %v1223_v15  ;;  %v1219_v17 = vpop.permute.xlu1 %1218  ;;  %v2418_v7 = vpack.c.bf16 %v1255_v4, %v1222_v54 }
 0x29e   : > { %v3050_v28 = vpop.permute.xlu0 %3049  ;;  %v1221_v8 = vsel %vm5289_vm4, %v3037_v52, %v1219_v17  ;;  %v1228_v48 = vsel %vm5292_vm5, %v1219_v17, %v5291_v42 }
 0x29f   : > { %v2470_v50 = vpack.c.bf16 %v1261_v16, %v1228_v48  ;;  %v2472_v63 = vpack.c.bf16 %v1254_v60, %v1221_v8  ;;  %2419 = vmatprep.subr.bf16.mxu0 %v2418_v7  ;;  %v3052_v27 = vunpack.i.h.bf16 %v3050_v28  ;;  %v3051_v46 = vunpack.i.l.bf16 %v3050_v28 }
 0x2a0   : > { %2421 = vmatpush1.bf16.msra.mxu0 %v2420_v49  ;;  %v5303_v49 = vsub.s32 2, %v5299_v33  ;;  %v5304_v60 = vsub.s32 3, %v5299_v33 }
 0x2a1   : > { %v3045_v32 = vpop.permute.xlu1 %3044  ;;  %2471 = vmatprep.subr.bf16.mxu1 %v2470_v50  ;;  %v1322_v3 = vsel %vm1319_vm15, %v5293_v62, %v3051_v46  ;;  %v1321_v44 = vsel %vm1319_vm15, %v3051_v46, %v3052_v27  ;;  %v5306_v62 = vsub.s32 5, %v5299_v33 }
 0x2a2   : > { %v3047_v41 = vunpack.i.h.bf16 %v3045_v32  ;;  %v3046_v23 = vunpack.i.l.bf16 %v3045_v32  ;;  %2473 = vmatpush1.bf16.msra.mxu1 %v2472_v63  ;;  %v1318_v1 = vpop.permute.xlu0 %1317 }
 0x2a3   : > { %v1320_v29 = vsel %vm1319_vm15, %v3052_v27, %v1318_v1  ;;  %v1327_v56 = vsel %vm1319_vm15, %v1318_v1, %v5296_v21 }
 0x2a4   : > { %v1289_v24 = vsel %vm1286_vm13, %v5294_v5, %v3046_v23  ;;  %v1288_v18 = vsel %vm1286_vm13, %v3046_v23, %v3047_v41 }
 0x2a5   : > { %v2424_v22 = vpack.c.bf16 %v1322_v3, %v1289_v24  ;;  %v1285_v0 = vpop.permute.xlu1 %1284  ;;  %v2422_v38 = vpack.c.bf16 %v1321_v44, %v1288_v18 }
 0x2a6   : > { %v1287_v31 = vsel %vm1286_vm13, %v3047_v41, %v1285_v0  ;;  %v1294_v13 = vsel %vm1286_vm13, %v1285_v0, %v5298_v39  ;;  %v1349_v36 = vpop.permute.xlu0 %1348  ;;  %v5305_v41 = vsub.s32 4, %v5299_v33 }
 0x2a7   : > { %v2474_v59 = vpack.c.bf16 %v1327_v56, %v1294_v13  ;;  %v2476_v12 = vpack.c.bf16 %v1320_v29, %v1287_v31  ;;  %2423 = vmatprep.subr.bf16.mxu0 %v2422_v38 }
 0x2a8   : > { %2425 = vmatpush1.bf16.msra.mxu0 %v2424_v22  ;;  %v5307_v22 = vsub.s32 6, %v5299_v33 }
 0x2a9   : > { %v1347_v47 = vpop.permute.xlu1 %1346  ;;  %2475 = vmatprep.subr.bf16.mxu1 %v2474_v59 }
 0x2aa   : > { %v1355_v37 = vsel %vm1352_vm12, %v4585_v11, %v1347_v47  ;;  %2477 = vmatpush1.bf16.msra.mxu1 %v2476_v12  ;;  %v1354_v55 = vsel %vm1352_vm12, %v1347_v47, %v1349_v36  ;;  %v1881_v11 = vld [vmem:[#allocation9] sm:$0xff] }
 0x2ab   : > { %1791 = vmatprep.subr.mxu0 %v1354_v55  ;;  %v1886_v35 = vrot.slane %v1881_v11, %v5300_v26  ;;  %v1890_v52 = vrot.slane %v1881_v11, %v5301_v25  ;;  %v1894_v17 = vrot.slane %v1881_v11, %v5303_v49  ;;  %v1898_v10 = vrot.slane %v1881_v11, %v5304_v60 }
 0x2ac   : > { %1792 = vmatpush1.msra.mxu0 %v1355_v37  ;;  %v1902_v23 = vrot.slane %v1881_v11, %v5305_v41  ;;  %v1906_v3 = vrot.slane %v1881_v11, %v5306_v62  ;;  %v1910_v0 = vrot.slane %v1881_v11, %v5307_v22  ;;  %v1914_v21 = vrot.slane %v1881_v11, %v5308_v58 }
 0x2ad   : > { %v1351_v45 = vpop.permute.xlu1 %1350  ;;  %1804 = vmatmul.mubr.f32.vlgmr.msra.gmra.mrb[2].mxu0 %v4556_v6 }
 0x2ae   : > { %v1353_v20 = vsel %vm1352_vm12, %v1349_v36, %v1351_v45  ;;  %v1360_v14 = vsel %vm1352_vm12, %v1351_v45, %v4554_v61 }
 0x2af   : > { %1862 = vmatprep.subr.mxu1 %v1360_v14 }
 0x2b0   : > { %1863 = vmatpush1.msra.mxu1 %v1353_v20 }
 0x2b1   : > { %1875 = vmatmul.mubr.f32.vlgmr.msra.gmra.mrb[2].mxu1 %v4556_v6 }
 0x2b7   : > { %v1591_v2 = vpop.permute.xlu0 %1590 }
 0x333   : > { %v1663_v43 = vpop.f32.mrb[0].mxu0 }
 0x334   : > { %v1664_v9 = vadd.f32 %v1663_v43, %v1591_v2  ;;  %v1665_v30 = vpop.f32.mrb[1].mxu0 }
 0x335   : > { %v1666_v57 = vadd.f32 %v1665_v30, %v1591_v2 }
 0x336   : > { %v1923_v40 = vmul.f32 %v1886_v35, %v1664_v9 }
 0x337   : > { %v1924_v19 = vmul.f32 %v1890_v52, %v1666_v57 }
 0x338   : > { %v1942_v61 = vmul.f32 %v1923_v40, %v1923_v40 }
 0x339   : > { %v1931_v15 = vadd.f32 %v1924_v19, %v1923_v40  ;;  %v1943_v54 = vmul.f32 %v1924_v19, %v1924_v19  ;;  %v2265_v4 = vpack.c.bf16 %v1924_v19, %v1923_v40 }
 0x33b   : > { %v1950_v6 = vadd.f32 %v1943_v54, %v1942_v61  ;;  %1992 = vst [vmem:[%s4881_s20] sm:$0xff] %v2265_v4 }
 0x33c   : > { %v1734_v7 = vpop.f32.mrb[0].mxu1 }
 0x33d   : > { %v1735_v34 = vadd.f32 %v1734_v7, %v1591_v2  ;;  %v1736_v16 = vpop.f32.mrb[1].mxu1 }
 0x33e   : > { %v1737_v28 = vadd.f32 %v1736_v16, %v1591_v2 }
 0x33f   : > { %v1925_v8 = vmul.f32 %v1894_v17, %v1735_v34 }
 0x340   : > { %v1926_v51 = vmul.f32 %v1898_v10, %v1737_v28 }
 0x341   : > { %v1932_v42 = vadd.f32 %v1931_v15, %v1925_v8  ;;  %v1944_v48 = vmul.f32 %v1925_v8, %v1925_v8 }
 0x342   : > { %v1945_v50 = vmul.f32 %v1926_v51, %v1926_v51  ;;  %v2266_v63 = vpack.c.bf16 %v1926_v51, %v1925_v8 }
 0x343   : > { %v1951_v27 = vadd.f32 %v1950_v6, %v1944_v48  ;;  %v1933_v46 = vadd.f32 %v1932_v42, %v1926_v51 }
 0x344   : > { %1993 = vst [vmem:[%s4881_s20 + $0x8] sm:$0xff] %v2266_v63 }
 0x345   : > { %v1952_v32 = vadd.f32 %v1951_v27, %v1945_v50 }
 0x380   : > { %v1805_v1 = vpop.f32.mrb[2].mxu0 }
 0x381   : > { %v1806_v5 = vadd.f32 %v1805_v1, %v1591_v2  ;;  %v1807_v24 = vpop.f32.mrb[3].mxu0 }
 0x382   : > { %v1808_v18 = vadd.f32 %v1807_v24, %v1591_v2 }
 0x383   : > { %v1927_v44 = vmul.f32 %v1902_v23, %v1806_v5 }
 0x384   : > { %v1928_v38 = vmul.f32 %v1906_v3, %v1808_v18  ;;  %v1876_v29 = vpop.f32.mrb[2].mxu1 }
 0x385   : > { %v1934_v56 = vadd.f32 %v1933_v46, %v1927_v44  ;;  %v1946_v31 = vmul.f32 %v1927_v44, %v1927_v44  ;;  %v1877_v53 = vadd.f32 %v1876_v29, %v1591_v2  ;;  %v1878_v39 = vpop.f32.mrb[3].mxu1 }
 0x386   : > { %v1947_v13 = vmul.f32 %v1928_v38, %v1928_v38  ;;  %v2267_v59 = vpack.c.bf16 %v1928_v38, %v1927_v44  ;;  %v1879_v12 = vadd.f32 %v1878_v39, %v1591_v2 }
 0x387   : > { %v1953_v36 = vadd.f32 %v1952_v32, %v1946_v31  ;;  %v1935_v47 = vadd.f32 %v1934_v56, %v1928_v38  ;;  %v1929_v37 = vmul.f32 %v1910_v0, %v1877_v53 }
 0x388   : > { %1994 = vst [vmem:[%s4881_s20 + $0x10] sm:$0xff] %v2267_v59  ;;  %v1930_v55 = vmul.f32 %v1914_v21, %v1879_v12 }
 0x389   : > { %v1948_v45 = vmul.f32 %v1929_v37, %v1929_v37  ;;  %v1936_v20 = vadd.f32 %v1935_v47, %v1929_v37  ;;  %v1954_v14 = vadd.f32 %v1953_v36, %v1947_v13 }
 0x38a   : > { %v2268_v11 = vpack.c.bf16 %v1930_v55, %v1929_v37  ;;  %v1949_v33 = vmul.f32 %v1930_v55, %v1930_v55 }
 0x38b   : > { %v1937_v26 = vadd.f32 %v1936_v20, %v1930_v55  ;;  %v1955_v35 = vadd.f32 %v1954_v14, %v1948_v45 }
 0x38c   : > { %1995 = vst [vmem:[%s4881_s20 + $0x18] sm:$0xff] %v2268_v11 }
 0x38d   : > { %1938 = vadd.xlane.f32.xlu1 %v1937_v26  ;;  %v1956_v43 = vadd.f32 %v1955_v35, %v1949_v33 }
 0x38f   : > { %1957 = vadd.xlane.f32.xlu0 %v1956_v43 }
 0x390   : > { %3236 = shalt.err (!%p3233_p0)
}
 0x391   : > { %s3237_s22 = scalar_lea.hbm %s4904_s10, 512  ;;  %s3241_s21 = scalar_lea.hbm %s5019_s6, 1024 }
 0x392   : > { %p3238_p6 = scmp.ne.s32.totalorder %s4904_s10, %s3237_s22  ;;  %p3242_p8 = scmp.lt.u32.totalorder %s4904_s10, %s5019_s6 }
 0x393   : > { %p3243_p5 = scmp.lt.u32.totalorder %s3241_s21, %s3237_s22  ;;  %p3245_p7 = scmp.lt.u32.totalorder %s3237_s22, %s4904_s10 }
 0x394   : > { %p3239_p4 = pnand %p3238_p6, %p5309_p10 }
 0x395   : > { %p3244_p9 = por %p3243_p5, %p3242_p8 }
 0x396   : > { %p3240_p11 = pneg %p3239_p4 }
 0x397   : > { %p3246_p12 = por %p3245_p7, %p3244_p9 }
 0x399   : > { %p3247_p13 = pnand %p3246_p12, %p3240_p11 }
 0x39b   : > { %3250 = shalt.err (!%p3247_p13)
}
 0x39c   : > { %2500 = dma.vmem_to_hbm [thread:$0]  (%p5309_p10), %s2022_s14, 512, %s4904_s10, %s1997_s24   ;;  %vm1940_vm12 = vcmask 7168  }
 0x39d   : > { %s2245_s26 = sshll.u32 %s3677_s17, 3  ;;  %s2001_s13 = sand.u32 1, %s3465_s11  }
 0x39e   : > { %s2260_s16 = sshll.u32 %s3465_s11, 7  ;;  %s395_s20 = scalar_lea.vmem [#allocation15], %s2245_s26 }
 0x39f   : > { %s2034_s12 = sshll.u32 %s395_s20, 4  ;;  %s4927_s21 = scalar_lea.vmem [#allocation17], %s2245_s26  ;;  %s4935_s12 = int_to_ptr.vmem [resolvable:$true] %s2034_s12 }
 0x3a0   : > { %s2047_s22 = sshll.u32 %s4927_s21, 4  ;;  %s4933_s0 = scalar_lea.hbm %s5020_s7, %s2260_s16  ;;  %s4943_s22 = int_to_ptr.vmem [resolvable:$true] %s2047_s22 }
 0x3a1   : > { %s4941_s14 = scalar_lea.hbm %s5021_s8, %s2260_s16  ;;  %s4945_s10 = scalar_lea.sflag [#allocation16], %s2001_s13 }
 0x3a2   : > { %s3251_s24 = scalar_lea.vmem %s4935_s12, 128  ;;  %s3397_s26 = smov [#allocation15]  }
 0x3a3   : > { %p3252_p1 = scmp.ne.s32.totalorder %s4935_s12, %s3251_s24  ;;  %s3255_s23 = sshll.u32 %s3397_s26, 4  ;;  %s3256_s23 = int_to_ptr.vmem [resolvable:$false] %s3255_s23 }
 0x3a4   : > { %s3257_s19 = scalar_lea.vmem %s3256_s23, 256  ;;  %p3258_p0 = scmp.lt.s32.totalorder %s4935_s12, %s3256_s23 }
 0x3a5   : > { %p3253_p3 = pnand %p3252_p1, %p5309_p10  ;;  %p3259_p6 = scmp.lt.s32.totalorder %s3257_s19, %s3251_s24 }
 0x3a7   : > { %p3254_p2 = pneg %p3253_p3  ;;  %p3260_p4 = por %p3259_p6, %p3258_p0 }
 0x3a9   : > { %p3261_p11 = pnand %p3260_p4, %p3254_p2 }
 0x41a   : > { %v1939_v2 = vpop.xlane.xlu1 %1938 }
 0x41b   : > { %1941 = vst.msk [vmem:[%s395_s20] sm:$0xff] %vm1940_vm12, %v1939_v2 }
 0x41c   : > { %v1958_v25 = vpop.xlane.xlu0 %1957 }
 0x41d   : > { %3264 = shalt.err (!%p3261_p11)
}
 0x41e   : > { %s3265_s13 = scalar_lea.hbm %s4933_s0, 128  ;;  %s3269_s11 = scalar_lea.hbm %s5020_s7, 256 }
 0x41f   : > { %p3266_p8 = scmp.ne.s32.totalorder %s4933_s0, %s3265_s13  ;;  %p3270_p7 = scmp.lt.u32.totalorder %s4933_s0, %s5020_s7 }
 0x420   : > { %p3271_p12 = scmp.lt.u32.totalorder %s3269_s11, %s3265_s13  ;;  %p3273_p1 = scmp.lt.u32.totalorder %s3265_s13, %s4933_s0 }
 0x421   : > { %p3267_p5 = pnand %p3266_p8, %p5309_p10 }
 0x422   : > { %p3272_p13 = por %p3271_p12, %p3270_p7 }
 0x423   : > { %p3268_p9 = pneg %p3267_p5 }
 0x424   : > { %p3274_p3 = por %p3273_p1, %p3272_p13 }
 0x426   : > { %p3275_p2 = pnand %p3274_p3, %p3268_p9 }
 0x428   : > { %3278 = shalt.err (!%p3275_p2)
}
 0x429   : > { %2501 = dma.vmem_to_hbm [thread:$0]  (%p5309_p10), %s4935_s12, 128, %s4933_s0, %s4945_s10   ;;  %1959 = vst.msk [vmem:[%s4927_s21] sm:$0xff] %vm1940_vm12, %v1958_v25 }
 0x42a   : > { %s3279_s24 = scalar_lea.vmem %s4943_s22, 128  ;;  %s3398_s23 = smov [#allocation17]  }
 0x42b   : > { %p3280_p0 = scmp.ne.s32.totalorder %s4943_s22, %s3279_s24  ;;  %s3283_s19 = sshll.u32 %s3398_s23, 4  ;;  %s3284_s19 = int_to_ptr.vmem [resolvable:$false] %s3283_s19 }
 0x42c   : > { %s3285_s13 = scalar_lea.vmem %s3284_s19, 256  ;;  %p3286_p11 = scmp.lt.s32.totalorder %s4943_s22, %s3284_s19 }
 0x42d   : > { %p3281_p6 = pnand %p3280_p0, %p5309_p10  ;;  %p3287_p8 = scmp.lt.s32.totalorder %s3285_s13, %s3279_s24 }
 0x42f   : > { %p3282_p4 = pneg %p3281_p6  ;;  %p3288_p5 = por %p3287_p8, %p3286_p11 }
 0x431   : > { %p3289_p9 = pnand %p3288_p5, %p3282_p4 }
 0x433   : > { %3292 = shalt.err (!%p3289_p9)
}
 0x434   : > { %s3293_s0 = scalar_lea.hbm %s4941_s14, 128  ;;  %s3297_s16 = scalar_lea.hbm %s5021_s8, 256 }
 0x435   : > { %p3294_p7 = scmp.ne.s32.totalorder %s4941_s14, %s3293_s0  ;;  %p3298_p1 = scmp.lt.u32.totalorder %s4941_s14, %s5021_s8 }
 0x436   : > { %p3299_p3 = scmp.lt.u32.totalorder %s3297_s16, %s3293_s0  ;;  %p3301_p0 = scmp.lt.u32.totalorder %s3293_s0, %s4941_s14 }
 0x437   : > { %p3295_p12 = pnand %p3294_p7, %p5309_p10 }
 0x438   : > { %p3300_p2 = por %p3299_p3, %p3298_p1 }
 0x439   : > { %p3296_p13 = pneg %p3295_p12 }
 0x43a   : > { %p3302_p6 = por %p3301_p0, %p3300_p2 }
 0x43c   : > { %p3303_p4 = pnand %p3302_p6, %p3296_p13 }
 0x43e   : > { %3306 = shalt.err (!%p3303_p4)
}
 0x43f   : > { %2502 = dma.vmem_to_hbm [thread:$0]  (%p5309_p10), %s4943_s22, 128, %s4941_s14, %s4945_s10  }
 0x440 PF: > { %s2059_s17 = sand.u32 1, %s3349_s27   ;;  %p5310_p11 = scmp.ne.s32.totalorder %s5138_s18, 0 }
 0x441   : > { %p5311_p8 = scmp.ge.s32.totalorder %s3361_s30, 2  ;;  %s2060_s26 = scalar_lea.sflag [#allocation5], %s2059_s17 }
 0x443   : > { %p2527_p5 = pnand %p5311_p8, %p5310_p11 }
 0x445   : > { %3340 = dma.done.wait (!%p2527_p5), %s2060_s26, 512  }
 0x446   : > { %3342 = vsyncadd (!%p2527_p5), %s2060_s26, 4294966784  ;;  %s5312_s24 = sadd.s32 4294967294, %s3361_s30  }
 0x447   : > { %s2068_s23 = sand.u32 1, %s5312_s24  }
 0x448   : > { %s2069_s19 = scalar_lea.sflag [#allocation16], %s2068_s23 }
 0x449   : > { %3344 = dma.done.wait (!%p2527_p5), %s2069_s19, 256  }
 0x44a   : > { %3346 = vsyncadd (!%p2527_p5), %s2069_s19, 4294967040  ;;  %p28_p10 = scmp.ge.s32.totalorder %s3605_s25, 4   ;;  %s5313_s27 = smov %s3353_s28 }
 0x44b   : > { %s5314_s28 = smov %s3357_s29  ;;  %s5315_s29 = smov %s3617_s9 }
 0x44c   : > { %s5316_s30 = smov %s3605_s25  ;;  %30 = sbr.rel (!%p28_p10) target bundleno = 12 (0xc), region = 141 }
 0x453   :  { %2083 = vsyncpa [#allocation4], 1 }
 0x454   :  { %2085 = vsyncpa [#allocation4 + $0x1], 1 }
 0x455   :  { %2086 = vsyncpa [#allocation7], 1 }
 0x456   :  { %2087 = vsyncpa [#allocation10], 1 }
 0x457   :  { %2088 = vsyncpa [#allocation13], 1 }
 0x458   :  { %2089 = vsyncpa [#allocation5], 1 }
 0x459   :  { %2091 = vsyncpa [#allocation5 + $0x1], 1 }
 0x45a   :  { %2092 = vsyncpa [#allocation16], 1 }
 0x45b   :  { %2094 = vsyncpa [#allocation16 + $0x1], 1 }

// kernel: residual_block_simplified.3
= control target key start
LH: loop header
LB: loop body
LE: loop exit
PB: predicated region body
PF: predicated region fallthrough
CT: control target
= control target key end

     0   :  { %12 = vsyncpa [#allocation4], 0  ;;  %s4625_s0 = inlined_call_operand.hbm [shape: f32[2,8,1024], index: 0, kind: input, shape index: {}]   ;;  %s4626_s1 = inlined_call_operand.hbm [shape: f32[8,216], index: 1, kind: input, shape index: {}]   ;;  %s4627_s2 = inlined_call_operand.hbm [shape: f32[8,1], index: 2, kind: input, shape index: {}]   ;;  %s4628_s3 = inlined_call_operand.hbm [shape: f32[1,1024], index: 3, kind: input, shape index: {}]   ;;  %s4629_s4 = inlined_call_operand.hbm [shape: bf16[2,8,1024], index: 4, kind: output, shape index: {0}]   ;;  %s4630_s5 = inlined_call_operand.hbm [shape: f32[2,8,1], index: 5, kind: output, shape index: {1}]   ;;  %s4631_s6 = inlined_call_operand.hbm [shape: f32[2,8,1], index: 6, kind: output, shape index: {2}]  }
   0x1   :  { %14 = vsyncpa [#allocation4 + $0x1], 0 }
   0x2   :  { %15 = vsyncpa [#allocation7], 0 }
   0x3   :  { %16 = vsyncpa [#allocation10], 0 }
   0x4   :  { %17 = vsyncpa [#allocation5], 0 }
   0x5   :  { %19 = vsyncpa [#allocation5 + $0x1], 0 }
   0x6   :  { %20 = vsyncpa [#allocation13], 0 }
   0x7   :  { %22 = vsyncpa [#allocation13 + $0x1], 0  ;;  %s3164_s21 = smov 0   ;;  %s3166_s22 = smov 0  }
   0x8   :  { %s3168_s23 = smov 0   ;;  %s3170_s24 = smov 0  }
   0x9 LB: > { %s3185_s25 = sadd.s32 4294967295, %s3093_s24   ;;  %s4635_s26 = sadd.s32 4294967294, %s3093_s24   ;;  %s3093_s24 = sphi %s3170_s24, %s4891_s24   ;;  %s3089_s23 = sphi %s3168_s23, %s4890_s23   ;;  %s3085_s22 = sphi %s3166_s22, %s4889_s22   ;;  %s3081_s21 = sphi %s3164_s21, %s4888_s21  }
   0xa   : > { %p48_p0 = scmp.ne.s32.totalorder %s3085_s22, %s3081_s21  ;;  %p4632_p1 = scmp.eq.s32.totalorder %s3185_s25, 0 }
   0xb   : > { %p141_p3 = scmp.eq.s32.totalorder %s4635_s26, 1  ;;  %p2039_p5 = scmp.ge.s32.totalorder %s3093_s24, 1 }
   0xc   : > { %p3196_p4 = por %p4632_p1, %p48_p0  ;;  %p200_p7 = scmp.lt.s32.totalorder %s3093_s24, 3 }
   0xd   : > { %p3201_p6 = por %p141_p3, %p48_p0  ;;  %s3095_s30 = smov [#allocation6]  }
   0xe   : > { %s4728_s27 = scalar_select %p3196_p4, 1, 0 }
   0xf   : > { %s4729_s28 = scalar_select %p3201_p6, 1, 0 }
  0x10   : > { %p3206_p8 = pnand %p2039_p5, %p200_p7  ;;  %s213_s7 = sshll.u32 %s3095_s30, 4  ;;  %s214_s7 = int_to_ptr.vmem [resolvable:$true] %s213_s7 }
  0x11   : > { %s3096_s8 = smov [#allocation8]   ;;  %s3097_s11 = smov [#allocation9]  }
  0x12   : > { %s4730_s29 = scalar_select %p3206_p8, 1, 0 }
  0x13   : > { %p2306_p10 = pneg %p3206_p8  ;;  %s224_s9 = sshll.u32 %s3096_s8, 4  ;;  %s3219_s9 = int_to_ptr.vmem [resolvable:$true] %s224_s9 }
  0x14   : > { %s235_s12 = sshll.u32 %s3097_s11, 4  ;;  %s2845_s15 = scalar_lea.hbm %s4626_s1, 256  ;;  %s3221_s12 = int_to_ptr.vmem [resolvable:$true] %s235_s12 }
  0x15   : > { %p3215_p11 = pnand %p2306_p10, %p4632_p1  ;;  %p2846_p12 = scmp.ne.s32.totalorder %s4626_s1, %s2845_s15 }
  0x16   : > { %p2852_p5 = scmp.lt.u32.totalorder %s2845_s15, %s4626_s1 }
  0x17   : > { %p3231_p13 = pneg %p3215_p11 }
  0x19   : > { %p2848_p0 = pnand %p3231_p13, %p2846_p12 }
  0x1b   : > { %p2849_p3 = pneg %p2848_p0 }
  0x1d   : > { %p2854_p7 = pnand %p2852_p5, %p2849_p3 }
  0x1f   : > { %2857 = shalt.err (!%p2854_p7)
}
  0x20   : > { %s2858_s30 = scalar_lea.vmem %s214_s7, 256  ;;  %p2866_p2 = scmp.lt.s32.totalorder %s214_s7, %s214_s7 }
  0x21   : > { %p2859_p10 = scmp.ne.s32.totalorder %s214_s7, %s2858_s30  ;;  %p2867_p6 = scmp.lt.s32.totalorder %s2858_s30, %s2858_s30 }
  0x23   : > { %p2861_p9 = pnand %p2859_p10, %p3231_p13  ;;  %p2868_p4 = por %p2867_p6, %p2866_p2 }
  0x25   : > { %p2862_p1 = pneg %p2861_p9 }
  0x27   : > { %p2869_p8 = pnand %p2868_p4, %p2862_p1 }
  0x29   : > { %2872 = shalt.err (!%p2869_p8)
}
  0x2a   : > { %2309 = dma.hbm_to_vmem [thread:$0]  (!%p3215_p11), %s4626_s1, 256, %s214_s7, [#allocation7]  }
  0x2b   : > { %s2873_s15 = scalar_lea.hbm %s4627_s2, 128 }
  0x2c   : > { %p2874_p9 = scmp.ne.s32.totalorder %s4627_s2, %s2873_s15  ;;  %p2880_p1 = scmp.lt.u32.totalorder %s2873_s15, %s4627_s2 }
  0x2e   : > { %p2876_p12 = pnand %p2874_p9, %p3231_p13 }
  0x30   : > { %p2877_p2 = pneg %p2876_p12 }
  0x32   : > { %p2882_p4 = pnand %p2880_p1, %p2877_p2 }
  0x34   : > { %2885 = shalt.err (!%p2882_p4)
}
  0x35   : > { %s2886_s7 = scalar_lea.vmem %s3219_s9, 128  ;;  %p2894_p3 = scmp.lt.s32.totalorder %s3219_s9, %s3219_s9 }
  0x36   : > { %p2887_p6 = scmp.ne.s32.totalorder %s3219_s9, %s2886_s7  ;;  %p2895_p5 = scmp.lt.s32.totalorder %s2886_s7, %s2886_s7 }
  0x38   : > { %p2889_p8 = pnand %p2887_p6, %p3231_p13  ;;  %p2896_p7 = por %p2895_p5, %p2894_p3 }
  0x3a   : > { %p2890_p0 = pneg %p2889_p8 }
  0x3c   : > { %p2897_p10 = pnand %p2896_p7, %p2890_p0 }
  0x3e   : > { %2900 = shalt.err (!%p2897_p10)
}
  0x3f   : > { %2312 = dma.hbm_to_vmem [thread:$0]  (!%p3215_p11), %s4627_s2, 128, %s3219_s9, [#allocation7]  }
  0x40   : > { %s2901_s14 = scalar_lea.hbm %s4628_s3, 128 }
  0x41   : > { %p2902_p9 = scmp.ne.s32.totalorder %s4628_s3, %s2901_s14  ;;  %p2908_p1 = scmp.lt.u32.totalorder %s2901_s14, %s4628_s3 }
  0x43   : > { %p2904_p12 = pnand %p2902_p9, %p3231_p13 }
  0x45   : > { %p2905_p2 = pneg %p2904_p12 }
  0x47   : > { %p2910_p4 = pnand %p2908_p1, %p2905_p2 }
  0x49   : > { %2913 = shalt.err (!%p2910_p4)
}
  0x4a   : > { %s2914_s9 = scalar_lea.vmem %s3221_s12, 128  ;;  %p2922_p3 = scmp.lt.s32.totalorder %s3221_s12, %s3221_s12 }
  0x4b   : > { %p2915_p6 = scmp.ne.s32.totalorder %s3221_s12, %s2914_s9  ;;  %p2923_p5 = scmp.lt.s32.totalorder %s2914_s9, %s2914_s9 }
  0x4d   : > { %p2917_p8 = pnand %p2915_p6, %p3231_p13  ;;  %p2924_p7 = por %p2923_p5, %p2922_p3 }
  0x4f   : > { %p2918_p0 = pneg %p2917_p8 }
  0x51   : > { %p2925_p10 = pnand %p2924_p7, %p2918_p0 }
  0x53   : > { %2928 = shalt.err (!%p2925_p10)
}
  0x54   : > { %2315 = dma.hbm_to_vmem [thread:$0]  (!%p3215_p11), %s4628_s3, 128, %s3221_s12, [#allocation10]  }
  0x55   : > { %s3294_s18 = sadd.s32 1, %s3093_s24   ;;  %s35_s30 = sadd.s32 1, %s3089_s23 }
  0x56   : > { %s32_s10 = ssub.s32 %s3093_s24, %s3294_s18  ;;  %p42_p9 = scmp.ne.s32.totalorder %s3089_s23, %s3085_s22 }
  0x57   : > { %p33_p13 = scmp.eq.s32.totalorder %s32_s10, 0  ;;  %p43_p12 = scmp.eq.s32.totalorder %s3093_s24, 0 }
  0x58   : > { %p2333_p2 = scmp.lt.s32.totalorder %s3093_s24, 2  ;;  %p4733_p4 = scmp.eq.s32.totalorder %s3185_s25, 1 }
  0x59   : > { %s3304_s8 = scalar_select %p33_p13, %s3089_s23, %s35_s30  }
  0x5a   : > { %p44_p1 = por %p43_p12, %p42_p9  ;;  %p3308_p6 = por %p4733_p4, %p42_p9 }
  0x5b   : > { %s246_s13 = sand.u32 1, %s3089_s23   ;;  %s2072_s14 = sshll.u32 %s3093_s24, 10 }
  0x5c   : > { %s2044_s12 = sshll.u32 %s246_s13, 6  ;;  %s3317_s17 = scalar_lea.hbm %s4625_s0, %s2072_s14 }
  0x5d   : > { %s250_s19 = scalar_lea.vmem [#allocation3], %s2044_s12  ;;  %p3319_p11 = pnand %p2333_p2, %p44_p1 }
  0x5e   : > { %s258_s9 = sshll.u32 %s250_s19, 4  ;;  %s247_s7 = scalar_lea.sflag [#allocation4], %s246_s13  ;;  %s3323_s9 = int_to_ptr.vmem [resolvable:$true] %s258_s9 }
  0x5f   : > { %s2929_s10 = scalar_lea.hbm %s3317_s17, 1024  ;;  %p2931_p0 = pneg %p3319_p11 }
  0x60   : > { %p2930_p8 = scmp.ne.s32.totalorder %s3317_s17, %s2929_s10  ;;  %s2934_s12 = scalar_lea.hbm %s4625_s0, 2048 }
  0x61   : > { %p2935_p7 = scmp.lt.u32.totalorder %s3317_s17, %s4625_s0  ;;  %p2936_p10 = scmp.lt.u32.totalorder %s2934_s12, %s2929_s10 }
  0x62   : > { %p2932_p3 = pnand %p2931_p0, %p2930_p8  ;;  %p2938_p9 = scmp.lt.u32.totalorder %s2929_s10, %s3317_s17 }
  0x63   : > { %p2937_p13 = por %p2936_p10, %p2935_p7 }
  0x64   : > { %p2933_p5 = pneg %p2932_p3 }
  0x65   : > { %p2939_p12 = por %p2938_p9, %p2937_p13 }
  0x67   : > { %p2940_p2 = pnand %p2939_p12, %p2933_p5 }
  0x69   : > { %2943 = shalt.err (!%p2940_p2)
}
  0x6a   : > { %s2944_s13 = scalar_lea.vmem %s3323_s9, 1024  ;;  %s3098_s19 = smov [#allocation3]  }
  0x6b   : > { %p2945_p1 = scmp.ne.s32.totalorder %s3323_s9, %s2944_s13  ;;  %s2949_s30 = sshll.u32 %s3098_s19, 4  ;;  %s2950_s30 = int_to_ptr.vmem [resolvable:$false] %s2949_s30 }
  0x6c   : > { %s2951_s14 = scalar_lea.vmem %s2950_s30, 2048  ;;  %p2952_p3 = scmp.lt.s32.totalorder %s3323_s9, %s2950_s30 }
  0x6d   : > { %p2947_p4 = pnand %p2945_p1, %p2931_p0  ;;  %p2953_p7 = scmp.lt.s32.totalorder %s2951_s14, %s2944_s13 }
  0x6f   : > { %p2948_p8 = pneg %p2947_p4  ;;  %p2954_p10 = por %p2953_p7, %p2952_p3 }
  0x71   : > { %p2955_p13 = pnand %p2954_p10, %p2948_p8 }
  0x73   : > { %2958 = shalt.err (!%p2955_p13)
}
  0x74   : > { %2319 = dma.hbm_to_vmem [thread:$0]  (!%p3319_p11), %s3317_s17, 1024, %s3323_s9, %s247_s7  }
  0x75   : > { %p4736_p5 = scmp.ne.s32.totalorder %s4730_s29, 0 }
  0x77   : > { %267 = sbr.rel (%p4736_p5) target bundleno = 898 (0x382), region = 36 }
  0x7e   : > { %s3353_s10 = sand.u32 1, %s3085_s22   ;;  %p4737_p0 = scmp.ne.s32.totalorder %s4728_s27, 0 }
  0x7f   : > { %s2048_s12 = sshll.u32 %s3353_s10, 6  ;;  %s270_s15 = scalar_lea.sflag [#allocation4], %s3353_s10 }
  0x80   : > { %s3357_s16 = scalar_lea.vmem [#allocation3], %s2048_s12 }
  0x81   : > { %3060 = dma.done.wait (%p4737_p0), %s270_s15, 1024  }
  0x82   : > { %3062 = vsyncadd (%p4737_p0), %s270_s15, 4294966272  ;;  %p4738_p11 = scmp.eq.s32.totalorder %s3185_s25, 0 }
  0x84   : > { %3064 = dma.done.wait (%p4738_p11), [#allocation7], 384   ;;  %p4739_p9 = pmov %p4738_p11 }
  0x86   : > { %3066 = vsyncadd (%p4739_p9), [#allocation7], 4294966912  ;;  %p4740_p12 = pmov %p4739_p9 }
  0x87   : > { %p4741_p2 = pmov %p4739_p9 }
  0x88   : > { %3068 = dma.done.wait (%p4740_p12), [#allocation10], 128  }
  0x89   : > { %3070 = vsyncadd (%p4741_p2), [#allocation10], 4294967168  ;;  %v3372_v0 = vld [vmem:[%s3357_s16 + $0x10] sm:$0xff]  ;;  %v3375_v1 = vld [vmem:[%s3357_s16 + $0x38] sm:$0xff]  ;;  %s3099_s27 = smov 111   ;;  %s3100_s29 = smov 110   ;;  %v4656_v11 = vlaneseq }
  0x8a   : > { %v3378_v2 = vld [vmem:[%s3357_s16] sm:$0xff]  ;;  %v2410_v3 = vpack.i.bf16 %v3372_v0, %v3375_v1  ;;  %v3383_v4 = vld [vmem:[%s3357_s16 + $0x8] sm:$0xff]  ;;  %v3390_v6 = vld [vmem:[%s3357_s16 + $0x18] sm:$0xff]  ;;  %s3101_s17 = smov 101   ;;  %s3102_s9 = smov 109   ;;  %vm1424_vm6 = vcmask 719872  }
  0x8b   : > { %v2400_v5 = vpack.i.bf16 %v3383_v4, %v3378_v2  ;;  %v3393_v7 = vld [vmem:[%s3357_s16 + $0x20] sm:$0xff]  ;;  %s3103_s20 = smov 99   ;;  %s3104_s7 = smov 100   ;;  %v3434_v9 = vpack.i.bf16 %v3372_v0, %v3383_v4  ;;  %v3441_v10 = vpack.i.bf16 %v3390_v6, %v3378_v2  ;;  %v3483_v14 = vand.u32 127, %v4656_v11 }
  0x8c   : > { %2411 = vrot.lane.b32.xlu1 %v2410_v3, %s3099_s27  ;;  %v2425_v8 = vpack.i.bf16 %v3393_v7, %v3390_v6  ;;  %s3105_s13 = smov 90   ;;  %s3106_s19 = smov 91  }
  0x8d   : > { %2401 = vrot.lane.b32.xlu0 %v2400_v5, %s3099_s27  ;;  %s3107_s30 = smov 11   ;;  %s4636_s14 = smov 89   ;;  %vm383_vm0 = vcmp.lt.s32.totalorder %v3483_v14, 110  ;;  %vm350_vm1 = vcmp.lt.s32.totalorder %v3483_v14, 111  ;;  %vm416_vm2 = vcmp.lt.s32.totalorder %v3483_v14, 109  ;;  %vm449_vm3 = vcmp.lt.s32.totalorder %v3483_v14, 101 }
  0x8e   : > { %s4638_s12 = smov 9   ;;  %s4637_s15 = smov 10   ;;  %vm482_vm4 = vcmp.lt.s32.totalorder %v3483_v14, 100  ;;  %vm515_vm5 = vcmp.lt.s32.totalorder %v3483_v14, 99  ;;  %vm548_vm7 = vcmp.lt.s32.totalorder %v3483_v14, 91  ;;  %vm581_vm8 = vcmp.lt.s32.totalorder %v3483_v14, 90 }
  0x8f   : > { %s4639_s26 = smov 1   ;;  %vm614_vm9 = vcmp.lt.s32.totalorder %v3483_v14, 89  ;;  %vm647_vm10 = vcmp.lt.s32.totalorder %v3483_v14, 11  ;;  %vm4708_vm11 = vcmp.lt.s32.totalorder %v3483_v14, 10  ;;  %vm713_vm12 = vcmp.lt.s32.totalorder %v3483_v14, 9 }
  0x90   : > { %2416 = vrot.lane.b32.xlu1 %v2410_v3, %s3100_s29  ;;  %vm4684_vm13 = vcmp.lt.s32.totalorder %v3483_v14, 1  ;;  %vm4692_vm14 = vcmp.lt.s32.totalorder %v3483_v14, 127  ;;  %vm4685_vm15 = vcmp.lt.s32.totalorder %v3483_v14, 119 }
  0x91   : > { %2406 = vrot.lane.b32.xlu0 %v2400_v5, %s3100_s29 }
  0x94   : > { %2426 = vrot.lane.b32.xlu1 %v2425_v8, %s3100_s29 }
  0x95   : > { %2421 = vrot.lane.b32.xlu0 %v2425_v8, %s3099_s27 }
  0x98   : > { %2436 = vrot.lane.b32.xlu1 %v2400_v5, %s3101_s17 }
  0x99   : > { %2431 = vrot.lane.b32.xlu0 %v2400_v5, %s3102_s9 }
  0x9c   : > { %2446 = vrot.lane.b32.xlu1 %v2410_v3, %s3101_s17 }
  0x9d   : > { %2441 = vrot.lane.b32.xlu0 %v2410_v3, %s3102_s9 }
  0xa0   : > { %2456 = vrot.lane.b32.xlu1 %v2425_v8, %s3101_s17 }
  0xa1   : > { %2451 = vrot.lane.b32.xlu0 %v2425_v8, %s3102_s9 }
  0xa4   : > { %2466 = vrot.lane.b32.xlu1 %v2400_v5, %s3103_s20 }
  0xa5   : > { %2461 = vrot.lane.b32.xlu0 %v2400_v5, %s3104_s7 }
  0xa8   : > { %2476 = vrot.lane.b32.xlu1 %v2410_v3, %s3103_s20 }
  0xa9   : > { %2471 = vrot.lane.b32.xlu0 %v2410_v3, %s3104_s7 }
  0xac   : > { %2486 = vrot.lane.b32.xlu1 %v2425_v8, %s3103_s20 }
  0xad   : > { %2481 = vrot.lane.b32.xlu0 %v2425_v8, %s3104_s7 }
  0xb0   : > { %2496 = vrot.lane.b32.xlu1 %v2400_v5, %s3105_s13 }
  0xb1   : > { %2491 = vrot.lane.b32.xlu0 %v2400_v5, %s3106_s19 }
  0xb4   : > { %2506 = vrot.lane.b32.xlu1 %v2410_v3, %s3105_s13 }
  0xb5   : > { %2501 = vrot.lane.b32.xlu0 %v2410_v3, %s3106_s19 }
  0xb8   : > { %2516 = vrot.lane.b32.xlu1 %v2425_v8, %s3105_s13 }
  0xb9   : > { %2511 = vrot.lane.b32.xlu0 %v2425_v8, %s3106_s19 }
  0xbc   : > { %2526 = vrot.lane.b32.xlu1 %v2400_v5, %s3107_s30 }
  0xbd   : > { %2521 = vrot.lane.b32.xlu0 %v2400_v5, %s4636_s14 }
  0xc0   : > { %2536 = vrot.lane.b32.xlu1 %v2410_v3, %s3107_s30 }
  0xc1   : > { %2531 = vrot.lane.b32.xlu0 %v2410_v3, %s4636_s14 }
  0xc4   : > { %2546 = vrot.lane.b32.xlu1 %v2425_v8, %s3107_s30 }
  0xc5   : > { %2541 = vrot.lane.b32.xlu0 %v2425_v8, %s4636_s14  ;;  %s4640_s14 = smov 127  }
  0xc8   : > { %2556 = vrot.lane.b32.xlu1 %v2400_v5, %s4638_s12 }
  0xc9   : > { %2551 = vrot.lane.b32.xlu0 %v2400_v5, %s4637_s15 }
  0xcc   : > { %2566 = vrot.lane.b32.xlu1 %v2410_v3, %s4638_s12 }
  0xcd   : > { %2561 = vrot.lane.b32.xlu0 %v2410_v3, %s4637_s15 }
  0xd0   : > { %2576 = vrot.lane.b32.xlu1 %v2425_v8, %s4638_s12  ;;  %s4644_s12 = smov 118  }
  0xd1   : > { %2571 = vrot.lane.b32.xlu0 %v2425_v8, %s4637_s15  ;;  %s4642_s15 = smov 119  }
  0xd4   : > { %2586 = vrot.lane.b32.xlu1 %v2410_v3, %s4639_s26 }
  0xd5   : > { %2581 = vrot.lane.b32.xlu0 %v2400_v5, %s4639_s26 }
  0xd8   : > { %2596 = vrot.lane.b32.xlu1 %v3434_v9, %s4640_s14 }
  0xd9   : > { %2591 = vrot.lane.b32.xlu0 %v2425_v8, %s4639_s26  ;;  %s3115_s26 = smov 117  }
  0xdc   : > { %2606 = vrot.lane.b32.xlu1 %v3441_v10, %s4640_s14 }
  0xdd   : > { %2601 = vrot.lane.b32.xlu0 %v3434_v9, %s4642_s15 }
  0xe0   : > { %779 = vrot.lane.b32.xlu1 %v3393_v7, %s4640_s14  ;;  %s4646_s14 = smov 39  }
  0xe1   : > { %2611 = vrot.lane.b32.xlu0 %v3441_v10, %s4642_s15 }
  0xe4   : > { %2616 = vrot.lane.b32.xlu1 %v3434_v9, %s4644_s12 }
  0xe5   : > { %812 = vrot.lane.b32.xlu0 %v3393_v7, %s4642_s15  ;;  %s3117_s15 = smov 38  }
  0xe8   : > { %2626 = vrot.lane.b32.xlu1 %v3441_v10, %s4644_s12 }
  0xe9   : > { %2621 = vrot.lane.b32.xlu0 %v3434_v9, %s3115_s26 }
  0xec   : > { %845 = vrot.lane.b32.xlu1 %v3393_v7, %s4644_s12  ;;  %s4648_s12 = smov 37  }
  0xed   : > { %2631 = vrot.lane.b32.xlu0 %v3441_v10, %s3115_s26 }
  0xf0   : > { %2636 = vrot.lane.b32.xlu1 %v3434_v9, %s4646_s14 }
  0xf1   : > { %878 = vrot.lane.b32.xlu0 %v3393_v7, %s3115_s26 }
  0xf4   : > { %2646 = vrot.lane.b32.xlu1 %v3441_v10, %s4646_s14 }
  0xf5   : > { %2641 = vrot.lane.b32.xlu0 %v3434_v9, %s3117_s15 }
  0xf8   : > { %911 = vrot.lane.b32.xlu1 %v3393_v7, %s4646_s14  ;;  %s4650_s14 = smov 29  }
  0xf9   : > { %2651 = vrot.lane.b32.xlu0 %v3441_v10, %s3117_s15 }
  0xfc   : > { %2656 = vrot.lane.b32.xlu1 %v3434_v9, %s4648_s12 }
  0xfd   : > { %944 = vrot.lane.b32.xlu0 %v3393_v7, %s3117_s15 }
  0xfe   : > { %v3480_v12 = vpop.permute.xlu1 %2411 }
  0xff   : > { %v2402_v13 = vpop.permute.xlu0 %2401  ;;  %v4671_v15 = vunpack.i.l.bf16 %v3480_v12  ;;  %v2414_v23 = vunpack.i.h.bf16 %v3480_v12 }
 0x100   : > { %2666 = vrot.lane.b32.xlu1 %v3441_v10, %s4648_s12  ;;  %v2404_v16 = vunpack.i.h.bf16 %v2402_v13  ;;  %v2403_v17 = vunpack.i.l.bf16 %v2402_v13 }
 0x101   : > { %2661 = vrot.lane.b32.xlu0 %v3434_v9, %s4650_s14 }
 0x102   : > { %v3490_v18 = vpop.permute.xlu1 %2416  ;;  %v357_v26 = vsel %vm350_vm1, %v2403_v17, %v2404_v16  ;;  %v358_v28 = vsel %vm350_vm1, %v4671_v15, %v2403_v17  ;;  %v356_v43 = vsel %vm350_vm1, %v2404_v16, %v2414_v23 }
 0x103   : > { %v4672_v19 = vunpack.i.l.bf16 %v3490_v18  ;;  %v2407_v20 = vpop.permute.xlu0 %2406  ;;  %v2419_v24 = vunpack.i.h.bf16 %v3490_v18 }
 0x104   : > { %v2409_v21 = vunpack.i.h.bf16 %v2407_v20  ;;  %v2408_v22 = vunpack.i.l.bf16 %v2407_v20  ;;  %977 = vrot.lane.b32.xlu1 %v3393_v7, %s4648_s12  ;;  %s4652_s12 = smov 28  }
 0x105   : > { %2671 = vrot.lane.b32.xlu0 %v3441_v10, %s4650_s14 }
 0x106   : > { %v3501_v25 = vpop.permute.xlu1 %2426  ;;  %v390_v27 = vsel %vm383_vm0, %v2408_v22, %v2409_v21  ;;  %v391_v29 = vsel %vm383_vm0, %v4672_v19, %v2408_v22  ;;  %v389_v39 = vsel %vm383_vm0, %v2409_v21, %v2419_v24 }
 0x107   : > { %v4682_v30 = vunpack.i.h.bf16 %v3501_v25  ;;  %v2428_v31 = vunpack.i.l.bf16 %v3501_v25  ;;  %v3517_v32 = vpop.permute.xlu0 %2421  ;;  %v2078_v33 = vpack.c.bf16 %v390_v27, %v357_v26  ;;  %v2080_v34 = vpack.c.bf16 %v391_v29, %v358_v28 }
 0x108   : > { %v4681_v35 = vunpack.i.h.bf16 %v3517_v32  ;;  %v2423_v36 = vunpack.i.l.bf16 %v3517_v32  ;;  %2676 = vrot.lane.b32.xlu1 %v3434_v9, %s4652_s12  ;;  %v2132_v51 = vpack.c.bf16 %v389_v39, %v356_v43  ;;  %v3623_v43 = vld [vmem:[%s3357_s16 + $0x30] sm:$0xff] }
 0x109   : > { %v3527_v37 = vsel %vm383_vm0, %v2428_v31, %v4682_v30  ;;  %1010 = vrot.lane.b32.xlu0 %v3393_v7, %s4650_s14  ;;  %2079 = vmatprep.subr.bf16.mxu0 %v2078_v33  ;;  %v388_v38 = vsel %vm383_vm0, %v2419_v24, %v2428_v31  ;;  %s4654_s14 = smov 27  }
 0x10a   : > { %v3540_v40 = vsel %vm350_vm1, %v2423_v36, %v4681_v35  ;;  %2081 = vmatpush1.bf16.msra.mxu0 %v2080_v34  ;;  %v2437_v41 = vpop.permute.xlu1 %2436  ;;  %v355_v42 = vsel %vm350_vm1, %v2414_v23, %v2423_v36 }
 0x10b   : > { %v2439_v44 = vunpack.i.h.bf16 %v2437_v41  ;;  %v2438_v45 = vunpack.i.l.bf16 %v2437_v41  ;;  %v2432_v46 = vpop.permute.xlu0 %2431  ;;  %v2130_v47 = vpack.c.bf16 %v388_v38, %v355_v42  ;;  %v3620_v42 = vld [vmem:[%s3357_s16 + $0x28] sm:$0xff] }
 0x10c   : > { %v2434_v49 = vunpack.i.h.bf16 %v2432_v46  ;;  %v2433_v50 = vunpack.i.l.bf16 %v2432_v46  ;;  %2686 = vrot.lane.b32.xlu1 %v3441_v10, %s4652_s12 }
 0x10d   : > { %2681 = vrot.lane.b32.xlu0 %v3434_v9, %s4654_s14  ;;  %2131 = vmatprep.subr.bf16.mxu1 %v2130_v47  ;;  %v456_v52 = vsel %vm449_vm3, %v2438_v45, %v2439_v44 }
 0x10e   : > { %2133 = vmatpush1.bf16.msra.mxu1 %v2132_v51  ;;  %v3555_v53 = vpop.permute.xlu1 %2446  ;;  %v423_v54 = vsel %vm416_vm2, %v2433_v50, %v2434_v49  ;;  %v3638_v51 = vpack.i.bf16 %v3623_v43, %v3620_v42 }
 0x10f   : > { %v4669_v55 = vunpack.i.l.bf16 %v3555_v53  ;;  %v3560_v56 = vpop.permute.xlu0 %2441  ;;  %v2082_v57 = vpack.c.bf16 %v456_v52, %v423_v54  ;;  %v2449_v58 = vunpack.i.h.bf16 %v3555_v53 }
 0x110   : > { %v4670_v59 = vunpack.i.l.bf16 %v3560_v56  ;;  %1043 = vrot.lane.b32.xlu1 %v3393_v7, %s4652_s12  ;;  %v2444_v60 = vunpack.i.h.bf16 %v3560_v56  ;;  %s3122_s12 = smov 19  }
 0x111   : > { %2691 = vrot.lane.b32.xlu0 %v3441_v10, %s4654_s14  ;;  %2083 = vmatprep.subr.bf16.mxu0 %v2082_v57  ;;  %v457_v61 = vsel %vm449_vm3, %v4669_v55, %v2438_v45  ;;  %v455_v20 = vsel %vm449_vm3, %v2439_v44, %v2449_v58 }
 0x112   : > { %v3573_v62 = vpop.permute.xlu1 %2456  ;;  %v424_v63 = vsel %vm416_vm2, %v4670_v59, %v2433_v50  ;;  %v422_v23 = vsel %vm416_vm2, %v2434_v49, %v2444_v60 }
 0x113   : > { %v4678_v3 = vunpack.i.h.bf16 %v3573_v62  ;;  %v2458_v5 = vunpack.i.l.bf16 %v3573_v62  ;;  %v3581_v8 = vpop.permute.xlu0 %2451  ;;  %v2084_v13 = vpack.c.bf16 %v457_v61, %v424_v63  ;;  %v2136_v39 = vpack.c.bf16 %v455_v20, %v422_v23 }
 0x114   : > { %v4676_v16 = vunpack.i.h.bf16 %v3581_v8  ;;  %v2453_v17 = vunpack.i.l.bf16 %v3581_v8  ;;  %2696 = vrot.lane.b32.xlu1 %v3434_v9, %s3122_s12 }
 0x115   : > { %v3593_v21 = vsel %vm449_vm3, %v2458_v5, %v4678_v3  ;;  %1076 = vrot.lane.b32.xlu0 %v3393_v7, %s4654_s14  ;;  %2085 = vmatpush1.bf16.msra.mxu0 %v2084_v13  ;;  %v454_v22 = vsel %vm449_vm3, %v2449_v58, %v2458_v5  ;;  %s3123_s14 = smov 18  }
 0x116   : > { %v3605_v24 = vsel %vm416_vm2, %v2453_v17, %v4676_v16  ;;  %v2467_v26 = vpop.permute.xlu1 %2466  ;;  %v421_v27 = vsel %vm416_vm2, %v2444_v60, %v2453_v17  ;;  %v3653_v60 = vld [vmem:[#allocation6 + $0x8] sm:$0xff] }
 0x117   : > { %v2469_v28 = vunpack.i.h.bf16 %v2467_v26  ;;  %v2468_v29 = vunpack.i.l.bf16 %v2467_v26  ;;  %v2462_v31 = vpop.permute.xlu0 %2461  ;;  %v2134_v33 = vpack.c.bf16 %v454_v22, %v421_v27  ;;  %2055 = vmatprep.mubr.msk.f32.mxu0 %vm1424_vm6, %v3653_v60  ;;  %2056 = vmatprep.mubr.msk.f32.mxu1 %vm1424_vm6, %v3653_v60 }
 0x118   : > { %v2464_v36 = vunpack.i.h.bf16 %v2462_v31  ;;  %v2463_v38 = vunpack.i.l.bf16 %v2462_v31  ;;  %2706 = vrot.lane.b32.xlu1 %v3441_v10, %s3122_s12 }
 0x119   : > { %2701 = vrot.lane.b32.xlu0 %v3434_v9, %s3123_s14  ;;  %2135 = vmatprep.subr.bf16.mxu1 %v2134_v33  ;;  %v522_v41 = vsel %vm515_vm5, %v2468_v29, %v2469_v28 }
 0x11a   : > { %2137 = vmatpush1.bf16.msra.mxu1 %v2136_v39  ;;  %v3625_v44 = vpop.permute.xlu1 %2476  ;;  %v489_v45 = vsel %vm482_vm4, %v2463_v38, %v2464_v36 }
 0x11b   : > { %v4663_v46 = vunpack.i.l.bf16 %v3625_v44  ;;  %v3630_v47 = vpop.permute.xlu0 %2471  ;;  %v2086_v49 = vpack.c.bf16 %v522_v41, %v489_v45  ;;  %v2479_v9 = vunpack.i.h.bf16 %v3625_v44 }
 0x11c   : > { %v4661_v50 = vunpack.i.l.bf16 %v3630_v47  ;;  %1109 = vrot.lane.b32.xlu1 %v3393_v7, %s3122_s12  ;;  %v2474_v52 = vunpack.i.h.bf16 %v3630_v47 }
 0x11d   : > { %2711 = vrot.lane.b32.xlu0 %v3441_v10, %s3123_s14  ;;  %2087 = vmatprep.subr.bf16.mxu0 %v2086_v49  ;;  %v523_v54 = vsel %vm515_vm5, %v4663_v46, %v2468_v29  ;;  %v521_v20 = vsel %vm515_vm5, %v2469_v28, %v2479_v9 }
 0x11e   : > { %v3647_v57 = vpop.permute.xlu1 %2486  ;;  %v490_v58 = vsel %vm482_vm4, %v4661_v50, %v2463_v38  ;;  %v488_v26 = vsel %vm482_vm4, %v2464_v36, %v2474_v52 }
 0x11f   : > { %v4667_v61 = vunpack.i.h.bf16 %v3647_v57  ;;  %v2488_v10 = vunpack.i.l.bf16 %v3647_v57  ;;  %v3657_v63 = vpop.permute.xlu0 %2481  ;;  %v2088_v5 = vpack.c.bf16 %v523_v54, %v490_v58  ;;  %v2140_v49 = vpack.c.bf16 %v521_v20, %v488_v26 }
 0x120   : > { %v4662_v13 = vunpack.i.h.bf16 %v3657_v63  ;;  %v2483_v17 = vunpack.i.l.bf16 %v3657_v63  ;;  %2716 = vrot.lane.b32.xlu1 %v3638_v51, %s3099_s27  ;;  %s3124_s27 = smov 17  }
 0x121   : > { %v3673_v22 = vsel %vm515_vm5, %v2488_v10, %v4667_v61  ;;  %1142 = vrot.lane.b32.xlu0 %v3393_v7, %s3123_s14  ;;  %2089 = vmatpush1.bf16.msra.mxu0 %v2088_v5  ;;  %v520_v23 = vsel %vm515_vm5, %v2479_v9, %v2488_v10 }
 0x122   : > { %v3685_v27 = vsel %vm482_vm4, %v2483_v17, %v4662_v13  ;;  %v2497_v28 = vpop.permute.xlu1 %2496  ;;  %v487_v29 = vsel %vm482_vm4, %v2474_v52, %v2483_v17 }
 0x123   : > { %v2499_v31 = vunpack.i.h.bf16 %v2497_v28  ;;  %v2498_v33 = vunpack.i.l.bf16 %v2497_v28  ;;  %v2492_v38 = vpop.permute.xlu0 %2491  ;;  %v2138_v39 = vpack.c.bf16 %v520_v23, %v487_v29 }
 0x124   : > { %v2494_v41 = vunpack.i.h.bf16 %v2492_v38  ;;  %v2493_v45 = vunpack.i.l.bf16 %v2492_v38  ;;  %1169 = vrot.lane.b32.xlu1 %v3383_v4, %s3124_s27 }
 0x125   : > { %2721 = vrot.lane.b32.xlu0 %v3638_v51, %s3100_s29  ;;  %2139 = vmatprep.subr.bf16.mxu1 %v2138_v39  ;;  %v588_v9 = vsel %vm581_vm8, %v2498_v33, %v2499_v31  ;;  %s4742_s29 = smov 89  }
 0x126   : > { %2141 = vmatpush1.bf16.msra.mxu1 %v2140_v49  ;;  %v3699_v52 = vpop.permute.xlu1 %2506  ;;  %v555_v54 = vsel %vm548_vm7, %v2493_v45, %v2494_v41 }
 0x127   : > { %v4658_v58 = vunpack.i.l.bf16 %v3699_v52  ;;  %v3704_v10 = vpop.permute.xlu0 %2501  ;;  %v2090_v5 = vpack.c.bf16 %v588_v9, %v555_v54  ;;  %v2509_v17 = vunpack.i.h.bf16 %v3699_v52 }
 0x128   : > { %v4657_v20 = vunpack.i.l.bf16 %v3704_v10  ;;  %1167 = vrot.lane.b32.xlu1 %v3378_v2, %s3124_s27  ;;  %v2504_v23 = vunpack.i.h.bf16 %v3704_v10 }
 0x129   : > { %1171 = vrot.lane.b32.xlu0 %v3372_v0, %s3124_s27  ;;  %2091 = vmatprep.subr.bf16.mxu0 %v2090_v5  ;;  %v589_v26 = vsel %vm581_vm8, %v4658_v58, %v2498_v33  ;;  %v587_v33 = vsel %vm581_vm8, %v2499_v31, %v2509_v17 }
 0x12a   : > { %v3717_v28 = vpop.permute.xlu1 %2516  ;;  %v556_v29 = vsel %vm548_vm7, %v4657_v20, %v2493_v45 }
 0x12b   : > { %v4659_v38 = vunpack.i.h.bf16 %v3717_v28  ;;  %v2518_v39 = vunpack.i.l.bf16 %v3717_v28  ;;  %v3725_v49 = vpop.permute.xlu0 %2511  ;;  %v2092_v9 = vpack.c.bf16 %v589_v26, %v556_v29  ;;  %v554_v29 = vsel %vm548_vm7, %v2494_v41, %v2504_v23 }
 0x12c   : > { %v4660_v54 = vunpack.i.h.bf16 %v3725_v49  ;;  %v2513_v5 = vunpack.i.l.bf16 %v3725_v49  ;;  %2731 = vrot.lane.b32.xlu1 %v3638_v51, %s3101_s17  ;;  %s4743_s17 = smov 9  }
 0x12d   : > { %v3737_v45 = vsel %vm581_vm8, %v2518_v39, %v4659_v38  ;;  %2726 = vrot.lane.b32.xlu0 %v3638_v51, %s3102_s9  ;;  %2093 = vmatpush1.bf16.msra.mxu0 %v2092_v9  ;;  %v586_v26 = vsel %vm581_vm8, %v2509_v17, %v2518_v39  ;;  %s4744_s9 = smov 10  }
 0x12e   : > { %v3749_v31 = vsel %vm548_vm7, %v2513_v5, %v4660_v54  ;;  %v2527_v11 = vpop.permute.xlu1 %2526  ;;  %v553_v20 = vsel %vm548_vm7, %v2504_v23, %v2513_v5  ;;  %v2144_v54 = vpack.c.bf16 %v587_v33, %v554_v29 }
 0x12f   : > { %v2529_v9 = vunpack.i.h.bf16 %v2527_v11  ;;  %v2528_v36 = vunpack.i.l.bf16 %v2527_v11  ;;  %v2522_v17 = vpop.permute.xlu0 %2521  ;;  %v2142_v39 = vpack.c.bf16 %v586_v26, %v553_v20 }
 0x130   : > { %v2524_v58 = vunpack.i.h.bf16 %v2522_v17  ;;  %v2523_v38 = vunpack.i.l.bf16 %v2522_v17  ;;  %1175 = vrot.lane.b32.xlu1 %v3393_v7, %s3124_s27 }
 0x131   : > { %1173 = vrot.lane.b32.xlu0 %v3390_v6, %s3124_s27  ;;  %2143 = vmatprep.subr.bf16.mxu1 %v2142_v39  ;;  %v654_v23 = vsel %vm647_vm10, %v2528_v36, %v2529_v9 }
 0x132   : > { %2145 = vmatpush1.bf16.msra.mxu1 %v2144_v54  ;;  %v3763_v11 = vpop.permute.xlu1 %2536  ;;  %v621_v20 = vsel %vm614_vm9, %v2523_v38, %v2524_v58 }
 0x133   : > { %v4665_v5 = vunpack.i.l.bf16 %v3763_v11  ;;  %v3768_v26 = vpop.permute.xlu0 %2531  ;;  %v2094_v17 = vpack.c.bf16 %v654_v23, %v621_v20  ;;  %v2539_v7 = vunpack.i.h.bf16 %v3763_v11 }
 0x134   : > { %v4664_v33 = vunpack.i.l.bf16 %v3768_v26  ;;  %2741 = vrot.lane.b32.xlu1 %v3638_v51, %s3103_s20  ;;  %v2534_v29 = vunpack.i.h.bf16 %v3768_v26  ;;  %s4745_s20 = smov 127  }
 0x135   : > { %2736 = vrot.lane.b32.xlu0 %v3638_v51, %s3104_s7  ;;  %2095 = vmatprep.subr.bf16.mxu0 %v2094_v17  ;;  %v655_v54 = vsel %vm647_vm10, %v4665_v5, %v2528_v36  ;;  %v653_v36 = vsel %vm647_vm10, %v2529_v9, %v2539_v7  ;;  %s4746_s7 = smov 1  }
 0x136   : > { %v3781_v39 = vpop.permute.xlu1 %2546  ;;  %v622_v23 = vsel %vm614_vm9, %v4664_v33, %v2523_v38 }
 0x137   : > { %v4666_v20 = vunpack.i.h.bf16 %v3781_v39  ;;  %v2548_v41 = vunpack.i.l.bf16 %v3781_v39  ;;  %v3789_v50 = vpop.permute.xlu0 %2541  ;;  %v2096_v13 = vpack.c.bf16 %v655_v54, %v622_v23  ;;  %v620_v23 = vsel %vm614_vm9, %v2524_v58, %v2534_v29 }
 0x138   : > { %v4668_v17 = vunpack.i.h.bf16 %v3789_v50  ;;  %v2543_v46 = vunpack.i.l.bf16 %v3789_v50  ;;  %2751 = vrot.lane.b32.xlu1 %v3638_v51, %s3105_s13  ;;  %s4747_s13 = smov 119  }
 0x139   : > { %v3801_v38 = vsel %vm647_vm10, %v2548_v41, %v4666_v20  ;;  %2746 = vrot.lane.b32.xlu0 %v3638_v51, %s3106_s19  ;;  %2097 = vmatpush1.bf16.msra.mxu0 %v2096_v13  ;;  %v652_v54 = vsel %vm647_vm10, %v2539_v7, %v2548_v41  ;;  %s4748_s19 = smov 118  }
 0x13a   : > { %v3813_v9 = vsel %vm614_vm9, %v2543_v46, %v4668_v17  ;;  %v2557_v33 = vpop.permute.xlu1 %2556  ;;  %v619_v5 = vsel %vm614_vm9, %v2534_v29, %v2543_v46  ;;  %v2148_v17 = vpack.c.bf16 %v653_v36, %v620_v23 }
 0x13b   : > { %v2559_v41 = vunpack.i.h.bf16 %v2557_v33  ;;  %v2558_v7 = vunpack.i.l.bf16 %v2557_v33  ;;  %v2552_v58 = vpop.permute.xlu0 %2551  ;;  %v2146_v20 = vpack.c.bf16 %v652_v54, %v619_v5 }
 0x13c   : > { %v2554_v61 = vunpack.i.h.bf16 %v2552_v58  ;;  %v2553_v34 = vunpack.i.l.bf16 %v2552_v58  ;;  %2761 = vrot.lane.b32.xlu1 %v3638_v51, %s3107_s30  ;;  %s4752_s30 = smov 39  }
 0x13d   : > { %2756 = vrot.lane.b32.xlu0 %v3638_v51, %s4742_s29  ;;  %2147 = vmatprep.subr.bf16.mxu1 %v2146_v20  ;;  %v720_v46 = vsel %vm713_vm12, %v2558_v7, %v2559_v41  ;;  %s4760_s29 = smov 28  }
 0x13e   : > { %2149 = vmatpush1.bf16.msra.mxu1 %v2148_v17  ;;  %v3827_v29 = vpop.permute.xlu1 %2566  ;;  %v687_v33 = vsel %vm4708_vm11, %v2553_v34, %v2554_v61 }
 0x13f   : > { %v4674_v5 = vunpack.i.l.bf16 %v3827_v29  ;;  %v3832_v54 = vpop.permute.xlu0 %2561  ;;  %v2098_v58 = vpack.c.bf16 %v720_v46, %v687_v33  ;;  %v2569_v36 = vunpack.i.h.bf16 %v3827_v29 }
 0x140   : > { %v4673_v23 = vunpack.i.l.bf16 %v3832_v54  ;;  %2771 = vrot.lane.b32.xlu1 %v3638_v51, %s4743_s17  ;;  %v2564_v20 = vunpack.i.h.bf16 %v3832_v54  ;;  %s4762_s17 = smov 27  }
 0x141   : > { %2766 = vrot.lane.b32.xlu0 %v3638_v51, %s4744_s9  ;;  %2099 = vmatprep.subr.bf16.mxu0 %v2098_v58  ;;  %v721_v17 = vsel %vm713_vm12, %v4674_v5, %v2558_v7  ;;  %v719_v7 = vsel %vm713_vm12, %v2559_v41, %v2569_v36 }
 0x142   : > { %v3845_v13 = vpop.permute.xlu1 %2576  ;;  %v688_v46 = vsel %vm4708_vm11, %v4673_v23, %v2553_v34 }
 0x143   : > { %v4675_v33 = vunpack.i.h.bf16 %v3845_v13  ;;  %v2578_v55 = vunpack.i.l.bf16 %v3845_v13  ;;  %v3853_v59 = vpop.permute.xlu0 %2571  ;;  %v2100_v15 = vpack.c.bf16 %v721_v17, %v688_v46  ;;  %v686_v46 = vsel %vm4708_vm11, %v2554_v61, %v2564_v20 }
 0x144   : > { %v4677_v58 = vunpack.i.h.bf16 %v3853_v59  ;;  %v2573_v19 = vunpack.i.l.bf16 %v3853_v59  ;;  %2781 = vrot.lane.b32.xlu1 %v3638_v51, %s4745_s20 }
 0x145   : > { %v3865_v34 = vsel %vm713_vm12, %v2578_v55, %v4675_v33  ;;  %2776 = vrot.lane.b32.xlu0 %v3638_v51, %s4746_s7  ;;  %2101 = vmatpush1.bf16.msra.mxu0 %v2100_v15  ;;  %v718_v17 = vsel %vm713_vm12, %v2569_v36, %v2578_v55 }
 0x146   : > { %v3877_v41 = vsel %vm4708_vm11, %v2573_v19, %v4677_v58  ;;  %v3879_v23 = vpop.permute.xlu1 %2586  ;;  %v685_v5 = vsel %vm4708_vm11, %v2564_v20, %v2573_v19  ;;  %v2152_v58 = vpack.c.bf16 %v719_v7, %v686_v46  ;;  %vm4723_vm11 = vcmp.lt.s32.totalorder %v3483_v14, 27 }
 0x147   : > { %v4679_v33 = vunpack.i.l.bf16 %v3879_v23  ;;  %v2582_v55 = vpop.permute.xlu0 %2581  ;;  %v2150_v36 = vpack.c.bf16 %v718_v17, %v685_v5  ;;  %v2589_v3 = vunpack.i.h.bf16 %v3879_v23 }
 0x148   : > { %v2584_v61 = vunpack.i.h.bf16 %v2582_v55  ;;  %v2583_v16 = vunpack.i.l.bf16 %v2582_v55  ;;  %785 = vrot.lane.b32.xlu1 %v3375_v1, %s4745_s20 }
 0x149   : > { %2786 = vrot.lane.b32.xlu0 %v3638_v51, %s4747_s13  ;;  %2151 = vmatprep.subr.bf16.mxu1 %v2150_v36 }
 0x14a   : > { %2153 = vmatpush1.bf16.msra.mxu1 %v2152_v58  ;;  %v2597_v19 = vpop.permute.xlu1 %2596  ;;  %v753_v20 = vsel %vm4684_vm13, %v2583_v16, %v2584_v61  ;;  %v754_v5 = vsel %vm4684_vm13, %v4679_v33, %v2583_v16  ;;  %v752_v16 = vsel %vm4684_vm13, %v2584_v61, %v2589_v3 }
 0x14b   : > { %v3898_v17 = vpop.permute.xlu0 %2591  ;;  %v2102_v7 = vpack.c.bf16 %v3383_v4, %v753_v20  ;;  %v2104_v46 = vpack.c.bf16 %v3378_v2, %v754_v5  ;;  %v2599_v55 = vunpack.i.h.bf16 %v2597_v19  ;;  %v2598_v15 = vunpack.i.l.bf16 %v2597_v19 }
 0x14c   : > { %v4680_v36 = vunpack.i.h.bf16 %v3898_v17  ;;  %v2593_v58 = vunpack.i.l.bf16 %v3898_v17  ;;  %2791 = vrot.lane.b32.xlu1 %v3638_v51, %s4748_s19  ;;  %v2156_v33 = vpack.c.bf16 %v3372_v0, %v752_v16 }
 0x14d   : > { %818 = vrot.lane.b32.xlu0 %v3375_v1, %s4747_s13  ;;  %2103 = vmatprep.subr.bf16.mxu0 %v2102_v7  ;;  %s1828_s13 = scalar_lea.sflag [#allocation5], %s3353_s10 }
 0x14e   : > { %v3915_v2 = vsel %vm4684_vm13, %v2593_v58, %v4680_v36  ;;  %2105 = vmatpush1.bf16.msra.mxu0 %v2104_v46  ;;  %v3917_v4 = vpop.permute.xlu1 %2606  ;;  %v751_v19 = vsel %vm4684_vm13, %v2589_v3, %v2593_v58  ;;  %v793_v46 = vsel %vm4692_vm14, %v2598_v15, %v2599_v55  ;;  %vm4700_vm13 = vcmp.lt.s32.totalorder %v3483_v14, 118 }
 0x14f   : > { %4749 = vst [vmem:[#allocation20_spill] sm:$0xff] %v3917_v4  ;;  %v2602_v20 = vpop.permute.xlu0 %2601  ;;  %v2154_v5 = vpack.c.bf16 %v3390_v6, %v751_v19  ;;  %v4687_v3 = vunpack.i.l.bf16 %v3917_v4 }
 0x150   : > { %v2604_v61 = vunpack.i.h.bf16 %v2602_v20  ;;  %v2603_v7 = vunpack.i.l.bf16 %v2602_v20  ;;  %851 = vrot.lane.b32.xlu1 %v3375_v1, %s4748_s19 }
 0x151   : > { %2796 = vrot.lane.b32.xlu0 %v3638_v51, %s3115_s26  ;;  %2155 = vmatprep.subr.bf16.mxu1 %v2154_v5  ;;  %v2609_v5 = vunpack.i.h.bf16 %v3917_v4  ;;  %v794_v36 = vsel %vm4692_vm14, %v4687_v3, %v2598_v15 }
 0x152   : > { %2157 = vmatpush1.bf16.msra.mxu1 %v2156_v33  ;;  %v3931_v6 = vpop.permute.xlu1 %779  ;;  %v826_v58 = vsel %vm4685_vm15, %v2603_v7, %v2604_v61 }
 0x153   : > { %4750 = vst [vmem:[#allocation21_spill] sm:$0xff] %v3931_v6  ;;  %v3935_v19 = vpop.permute.xlu0 %2611  ;;  %v2106_v20 = vpack.c.bf16 %v826_v58, %v793_v46 }
 0x154   : > { %4751 = vst [vmem:[#allocation22_spill] sm:$0xff] %v3935_v19  ;;  %v2614_v0 = vunpack.i.h.bf16 %v3935_v19  ;;  %v4686_v16 = vunpack.i.l.bf16 %v3935_v19  ;;  %2801 = vrot.lane.b32.xlu1 %v3638_v51, %s4752_s30 }
 0x155   : > { %884 = vrot.lane.b32.xlu0 %v3375_v1, %s3115_s26  ;;  %2107 = vmatprep.subr.bf16.mxu0 %v2106_v20  ;;  %v791_v20 = vsel %vm4692_vm14, %v2609_v5, %v3931_v6  ;;  %s4755_s26 = smov 37  }
 0x156   : > { %v2617_v33 = vpop.permute.xlu1 %2616  ;;  %v827_v46 = vsel %vm4685_vm15, %v4686_v16, %v2603_v7  ;;  %v825_v35 = vsel %vm4685_vm15, %v2604_v61, %v2614_v0 }
 0x157   : > { %v3952_v58 = vpop.permute.xlu0 %812  ;;  %v2108_v48 = vpack.c.bf16 %v827_v46, %v794_v36  ;;  %v2619_v30 = vunpack.i.h.bf16 %v2617_v33  ;;  %v2618_v4 = vunpack.i.l.bf16 %v2617_v33  ;;  %v792_v36 = vsel %vm4692_vm14, %v2599_v55, %v2609_v5 }
 0x158   : > { %4753 = vst [vmem:[#allocation23_spill] sm:$0xff] %v3952_v58  ;;  %v824_v15 = vsel %vm4685_vm15, %v2614_v0, %v3952_v58  ;;  %917 = vrot.lane.b32.xlu1 %v3375_v1, %s4752_s30  ;;  %v2160_v33 = vpack.c.bf16 %v825_v35, %v792_v36  ;;  %vm4693_vm15 = vcmp.lt.s32.totalorder %v3483_v14, 117  ;;  %vm4707_vm14 = vcmp.lt.s32.totalorder %v3483_v14, 39  ;;  %s3126_s30 = smov [#allocation11]  }
 0x159   : > { %v2158_v7 = vpack.c.bf16 %v824_v15, %v791_v20  ;;  %2806 = vrot.lane.b32.xlu0 %v3638_v51, %s3117_s15  ;;  %2109 = vmatpush1.bf16.msra.mxu0 %v2108_v48  ;;  %v859_v48 = vsel %vm4700_vm13, %v2618_v4, %v2619_v30  ;;  %v3977_v20 = vld [vmem:[%s3357_s16 + $0x38] sm:$0xff] }
 0x15a   : > { %v3969_v61 = vpop.permute.xlu1 %2626 }
 0x15b   : > { %4754 = vst [vmem:[#allocation24_spill] sm:$0xff] %v3969_v61  ;;  %v2622_v46 = vpop.permute.xlu0 %2621  ;;  %2159 = vmatprep.subr.bf16.mxu1 %v2158_v7  ;;  %v4695_v35 = vunpack.i.l.bf16 %v3969_v61 }
 0x15c   : > { %v2624_v0 = vunpack.i.h.bf16 %v2622_v46  ;;  %v2623_v1 = vunpack.i.l.bf16 %v2622_v46  ;;  %2161 = vmatpush1.bf16.msra.mxu1 %v2160_v33  ;;  %2811 = vrot.lane.b32.xlu1 %v3638_v51, %s4755_s26  ;;  %v2629_v46 = vunpack.i.h.bf16 %v3969_v61 }
 0x15d   : > { %950 = vrot.lane.b32.xlu0 %v3977_v20, %s3117_s15  ;;  %s4758_s15 = smov 29   ;;  %v860_v3 = vsel %vm4700_vm13, %v4695_v35, %v2618_v4 }
 0x15e   : > { %v3982_v55 = vpop.permute.xlu1 %845  ;;  %v892_v5 = vsel %vm4693_vm15, %v2623_v1, %v2624_v0 }
 0x15f   : > { %4756 = vst [vmem:[#allocation25_spill] sm:$0xff] %v3982_v55  ;;  %v3986_v15 = vpop.permute.xlu0 %2631  ;;  %v2110_v7 = vpack.c.bf16 %v892_v5, %v859_v48 }
 0x160   : > { %4757 = vst [vmem:[#allocation26_spill] sm:$0xff] %v3986_v15  ;;  %v2634_v36 = vunpack.i.h.bf16 %v3986_v15  ;;  %v4694_v33 = vunpack.i.l.bf16 %v3986_v15  ;;  %983 = vrot.lane.b32.xlu1 %v3977_v20, %s4755_s26  ;;  %s2963_s26 = sshll.u32 %s3126_s30, 4  ;;  %s2964_s26 = int_to_ptr.vmem [resolvable:$false] %s2963_s26 }
 0x161   : > { %2816 = vrot.lane.b32.xlu0 %v3638_v51, %s4758_s15  ;;  %2111 = vmatprep.subr.bf16.mxu0 %v2110_v7  ;;  %v857_v7 = vsel %vm4700_vm13, %v2629_v46, %v3982_v55 }
 0x162   : > { %v2637_v16 = vpop.permute.xlu1 %2636  ;;  %v893_v48 = vsel %vm4693_vm15, %v4694_v33, %v2623_v1  ;;  %v891_v58 = vsel %vm4693_vm15, %v2624_v0, %v2634_v36 }
 0x163   : > { %v4003_v5 = vpop.permute.xlu0 %878  ;;  %v2112_v19 = vpack.c.bf16 %v893_v48, %v860_v3  ;;  %v2639_v6 = vunpack.i.h.bf16 %v2637_v16  ;;  %v2638_v61 = vunpack.i.l.bf16 %v2637_v16  ;;  %v858_v3 = vsel %vm4700_vm13, %v2619_v30, %v2629_v46 }
 0x164   : > { %4759 = vst [vmem:[#allocation27_spill] sm:$0xff] %v4003_v5  ;;  %v890_v4 = vsel %vm4693_vm15, %v2634_v36, %v4003_v5  ;;  %2821 = vrot.lane.b32.xlu1 %v3638_v51, %s4760_s29  ;;  %v2164_v16 = vpack.c.bf16 %v891_v58, %v858_v3  ;;  %vm4702_vm15 = vcmp.lt.s32.totalorder %v3483_v14, 38  ;;  %vm4715_vm13 = vcmp.lt.s32.totalorder %v3483_v14, 37 }
 0x165   : > { %v2162_v1 = vpack.c.bf16 %v890_v4, %v857_v7  ;;  %1016 = vrot.lane.b32.xlu0 %v3977_v20, %s4758_s15  ;;  %2113 = vmatpush1.bf16.msra.mxu0 %v2112_v19  ;;  %v925_v19 = vsel %vm4707_vm14, %v2638_v61, %v2639_v6  ;;  %s2965_s15 = scalar_lea.vmem %s2964_s26, 1024 }
 0x166   : > { %v4020_v0 = vpop.permute.xlu1 %2646 }
 0x167   : > { %4761 = vst [vmem:[#allocation28_spill] sm:$0xff] %v4020_v0  ;;  %v2642_v48 = vpop.permute.xlu0 %2641  ;;  %2163 = vmatprep.subr.bf16.mxu1 %v2162_v1  ;;  %v4703_v30 = vunpack.i.l.bf16 %v4020_v0 }
 0x168   : > { %v2644_v36 = vunpack.i.h.bf16 %v2642_v48  ;;  %v2643_v33 = vunpack.i.l.bf16 %v2642_v48  ;;  %2165 = vmatpush1.bf16.msra.mxu1 %v2164_v16  ;;  %1049 = vrot.lane.b32.xlu1 %v3977_v20, %s4760_s29  ;;  %v2649_v16 = vunpack.i.h.bf16 %v4020_v0 }
 0x169   : > { %2826 = vrot.lane.b32.xlu0 %v3638_v51, %s4762_s17  ;;  %v926_v35 = vsel %vm4707_vm14, %v4703_v30, %v2638_v61 }
 0x16a   : > { %v4030_v46 = vpop.permute.xlu1 %911  ;;  %v958_v58 = vsel %vm4702_vm15, %v2643_v33, %v2644_v36 }
 0x16b   : > { %v4034_v7 = vpop.permute.xlu0 %2651  ;;  %v2114_v4 = vpack.c.bf16 %v958_v58, %v925_v19 }
 0x16c   : > { %4763 = vst [vmem:[#allocation29_spill] sm:$0xff] %v4034_v7  ;;  %v2654_v1 = vunpack.i.h.bf16 %v4034_v7  ;;  %v4701_v3 = vunpack.i.l.bf16 %v4034_v7  ;;  %2831 = vrot.lane.b32.xlu1 %v3638_v51, %s3122_s12 }
 0x16d   : > { %1082 = vrot.lane.b32.xlu0 %v3977_v20, %s4762_s17  ;;  %2115 = vmatprep.subr.bf16.mxu0 %v2114_v4  ;;  %v923_v4 = vsel %vm4707_vm14, %v2649_v16, %v4030_v46 }
 0x16e   : > { %v2657_v48 = vpop.permute.xlu1 %2656  ;;  %v959_v19 = vsel %vm4702_vm15, %v4701_v3, %v2643_v33  ;;  %v957_v5 = vsel %vm4702_vm15, %v2644_v36, %v2654_v1 }
 0x16f   : > { %v4051_v58 = vpop.permute.xlu0 %944  ;;  %v2116_v15 = vpack.c.bf16 %v959_v19, %v926_v35  ;;  %v2659_v55 = vunpack.i.h.bf16 %v2657_v48  ;;  %v2658_v0 = vunpack.i.l.bf16 %v2657_v48  ;;  %v924_v35 = vsel %vm4707_vm14, %v2639_v6, %v2649_v16 }
 0x170   : > { %v956_v61 = vsel %vm4702_vm15, %v2654_v1, %v4051_v58  ;;  %1115 = vrot.lane.b32.xlu1 %v3977_v20, %s3122_s12  ;;  %v2168_v48 = vpack.c.bf16 %v957_v5, %v924_v35  ;;  %v3125_v19 = vmov 0   ;;  %vm4714_vm15 = vcmp.lt.s32.totalorder %v3483_v14, 29  ;;  %s2077_s12 = sshll.u32 %s3185_s25, 9 }
 0x171   : > { %v2166_v33 = vpack.c.bf16 %v956_v61, %v923_v4  ;;  %2836 = vrot.lane.b32.xlu0 %v3638_v51, %s3123_s14  ;;  %2117 = vmatpush1.bf16.msra.mxu0 %v2116_v15  ;;  %v991_v51 = vsel %vm4715_vm13, %v2658_v0, %v2659_v55  ;;  %vm1051_vm14 = vcmp.lt.s32.totalorder %v3483_v14, 28  ;;  %s4515_s20 = scalar_lea.hbm %s4629_s4, %s2077_s12 }
 0x172   : > { %v4068_v36 = vpop.permute.xlu1 %2666  ;;  %2840 = vset.pattern.permute.xlu0 %v3125_v19 }
 0x173   : > { %4764 = vst [vmem:[#allocation30_spill] sm:$0xff] %v4068_v36  ;;  %v2662_v3 = vpop.permute.xlu0 %2661  ;;  %2167 = vmatprep.subr.bf16.mxu1 %v2166_v33  ;;  %v4706_v6 = vunpack.i.l.bf16 %v4068_v36  ;;  %v2669_v33 = vunpack.i.h.bf16 %v4068_v36 }
 0x174   : > { %v2664_v1 = vunpack.i.h.bf16 %v2662_v3  ;;  %v2663_v4 = vunpack.i.l.bf16 %v2662_v3  ;;  %2169 = vmatpush1.bf16.msra.mxu1 %v2168_v48  ;;  %1177 = vrot.lane.b32.xlu1 %v3620_v42, %s3124_s27 }
 0x175   : > { %1148 = vrot.lane.b32.xlu0 %v3977_v20, %s3123_s14  ;;  %v992_v48 = vsel %vm4715_vm13, %v4706_v6, %v2658_v0 }
 0x176   : > { %v4078_v15 = vpop.permute.xlu1 %977  ;;  %v1024_v5 = vsel %vm4714_vm15, %v2663_v4, %v2664_v1 }
 0x177   : > { %v4082_v16 = vpop.permute.xlu0 %2671  ;;  %v2118_v3 = vpack.c.bf16 %v1024_v5, %v991_v51  ;;  %v1418_v51 = vld [vmem:[#allocation8] sm:$0xff] }
 0x178   : > { %4765 = vst [vmem:[#allocation31_spill] sm:$0xff] %v4082_v16  ;;  %v2674_v61 = vunpack.i.h.bf16 %v4082_v16  ;;  %v4709_v42 = vunpack.i.l.bf16 %v4082_v16  ;;  %1181 = vrot.lane.b32.xlu1 %v3977_v20, %s3124_s27 }
 0x179   : > { %1179 = vrot.lane.b32.xlu0 %v3623_v43, %s3124_s27  ;;  %2119 = vmatprep.subr.bf16.mxu0 %v2118_v3  ;;  %v989_v43 = vsel %vm4715_vm13, %v2669_v33, %v4078_v15 }
 0x17a   : > { %v2677_v35 = vpop.permute.xlu1 %2676  ;;  %v1025_v19 = vsel %vm4714_vm15, %v4709_v42, %v2663_v4  ;;  %v1023_v7 = vsel %vm4714_vm15, %v2664_v1, %v2674_v61  ;;  %v990_v4 = vsel %vm4715_vm13, %v2659_v55, %v2669_v33  ;;  %vm1150_vm13 = vcmp.lt.s32.totalorder %v3483_v14, 18 }
 0x17b   : > { %v4099_v5 = vpop.permute.xlu0 %1010  ;;  %v2120_v30 = vpack.c.bf16 %v1025_v19, %v992_v48  ;;  %v2679_v3 = vunpack.i.h.bf16 %v2677_v35  ;;  %v2678_v36 = vunpack.i.l.bf16 %v2677_v35  ;;  %v2172_v1 = vpack.c.bf16 %v1023_v7, %v990_v4 }
 0x17c   : > { %4766 = vst [vmem:[#allocation32_spill] sm:$0xff] %v4099_v5  ;;  %v1022_v0 = vsel %vm4714_vm15, %v2674_v61, %v4099_v5  ;;  %vm1117_vm15 = vcmp.lt.s32.totalorder %v3483_v14, 19 }
 0x17d   : > { %v2170_v6 = vpack.c.bf16 %v1022_v0, %v989_v43  ;;  %2121 = vmatpush1.bf16.msra.mxu0 %v2120_v30  ;;  %1421 = vperm.xlu0 %2840, %v1418_v51   ;;  %v1057_v61 = vsel %vm1051_vm14, %v2678_v36, %v2679_v3 }
 0x17e   : > { %v4112_v48 = vpop.permute.xlu1 %2686 }
 0x17f   : > { %4767 = vst [vmem:[#allocation33_spill] sm:$0xff] %v4112_v48  ;;  %v2682_v19 = vpop.permute.xlu0 %2681  ;;  %2171 = vmatprep.subr.bf16.mxu1 %v2170_v6  ;;  %v4713_v30 = vunpack.i.l.bf16 %v4112_v48  ;;  %v2689_v0 = vunpack.i.h.bf16 %v4112_v48 }
 0x180   : > { %v2684_v35 = vunpack.i.h.bf16 %v2682_v19  ;;  %v2683_v42 = vunpack.i.l.bf16 %v2682_v19  ;;  %2173 = vmatpush1.bf16.msra.mxu1 %v2172_v1 }
 0x181   : > { %v1058_v1 = vsel %vm1051_vm14, %v4713_v30, %v2678_v36 }
 0x182   : > { %v4118_v43 = vpop.permute.xlu1 %1043  ;;  %v1090_v55 = vsel %vm4723_vm11, %v2683_v42, %v2684_v35 }
 0x183   : > { %4768 = vst [vmem:[#allocation34_spill] sm:$0xff] %v4118_v43  ;;  %v4122_v33 = vpop.permute.xlu0 %2691  ;;  %v2122_v7 = vpack.c.bf16 %v1090_v55, %v1057_v61 }
 0x184   : > { %4769 = vst [vmem:[#allocation35_spill] sm:$0xff] %v4122_v33  ;;  %v2694_v6 = vunpack.i.h.bf16 %v4122_v33  ;;  %v4716_v51 = vunpack.i.l.bf16 %v4122_v33 }
 0x185   : > { %2123 = vmatprep.subr.bf16.mxu0 %v2122_v7  ;;  %v1055_v7 = vsel %vm1051_vm14, %v2689_v0, %v4118_v43 }
 0x186   : > { %v2697_v4 = vpop.permute.xlu1 %2696  ;;  %v1091_v19 = vsel %vm4723_vm11, %v4716_v51, %v2683_v42  ;;  %v1089_v55 = vsel %vm4723_vm11, %v2684_v35, %v2694_v6  ;;  %v1056_v42 = vsel %vm1051_vm14, %v2679_v3, %v2689_v0 }
 0x187   : > { %v4135_v16 = vpop.permute.xlu0 %1076  ;;  %v2124_v61 = vpack.c.bf16 %v1091_v19, %v1058_v1  ;;  %v2699_v5 = vunpack.i.h.bf16 %v2697_v4  ;;  %v2698_v48 = vunpack.i.l.bf16 %v2697_v4  ;;  %v2176_v35 = vpack.c.bf16 %v1089_v55, %v1056_v42 }
 0x188   : > { %4770 = vst [vmem:[#allocation36_spill] sm:$0xff] %v4135_v16  ;;  %v1088_v36 = vsel %vm4723_vm11, %v2694_v6, %v4135_v16  ;;  %vm1183_vm11 = vcmp.lt.s32.totalorder %v3483_v14, 17 }
 0x189   : > { %v2174_v30 = vpack.c.bf16 %v1088_v36, %v1055_v7  ;;  %2125 = vmatpush1.bf16.msra.mxu0 %v2124_v61  ;;  %v1123_v6 = vsel %vm1117_vm15, %v2698_v48, %v2699_v5 }
 0x18a   : > { %v4148_v1 = vpop.permute.xlu1 %2706 }
 0x18b   : > { %4771 = vst [vmem:[#allocation37_spill] sm:$0xff] %v4148_v1  ;;  %v2702_v19 = vpop.permute.xlu0 %2701  ;;  %2175 = vmatprep.subr.bf16.mxu1 %v2174_v30  ;;  %v4720_v61 = vunpack.i.l.bf16 %v4148_v1  ;;  %v2709_v42 = vunpack.i.h.bf16 %v4148_v1 }
 0x18c   : > { %v2704_v51 = vunpack.i.h.bf16 %v2702_v19  ;;  %v2703_v4 = vunpack.i.l.bf16 %v2702_v19  ;;  %2177 = vmatpush1.bf16.msra.mxu1 %v2176_v35 }
 0x18d   : > { %v1124_v19 = vsel %vm1117_vm15, %v4720_v61, %v2698_v48  ;;  %v1122_v61 = vsel %vm1117_vm15, %v2699_v5, %v2709_v42 }
 0x18e   : > { %v4154_v7 = vpop.permute.xlu1 %1109  ;;  %v1156_v3 = vsel %vm1150_vm13, %v2703_v4, %v2704_v51 }
 0x18f   : > { %4772 = vst [vmem:[#allocation38_spill] sm:$0xff] %v4154_v7  ;;  %v4158_v0 = vpop.permute.xlu0 %2711  ;;  %v2126_v55 = vpack.c.bf16 %v1156_v3, %v1123_v6 }
 0x190   : > { %4773 = vst [vmem:[#allocation39_spill] sm:$0xff] %v4158_v0  ;;  %v2714_v30 = vunpack.i.h.bf16 %v4158_v0  ;;  %v4721_v36 = vunpack.i.l.bf16 %v4158_v0 }
 0x191   : > { %2127 = vmatprep.subr.bf16.mxu0 %v2126_v55  ;;  %v1121_v55 = vsel %vm1117_vm15, %v2709_v42, %v4154_v7  ;;  %v4776_v7 = vunpack.i.h.bf16 %v3501_v25  ;;  %v4777_v42 = vunpack.i.h.bf16 %v3517_v32  ;;  %v4778_v32 = vpack.c.bf16 %v3527_v37, %v3540_v40 }
 0x192   : > { %v2717_v35 = vpop.permute.xlu1 %2716  ;;  %v1157_v33 = vsel %vm1150_vm13, %v4721_v36, %v2703_v4  ;;  %v1155_v3 = vsel %vm1150_vm13, %v2704_v51, %v2714_v30 }
 0x193   : > { %v4171_v16 = vpop.permute.xlu0 %1142  ;;  %v2128_v6 = vpack.c.bf16 %v1157_v33, %v1124_v19  ;;  %v2180_v36 = vpack.c.bf16 %v1155_v3, %v1122_v61  ;;  %v2718_v33 = vunpack.i.l.bf16 %v2717_v35 }
 0x194   : > { %4774 = vst [vmem:[#allocation40_spill] sm:$0xff] %v4171_v16  ;;  %v1154_v1 = vsel %vm1150_vm13, %v2714_v30, %v4171_v16 }
 0x195   : > { %v2178_v48 = vpack.c.bf16 %v1154_v1, %v1121_v55  ;;  %2129 = vmatpush1.bf16.msra.mxu0 %v2128_v6  ;;  %v4199_v6 = vld [vmem:[#allocation6] sm:$0xff]  ;;  %v2719_v55 = vunpack.i.h.bf16 %v2717_v35 }
 0x196   : > { %v1170_v4 = vpop.permute.xlu1 %1169 }
 0x197   : > { %v2722_v0 = vpop.permute.xlu0 %2721  ;;  %2179 = vmatprep.subr.bf16.mxu1 %v2178_v48  ;;  %v352_v40 = vsel %vm350_vm1, %v2718_v33, %v2719_v55 }
 0x198   : > { %v2723_v19 = vunpack.i.l.bf16 %v2722_v0  ;;  %2181 = vmatpush1.bf16.msra.mxu1 %v2180_v36  ;;  %v353_v36 = vsel %vm350_vm1, %v4777_v42, %v2718_v33  ;;  %v2724_v3 = vunpack.i.h.bf16 %v2722_v0  ;;  %v4779_v0 = vunpack.i.h.bf16 %v3573_v62 }
 0x19a   : > { %v4184_v51 = vpop.permute.xlu1 %1167  ;;  %v386_v1 = vsel %vm383_vm0, %v4776_v7, %v2723_v19  ;;  %v385_v62 = vsel %vm383_vm0, %v2723_v19, %v2724_v3  ;;  %v4784_v19 = vunpack.i.l.bf16 %v3555_v53 }
 0x19b   : > { %4775 = vst [vmem:[#allocation41_spill] sm:$0xff] %v4184_v51  ;;  %v1172_v30 = vpop.permute.xlu0 %1171  ;;  %v1190_v5 = vsel %vm1183_vm11, %v4184_v51, %v1170_v4  ;;  %v2182_v25 = vpack.c.bf16 %v386_v1, %v353_v36 }
 0x19c   : > { %v1189_v61 = vsel %vm1183_vm11, %v1170_v4, %v1172_v30 }
 0x19d   : > { %1480 = vmatprep.subr.mxu0 %v1189_v61 }
 0x19e   : > { %1481 = vmatpush1.msra.mxu0 %v1190_v5  ;;  %v2732_v7 = vpop.permute.xlu1 %2731  ;;  %v4780_v5 = vunpack.i.h.bf16 %v3581_v8 }
 0x19f   : > { %v2733_v48 = vunpack.i.l.bf16 %v2732_v7  ;;  %v2727_v16 = vpop.permute.xlu0 %2726  ;;  %2183 = vmatprep.subr.bf16.mxu0 %v2182_v25  ;;  %1493 = vmatmul.mubr.f32.vlgmr.msra.gmra.mrb[0].mxu0 %v4199_v6  ;;  %v2734_v51 = vunpack.i.h.bf16 %v2732_v7  ;;  %v4782_v25 = vunpack.i.l.bf16 %v3480_v12 }
 0x1a0   : > { %v2729_v4 = vunpack.i.h.bf16 %v2727_v16  ;;  %v2728_v43 = vunpack.i.l.bf16 %v2727_v16  ;;  %2185 = vmatpush1.bf16.msra.mxu0 %v4778_v32  ;;  %2057 = vmatprep.mubr.msk.f32.mxu0 %vm1424_vm6, %v3653_v60  ;;  %v4781_v16 = vunpack.i.l.bf16 %v3490_v18  ;;  %v4783_v32 = vunpack.i.l.bf16 %v3560_v56 }
 0x1a1   : > { %v452_v35 = vsel %vm449_vm3, %v4779_v0, %v2733_v48  ;;  %v351_v8 = vsel %vm350_vm1, %v2719_v55, %v4782_v25  ;;  %v450_v12 = vsel %vm449_vm3, %v2734_v51, %v4784_v19  ;;  %v2236_v55 = vpack.c.bf16 %v385_v62, %v352_v40 }
 0x1a2   : > { %v4211_v1 = vpop.permute.xlu1 %1175  ;;  %v419_v61 = vsel %vm416_vm2, %v4780_v5, %v2728_v43  ;;  %v384_v37 = vsel %vm383_vm0, %v2724_v3, %v4781_v16  ;;  %v417_v33 = vsel %vm416_vm2, %v2729_v4, %v4783_v32  ;;  %v451_v0 = vsel %vm449_vm3, %v2733_v48, %v2734_v51 }
 0x1a3   : > { %v1174_v42 = vpop.permute.xlu0 %1173  ;;  %v2186_v36 = vpack.c.bf16 %v452_v35, %v419_v61  ;;  %v2234_v3 = vpack.c.bf16 %v384_v37, %v351_v8  ;;  %v4785_v56 = vpack.c.bf16 %v3593_v21, %v3605_v24  ;;  %v2238_v16 = vpack.c.bf16 %v450_v12, %v417_v33 }
 0x1a4   : > { %v1187_v18 = vsel %vm1183_vm11, %v1174_v42, %v4211_v1  ;;  %v1188_v7 = vsel %vm1183_vm11, %v1172_v30, %v1174_v42  ;;  %v418_v30 = vsel %vm416_vm2, %v2728_v43, %v2729_v4  ;;  %v4786_v51 = vunpack.i.h.bf16 %v3647_v57 }
 0x1a5   : > { %1551 = vmatprep.subr.mxu1 %v1187_v18  ;;  %2187 = vmatprep.subr.bf16.mxu0 %v2186_v36  ;;  %v2240_v43 = vpack.c.bf16 %v451_v0, %v418_v30  ;;  %v4787_v24 = vunpack.i.l.bf16 %v3625_v44  ;;  %v4789_v36 = vunpack.i.l.bf16 %v3630_v47  ;;  %vm4804_vm0 = vcmp.lt.s32.totalorder %v3483_v14, 10 }
 0x1a6   : > { %1552 = vmatpush1.msra.mxu1 %v1188_v7  ;;  %2189 = vmatpush1.bf16.msra.mxu0 %v4785_v56  ;;  %v2742_v35 = vpop.permute.xlu1 %2741  ;;  %v4792_v56 = vpack.c.bf16 %v3673_v22, %v3685_v27  ;;  %vm4806_vm1 = vmmov %vm4804_vm0  ;;  %vm4810_vm3 = vcmp.lt.s32.totalorder %v3483_v14, 1 }
 0x1a7   : > { %v2744_v53 = vunpack.i.h.bf16 %v2742_v35  ;;  %v2743_v5 = vunpack.i.l.bf16 %v2742_v35  ;;  %v2737_v61 = vpop.permute.xlu0 %2736  ;;  %2235 = vmatprep.subr.bf16.mxu1 %v2234_v3  ;;  %1564 = vmatmul.mubr.f32.vlgmr.msra.gmra.mrb[0].mxu1 %v4199_v6  ;;  %v4790_v3 = vunpack.i.h.bf16 %v3717_v28  ;;  %vm4807_vm2 = vmmov %vm4804_vm0 }
 0x1a8   : > { %v2739_v37 = vunpack.i.h.bf16 %v2737_v61  ;;  %v2738_v40 = vunpack.i.l.bf16 %v2737_v61  ;;  %2237 = vmatpush1.bf16.msra.mxu1 %v2236_v55  ;;  %2058 = vmatprep.mubr.msk.f32.mxu1 %vm1424_vm6, %v3653_v60  ;;  %v4788_v60 = vunpack.i.h.bf16 %v3657_v63  ;;  %v4791_v55 = vunpack.i.l.bf16 %v3699_v52 }
 0x1a9   : > { %2239 = vmatprep.subr.bf16.mxu1 %v2238_v16  ;;  %v518_v21 = vsel %vm515_vm5, %v4786_v51, %v2743_v5  ;;  %v516_v48 = vsel %vm515_vm5, %v2744_v53, %v4787_v24  ;;  %v517_v4 = vsel %vm515_vm5, %v2743_v5, %v2744_v53  ;;  %v4793_v53 = vunpack.i.h.bf16 %v3725_v49  ;;  %vm4813_vm5 = vmmov %vm4810_vm3 }
 0x1aa   : > { %v484_v62 = vsel %vm482_vm4, %v2738_v40, %v2739_v37  ;;  %v2752_v42 = vpop.permute.xlu1 %2751  ;;  %v485_v57 = vsel %vm482_vm4, %v4788_v60, %v2738_v40  ;;  %v483_v44 = vsel %vm482_vm4, %v2739_v37, %v4789_v36  ;;  %v4794_v5 = vunpack.i.l.bf16 %v3704_v10  ;;  %vm4812_vm4 = vmmov %vm4810_vm3 }
 0x1ab   : > { %v2754_v25 = vunpack.i.h.bf16 %v2752_v42  ;;  %v2753_v8 = vunpack.i.l.bf16 %v2752_v42  ;;  %v2747_v18 = vpop.permute.xlu0 %2746  ;;  %v2190_v7 = vpack.c.bf16 %v518_v21, %v485_v57  ;;  %v2242_v19 = vpack.c.bf16 %v516_v48, %v483_v44 }
 0x1ac   : > { %v2749_v32 = vunpack.i.h.bf16 %v2747_v18  ;;  %v2748_v33 = vunpack.i.l.bf16 %v2747_v18  ;;  %2241 = vmatpush1.bf16.msra.mxu1 %v2240_v43  ;;  %v2244_v12 = vpack.c.bf16 %v517_v4, %v484_v62  ;;  %v4795_v49 = vunpack.i.h.bf16 %v3781_v39 }
 0x1ad   : > { %v583_v63 = vsel %vm581_vm8, %v2753_v8, %v2754_v25  ;;  %2191 = vmatprep.subr.bf16.mxu0 %v2190_v7  ;;  %v584_v47 = vsel %vm581_vm8, %v4790_v3, %v2753_v8  ;;  %v582_v0 = vsel %vm581_vm8, %v2754_v25, %v4791_v55  ;;  %2243 = vmatprep.subr.bf16.mxu1 %v2242_v19  ;;  %v4796_v10 = vunpack.i.l.bf16 %v3763_v11 }
 0x1ae   : > { %v550_v30 = vsel %vm548_vm7, %v2748_v33, %v2749_v32  ;;  %2193 = vmatpush1.bf16.msra.mxu0 %v4792_v56  ;;  %v2762_v35 = vpop.permute.xlu1 %2761  ;;  %v551_v28 = vsel %vm548_vm7, %v4793_v53, %v2748_v33  ;;  %v549_v52 = vsel %vm548_vm7, %v2749_v32, %v4794_v5  ;;  %v4797_v4 = vpack.c.bf16 %v3737_v45, %v3749_v31 }
 0x1af   : > { %v2764_v61 = vunpack.i.h.bf16 %v2762_v35  ;;  %v2763_v16 = vunpack.i.l.bf16 %v2762_v35  ;;  %v2757_v37 = vpop.permute.xlu0 %2756  ;;  %v2194_v40 = vpack.c.bf16 %v584_v47, %v551_v28  ;;  %v2246_v22 = vpack.c.bf16 %v582_v0, %v549_v52 }
 0x1b0   : > { %v2759_v43 = vunpack.i.h.bf16 %v2757_v37  ;;  %v2758_v51 = vunpack.i.l.bf16 %v2757_v37  ;;  %2245 = vmatpush1.bf16.msra.mxu1 %v2244_v12  ;;  %v2248_v27 = vpack.c.bf16 %v583_v63, %v550_v30  ;;  %v4798_v42 = vunpack.i.h.bf16 %v3789_v50  ;;  %v2842_v37 = vld [vmem:[%s3357_s16 + $0x20] sm:$0xff] }
 0x1b1   : > { %2195 = vmatprep.subr.bf16.mxu0 %v2194_v40  ;;  %v650_v21 = vsel %vm647_vm10, %v4795_v49, %v2763_v16  ;;  %v648_v24 = vsel %vm647_vm10, %v2764_v61, %v4796_v10  ;;  %v649_v48 = vsel %vm647_vm10, %v2763_v16, %v2764_v61  ;;  %2247 = vmatprep.subr.bf16.mxu1 %v2246_v22  ;;  %v4799_v60 = vunpack.i.l.bf16 %v3768_v26  ;;  %v4815_v49 = vld [vmem:[#allocation21_spill] sm:$0xff] }
 0x1b2   : > { %2197 = vmatpush1.bf16.msra.mxu0 %v4797_v4  ;;  %v2772_v62 = vpop.permute.xlu1 %2771  ;;  %v617_v39 = vsel %vm614_vm9, %v4798_v42, %v2758_v51  ;;  %v616_v57 = vsel %vm614_vm9, %v2758_v51, %v2759_v43  ;;  %v4800_v50 = vunpack.i.h.bf16 %v3845_v13  ;;  %v4801_v7 = vunpack.i.l.bf16 %v3827_v29 }
 0x1b3   : > { %v615_v11 = vsel %vm614_vm9, %v2759_v43, %v4799_v60  ;;  %v2774_v36 = vunpack.i.h.bf16 %v2772_v62  ;;  %v2773_v44 = vunpack.i.l.bf16 %v2772_v62  ;;  %v2767_v25 = vpop.permute.xlu0 %2766  ;;  %v2198_v8 = vpack.c.bf16 %v650_v21, %v617_v39 }
 0x1b4   : > { %v2769_v45 = vunpack.i.h.bf16 %v2767_v25  ;;  %v2768_v31 = vunpack.i.l.bf16 %v2767_v25  ;;  %2249 = vmatpush1.bf16.msra.mxu1 %v2248_v27  ;;  %v2250_v18 = vpack.c.bf16 %v648_v24, %v615_v11  ;;  %v2252_v33 = vpack.c.bf16 %v649_v48, %v616_v57  ;;  %v4817_v24 = vld [vmem:[#allocation23_spill] sm:$0xff]  ;;  %v4821_v11 = vld [vmem:[#allocation20_spill] sm:$0xff] }
 0x1b5   : > { %2199 = vmatprep.subr.bf16.mxu0 %v2198_v8  ;;  %v716_v26 = vsel %vm713_vm12, %v4800_v50, %v2773_v44  ;;  %v714_v32 = vsel %vm713_vm12, %v2774_v36, %v4801_v7  ;;  %v4802_v19 = vpack.c.bf16 %v3801_v38, %v3813_v9  ;;  %v4803_v63 = vunpack.i.h.bf16 %v3853_v59  ;;  %v4825_v8 = vld [vmem:[#allocation22_spill] sm:$0xff] }
 0x1b6   : > { %2251 = vmatprep.subr.bf16.mxu1 %v2250_v18  ;;  %v2782_v12 = vpop.permute.xlu1 %2781  ;;  %v4805_v3 = vunpack.i.l.bf16 %v3832_v54  ;;  %v715_v47 = vsel %vm713_vm12, %v2773_v44, %v2774_v36  ;;  %v682_v55 = vsel %vm4807_vm2, %v2768_v31, %v2769_v45  ;;  %v4808_v53 = vpack.c.bf16 %v3865_v34, %v3877_v41  ;;  %v2843_v41 = vld [vmem:[%s3357_s16 + $0x28] sm:$0xff] }
 0x1b7   : > { %2201 = vmatpush1.bf16.msra.mxu0 %v4802_v19  ;;  %v683_v13 = vsel %vm4804_vm0, %v4803_v63, %v2768_v31  ;;  %v2777_v38 = vpop.permute.xlu0 %2776  ;;  %v2784_v0 = vunpack.i.h.bf16 %v2782_v12  ;;  %v2783_v35 = vunpack.i.l.bf16 %v2782_v12  ;;  %v2256_v54 = vpack.c.bf16 %v715_v47, %v682_v55  ;;  %v4829_v63 = vld [vmem:[#allocation25_spill] sm:$0xff] }
 0x1b8   : > { %v681_v29 = vsel %vm4806_vm1, %v2769_v45, %v4805_v3  ;;  %v2202_v9 = vpack.c.bf16 %v716_v26, %v683_v13  ;;  %v2779_v30 = vunpack.i.h.bf16 %v2777_v38  ;;  %v2778_v59 = vunpack.i.l.bf16 %v2777_v38  ;;  %2253 = vmatpush1.bf16.msra.mxu1 %v2252_v33  ;;  %v4831_v3 = vld [vmem:[#allocation27_spill] sm:$0xff] }
 0x1b9   : > { %v2254_v56 = vpack.c.bf16 %v714_v32, %v681_v29  ;;  %v4809_v5 = vunpack.i.h.bf16 %v3898_v17  ;;  %v4811_v61 = vunpack.i.l.bf16 %v3879_v23  ;;  %v2208_v40 = vpack.c.bf16 %v2842_v37, %v3915_v2  ;;  %v2844_v2 = vld [vmem:[%s3357_s16 + $0x30] sm:$0xff]  ;;  %s2052_s16 = sshll.u32 %s3353_s10, 5 }
 0x1ba   : > { %2203 = vmatprep.subr.bf16.mxu0 %v2202_v9  ;;  %v786_v28 = vpop.permute.xlu1 %785  ;;  %v748_v43 = vsel %vm4813_vm5, %v2778_v59, %v2779_v30  ;;  %vm4814_vm6 = vcmp.lt.s32.totalorder %v3483_v14, 127  ;;  %vm4818_vm8 = vcmp.lt.s32.totalorder %v3483_v14, 119  ;;  %v4822_v57 = vunpack.i.l.bf16 %v4821_v11  ;;  %s4505_s14 = scalar_lea.vmem [#allocation11], %s2052_s16 }
 0x1bb   : > { %2255 = vmatprep.subr.bf16.mxu1 %v2254_v56  ;;  %2205 = vmatpush1.bf16.msra.mxu0 %v4808_v53  ;;  %v749_v52 = vsel %vm4810_vm3, %v4809_v5, %v2778_v59  ;;  %v747_v16 = vsel %vm4812_vm4, %v2779_v30, %v4811_v61  ;;  %v2787_v34 = vpop.permute.xlu0 %2786  ;;  %v789_v23 = vsel %vm4814_vm6, %v2783_v35, %v2784_v0  ;;  %vm4816_vm7 = vmmov %vm4814_vm6  ;;  %v4826_v45 = vunpack.i.l.bf16 %v4825_v8  ;;  %v4835_v59 = vld [vmem:[#allocation24_spill] sm:$0xff]  ;;  %s1852_s7 = sshll.u32 %s4505_s14, 4  ;;  %s1853_s7 = int_to_ptr.vmem [resolvable:$true] %s1852_s7 }
 0x1bc   : > { %v2206_v51 = vpack.c.bf16 %v2843_v41, %v749_v52  ;;  %v2789_v22 = vunpack.i.h.bf16 %v2787_v34  ;;  %v2788_v17 = vunpack.i.l.bf16 %v2787_v34  ;;  %2257 = vmatpush1.bf16.msra.mxu1 %v2256_v54  ;;  %v2258_v27 = vpack.c.bf16 %v3977_v20, %v747_v16  ;;  %vm4819_vm9 = vmmov %vm4818_vm8  ;;  %s2959_s19 = scalar_lea.vmem %s1853_s7, 512  ;;  %p2966_p3 = scmp.lt.s32.totalorder %s1853_s7, %s2964_s26 }
 0x1bd   : > { %v790_v21 = vsel %vm4816_vm7, %v4815_v49, %v2783_v35  ;;  %v2260_v10 = vpack.c.bf16 %v2844_v2, %v748_v43  ;;  %vm4820_vm10 = vmmov %vm4814_vm6  ;;  %vm4828_vm2 = vcmp.lt.s32.totalorder %v3483_v14, 118  ;;  %vm4832_vm4 = vcmp.lt.s32.totalorder %v3483_v14, 117  ;;  %p2960_p1 = scmp.ne.s32.totalorder %s1853_s7, %s2959_s19  ;;  %p2967_p7 = scmp.lt.s32.totalorder %s2965_s15, %s2959_s19 }
 0x1be   : > { %2207 = vmatprep.subr.bf16.mxu0 %v2206_v51  ;;  %v823_v48 = vsel %vm4818_vm8, %v4817_v24, %v2788_v17  ;;  %2259 = vmatprep.subr.bf16.mxu1 %v2258_v27  ;;  %v2792_v4 = vpop.permute.xlu1 %2791  ;;  %v822_v20 = vsel %vm4819_vm9, %v2788_v17, %v2789_v22  ;;  %v788_v62 = vsel %vm4820_vm10, %v2784_v0, %v786_v28  ;;  %vm4823_vm12 = vmmov %vm4814_vm6  ;;  %v4836_v56 = vunpack.i.l.bf16 %v4835_v59  ;;  %v4847_v24 = vld [vmem:[#allocation28_spill] sm:$0xff] }
 0x1bf   : > { %2209 = vmatpush1.bf16.msra.mxu0 %v2208_v40  ;;  %v2212_v42 = vpack.c.bf16 %v823_v48, %v790_v21  ;;  %v819_v39 = vpop.permute.xlu0 %818  ;;  %v2210_v60 = vpack.c.bf16 %v822_v20, %v789_v23  ;;  %v795_v36 = vsel %vm4823_vm12, %v786_v28, %v4822_v57  ;;  %v2794_v44 = vunpack.i.h.bf16 %v2792_v4  ;;  %vm4824_vm0 = vmmov %vm4818_vm8  ;;  %v4839_v28 = vld [vmem:[#allocation26_spill] sm:$0xff]  ;;  %p2961_p4 = pnand %p2960_p1, %p3308_p6  ;;  %p2968_p10 = por %p2967_p7, %p2966_p3 }
 0x1c0   : > { %v821_v25 = vsel %vm4824_vm0, %v2789_v22, %v819_v39  ;;  %vm4827_vm1 = vmmov %vm4824_vm0  ;;  %2261 = vmatpush1.bf16.msra.mxu1 %v2260_v10  ;;  %v2793_v26 = vunpack.i.l.bf16 %v2792_v4  ;;  %v4840_v5 = vunpack.i.l.bf16 %v4839_v28  ;;  %vm4842_vm10 = vcmp.lt.s32.totalorder %v3483_v14, 39 }
 0x1c1   : > { %v828_v31 = vsel %vm4827_vm1, %v819_v39, %v4826_v45  ;;  %v2264_v50 = vpack.c.bf16 %v821_v25, %v788_v62  ;;  %2211 = vmatprep.subr.bf16.mxu0 %v2210_v60  ;;  %vm4830_vm3 = vmmov %vm4828_vm2  ;;  %vm4844_vm0 = vcmp.lt.s32.totalorder %v3483_v14, 38  ;;  %v4848_v48 = vunpack.i.l.bf16 %v4847_v24  ;;  %p2962_p8 = pneg %p2961_p4 }
 0x1c2   : > { %v2262_v18 = vpack.c.bf16 %v828_v31, %v795_v36  ;;  %v852_v7 = vpop.permute.xlu1 %851  ;;  %v855_v12 = vsel %vm4828_vm2, %v2793_v26, %v2794_v44  ;;  %v856_v13 = vsel %vm4830_vm3, %v4829_v63, %v2793_v26  ;;  %vm4833_vm5 = vmmov %vm4832_vm4  ;;  %v4856_v31 = vld [vmem:[#allocation32_spill] sm:$0xff] }
 0x1c3   : > { %2213 = vmatpush1.bf16.msra.mxu0 %v2212_v42  ;;  %v2797_v32 = vpop.permute.xlu0 %2796  ;;  %vm4834_vm6 = vmmov %vm4828_vm2  ;;  %p2969_p13 = pnand %p2968_p10, %p2962_p8 }
 0x1c4   : > { %2263 = vmatprep.subr.bf16.mxu1 %v2262_v18  ;;  %v2799_v33 = vunpack.i.h.bf16 %v2797_v32  ;;  %v2798_v19 = vunpack.i.l.bf16 %v2797_v32  ;;  %v854_v38 = vsel %vm4834_vm6, %v2794_v44, %v852_v7  ;;  %vm4837_vm7 = vmmov %vm4828_vm2  ;;  %vm4854_vm6 = vcmp.lt.s32.totalorder %v3483_v14, 37 }
 0x1c5   : > { %2265 = vmatpush1.bf16.msra.mxu1 %v2264_v50  ;;  %v861_v35 = vsel %vm4837_vm7, %v852_v7, %v4836_v56  ;;  %vm4838_vm8 = vmmov %vm4832_vm4 }
 0x1c6   : > { %v889_v29 = vsel %vm4832_vm4, %v4831_v3, %v2798_v19  ;;  %v2802_v47 = vpop.permute.xlu1 %2801  ;;  %v888_v55 = vsel %vm4833_vm5, %v2798_v19, %v2799_v33  ;;  %vm4841_vm9 = vmmov %vm4832_vm4 }
 0x1c7   : > { %v2216_v9 = vpack.c.bf16 %v889_v29, %v856_v13  ;;  %v885_v0 = vpop.permute.xlu0 %884  ;;  %v2214_v30 = vpack.c.bf16 %v888_v55, %v855_v12  ;;  %v2804_v54 = vunpack.i.h.bf16 %v2802_v47  ;;  %v2803_v37 = vunpack.i.l.bf16 %v2802_v47  ;;  %vm4843_vm12 = vmmov %vm4842_vm10  ;;  %v4860_v12 = vld [vmem:[#allocation30_spill] sm:$0xff]  ;;  %v4864_v29 = vld [vmem:[#allocation31_spill] sm:$0xff] }
 0x1c8   : > { %v887_v53 = vsel %vm4838_vm8, %v2799_v33, %v885_v0  ;;  %v894_v52 = vsel %vm4841_vm9, %v885_v0, %v4840_v5  ;;  %vm4845_vm1 = vmmov %vm4844_vm0  ;;  %vm4857_vm8 = vcmp.lt.s32.totalorder %v3483_v14, 29  ;;  %v4861_v63 = vunpack.i.l.bf16 %v4860_v12  ;;  %v4868_v5 = vld [vmem:[#allocation36_spill] sm:$0xff] }
 0x1c9   : > { %v2266_v61 = vpack.c.bf16 %v894_v52, %v861_v35  ;;  %v2268_v16 = vpack.c.bf16 %v887_v53, %v854_v38  ;;  %2215 = vmatprep.subr.bf16.mxu0 %v2214_v30  ;;  %v921_v51 = vsel %vm4842_vm10, %v2803_v37, %v2804_v54  ;;  %v922_v22 = vsel %vm4843_vm12, %v4030_v46, %v2803_v37  ;;  %vm4846_vm2 = vmmov %vm4842_vm10  ;;  %v4867_v53 = vld [vmem:[#allocation34_spill] sm:$0xff] }
 0x1ca   : > { %2217 = vmatpush1.bf16.msra.mxu0 %v2216_v9  ;;  %v918_v40 = vpop.permute.xlu1 %917  ;;  %vm4849_vm3 = vmmov %vm4846_vm2  ;;  %v4865_v47 = vunpack.i.l.bf16 %v4864_v29 }
 0x1cb   : > { %v2807_v43 = vpop.permute.xlu0 %2806  ;;  %2267 = vmatprep.subr.bf16.mxu1 %v2266_v61  ;;  %v920_v49 = vsel %vm4846_vm2, %v2804_v54, %v918_v40  ;;  %v927_v4 = vsel %vm4849_vm3, %v918_v40, %v4848_v48  ;;  %vm4850_vm4 = vmmov %vm4844_vm0  ;;  %vm4869_vm2 = vcmp.lt.s32.totalorder %v3483_v14, 27 }
 0x1cc   : > { %v2809_v34 = vunpack.i.h.bf16 %v2807_v43  ;;  %v2808_v41 = vunpack.i.l.bf16 %v2807_v43  ;;  %2269 = vmatpush1.bf16.msra.mxu1 %v2268_v16  ;;  %vm4853_vm5 = vmmov %vm4844_vm0 }
 0x1cd   : > { %vm4855_vm7 = vmmov %vm4854_vm6 }
 0x1ce   : > { %v955_v17 = vsel %vm4844_vm0, %v4051_v58, %v2808_v41  ;;  %v2812_v27 = vpop.permute.xlu1 %2811  ;;  %v954_v23 = vsel %vm4845_vm1, %v2808_v41, %v2809_v34  ;;  %v4851_v58 = vld [vmem:[#allocation29_spill] sm:$0xff]  ;;  %vm4858_vm9 = vmmov %vm4857_vm8 }
 0x1cf   : > { %v2220_v21 = vpack.c.bf16 %v955_v17, %v922_v22  ;;  %v951_v2 = vpop.permute.xlu0 %950  ;;  %v2218_v10 = vpack.c.bf16 %v954_v23, %v921_v51  ;;  %v2814_v46 = vunpack.i.h.bf16 %v2812_v27  ;;  %v4852_v62 = vunpack.i.l.bf16 %v4851_v58  ;;  %vm4859_vm10 = vmmov %vm4854_vm6  ;;  %v4871_v41 = vld [vmem:[#allocation33_spill] sm:$0xff]  ;;  %v4874_v23 = vld [vmem:[#allocation35_spill] sm:$0xff] }
 0x1d0   : > { %v953_v20 = vsel %vm4850_vm4, %v2809_v34, %v951_v2  ;;  %v2813_v11 = vunpack.i.l.bf16 %v2812_v27  ;;  %vm4862_vm12 = vmmov %vm4854_vm6  ;;  %v4872_v51 = vunpack.i.l.bf16 %v4871_v41 }
 0x1d1   : > { %v960_v42 = vsel %vm4853_vm5, %v951_v2, %v4852_v62  ;;  %v2272_v60 = vpack.c.bf16 %v953_v20, %v920_v49  ;;  %2219 = vmatprep.subr.bf16.mxu0 %v2218_v10  ;;  %vm4863_vm0 = vmmov %vm4857_vm8  ;;  %v4875_v49 = vunpack.i.l.bf16 %v4874_v23  ;;  %v4877_v62 = vld [vmem:[#allocation38_spill] sm:$0xff] }
 0x1d2   : > { %v2270_v39 = vpack.c.bf16 %v960_v42, %v927_v4  ;;  %2221 = vmatpush1.bf16.msra.mxu0 %v2220_v21  ;;  %v984_v57 = vpop.permute.xlu1 %983  ;;  %v987_v8 = vsel %vm4854_vm6, %v2813_v11, %v2814_v46  ;;  %v988_v45 = vsel %vm4855_vm7, %v4078_v15, %v2813_v11  ;;  %vm4866_vm1 = vmmov %vm4863_vm0 }
 0x1d3   : > { %v2817_v36 = vpop.permute.xlu0 %2816  ;;  %v986_v7 = vsel %vm4859_vm10, %v2814_v46, %v984_v57  ;;  %v993_v13 = vsel %vm4862_vm12, %v984_v57, %v4861_v63  ;;  %vm4870_vm3 = vmmov %vm4869_vm2 }
 0x1d4   : > { %2271 = vmatprep.subr.bf16.mxu1 %v2270_v39  ;;  %v2819_v44 = vunpack.i.h.bf16 %v2817_v36  ;;  %v2818_v25 = vunpack.i.l.bf16 %v2817_v36  ;;  %vm4873_vm4 = vmmov %vm4869_vm2  ;;  %v4878_v39 = vld [vmem:[#allocation40_spill] sm:$0xff] }
 0x1d5   : > { %2273 = vmatpush1.bf16.msra.mxu1 %v2272_v60  ;;  %vm4876_vm5 = vmmov %vm4869_vm2 }
 0x1d6   : > { %v1021_v18 = vsel %vm4857_vm8, %v4856_v31, %v2818_v25  ;;  %v2822_v50 = vpop.permute.xlu1 %2821  ;;  %v1020_v26 = vsel %vm4858_vm9, %v2818_v25, %v2819_v44 }
 0x1d7   : > { %v2224_v32 = vpack.c.bf16 %v1021_v18, %v988_v45  ;;  %v1017_v33 = vpop.permute.xlu0 %1016  ;;  %v2222_v19 = vpack.c.bf16 %v1020_v26, %v987_v8  ;;  %v2824_v15 = vunpack.i.h.bf16 %v2822_v50  ;;  %v2823_v0 = vunpack.i.l.bf16 %v2822_v50  ;;  %v4879_v45 = vld [vmem:[#allocation37_spill] sm:$0xff]  ;;  %v4881_v26 = vld [vmem:[#allocation39_spill] sm:$0xff] }
 0x1d8   : > { %v1019_v3 = vsel %vm4863_vm0, %v2819_v44, %v1017_v33  ;;  %v1026_v55 = vsel %vm4866_vm1, %v1017_v33, %v4865_v47  ;;  %v4880_v31 = vunpack.i.l.bf16 %v4879_v45 }
 0x1d9   : > { %v2274_v38 = vpack.c.bf16 %v1026_v55, %v993_v13  ;;  %v2276_v9 = vpack.c.bf16 %v1019_v3, %v986_v7  ;;  %2223 = vmatprep.subr.bf16.mxu0 %v2222_v19  ;;  %v1053_v54 = vsel %vm1051_vm14, %v2823_v0, %v2824_v15  ;;  %v1054_v28 = vsel %vm1051_vm14, %v4867_v53, %v2823_v0  ;;  %v4883_v13 = vld [vmem:[#allocation41_spill] sm:$0xff]  ;;  %v1712_v0 = vld [vmem:[#allocation9] sm:$0xff] }
 0x1da   : > { %2225 = vmatpush1.bf16.msra.mxu0 %v2224_v32  ;;  %v1050_v30 = vpop.permute.xlu1 %1049  ;;  %v4882_v7 = vunpack.i.l.bf16 %v4881_v26  ;;  %v4884_v55 = vlaneseq }
 0x1db   : > { %v2827_v59 = vpop.permute.xlu0 %2826  ;;  %2275 = vmatprep.subr.bf16.mxu1 %v2274_v38  ;;  %v1052_v37 = vsel %vm1051_vm14, %v2824_v15, %v1050_v30  ;;  %v1059_v22 = vsel %vm1051_vm14, %v1050_v30, %v4872_v51 }
 0x1dc   : > { %v2829_v56 = vunpack.i.h.bf16 %v2827_v59  ;;  %v2828_v35 = vunpack.i.l.bf16 %v2827_v59  ;;  %2277 = vmatpush1.bf16.msra.mxu1 %v2276_v9  ;;  %v1715_v38 = vshrl.u32 %v4884_v55, 7 }
 0x1de   : > { %v1087_v52 = vsel %vm4869_vm2, %v4868_v5, %v2828_v35  ;;  %v2832_v61 = vpop.permute.xlu1 %2831  ;;  %v1086_v16 = vsel %vm4870_vm3, %v2828_v35, %v2829_v56  ;;  %v1716_v9 = vsub.s32 0, %v1715_v38  ;;  %v1720_v30 = vsub.s32 1, %v1715_v38 }
 0x1df   : > { %v2228_v40 = vpack.c.bf16 %v1087_v52, %v1054_v28  ;;  %v1083_v43 = vpop.permute.xlu0 %1082  ;;  %v2226_v34 = vpack.c.bf16 %v1086_v16, %v1053_v54  ;;  %v2834_v17 = vunpack.i.h.bf16 %v2832_v61  ;;  %v2833_v24 = vunpack.i.l.bf16 %v2832_v61 }
 0x1e0   : > { %v1085_v27 = vsel %vm4873_vm4, %v2829_v56, %v1083_v43  ;;  %v1092_v21 = vsel %vm4876_vm5, %v1083_v43, %v4875_v49  ;;  %v1717_v56 = vrot.slane %v1712_v0, %v1716_v9  ;;  %v1721_v35 = vrot.slane %v1712_v0, %v1720_v30 }
 0x1e1   : > { %v2278_v2 = vpack.c.bf16 %v1092_v21, %v1059_v22  ;;  %v2280_v10 = vpack.c.bf16 %v1085_v27, %v1052_v37  ;;  %2227 = vmatprep.subr.bf16.mxu0 %v2226_v34  ;;  %v1119_v58 = vsel %vm1117_vm15, %v2833_v24, %v2834_v17  ;;  %v1120_v42 = vsel %vm1117_vm15, %v4877_v62, %v2833_v24 }
 0x1e2   : > { %2229 = vmatpush1.bf16.msra.mxu0 %v2228_v40  ;;  %v1116_v48 = vpop.permute.xlu1 %1115  ;;  %v1724_v5 = vsub.s32 2, %v1715_v38  ;;  %v1728_v61 = vsub.s32 3, %v1715_v38  ;;  %v1740_v62 = vsub.s32 6, %v1715_v38 }
 0x1e3   : > { %v2837_v4 = vpop.permute.xlu0 %2836  ;;  %2279 = vmatprep.subr.bf16.mxu1 %v2278_v2  ;;  %v1118_v8 = vsel %vm1117_vm15, %v2834_v17, %v1116_v48  ;;  %v1125_v18 = vsel %vm1117_vm15, %v1116_v48, %v4880_v31 }
 0x1e4   : > { %v2839_v46 = vunpack.i.h.bf16 %v2837_v4  ;;  %v2838_v20 = vunpack.i.l.bf16 %v2837_v4  ;;  %2281 = vmatpush1.bf16.msra.mxu1 %v2280_v10  ;;  %v1725_v43 = vrot.slane %v1712_v0, %v1724_v5  ;;  %v1729_v51 = vrot.slane %v1712_v0, %v1728_v61 }
 0x1e6   : > { %v1153_v60 = vsel %vm1150_vm13, %v4878_v39, %v2838_v20  ;;  %v1178_v11 = vpop.permute.xlu1 %1177  ;;  %v1152_v57 = vsel %vm1150_vm13, %v2838_v20, %v2839_v46  ;;  %v1732_v20 = vsub.s32 4, %v1715_v38 }
 0x1e7   : > { %v2232_v36 = vpack.c.bf16 %v1153_v60, %v1120_v42  ;;  %v1149_v44 = vpop.permute.xlu0 %1148  ;;  %v2230_v25 = vpack.c.bf16 %v1152_v57, %v1119_v58  ;;  %v1186_v29 = vsel %vm1183_vm11, %v4211_v1, %v1178_v11  ;;  %v1736_v58 = vsub.s32 5, %v1715_v38 }
 0x1e8   : > { %v1151_v50 = vsel %vm1150_vm13, %v2839_v46, %v1149_v44  ;;  %v1158_v32 = vsel %vm1150_vm13, %v1149_v44, %v4882_v7  ;;  %v1744_v42 = vsub.s32 7, %v1715_v38  ;;  %v1733_v39 = vrot.slane %v1712_v0, %v1732_v20 }
 0x1e9   : > { %v2282_v33 = vpack.c.bf16 %v1158_v32, %v1125_v18  ;;  %v2284_v19 = vpack.c.bf16 %v1151_v50, %v1118_v8  ;;  %2231 = vmatprep.subr.bf16.mxu0 %v2230_v25  ;;  %v1741_v44 = vrot.slane %v1712_v0, %v1740_v62 }
 0x1ea   : > { %2233 = vmatpush1.bf16.msra.mxu0 %v2232_v36  ;;  %v1182_v12 = vpop.permute.xlu1 %1181  ;;  %v1745_v45 = vrot.slane %v1712_v0, %v1744_v42 }
 0x1eb   : > { %v1180_v63 = vpop.permute.xlu0 %1179  ;;  %2283 = vmatprep.subr.bf16.mxu1 %v2282_v33  ;;  %v1191_v15 = vsel %vm1183_vm11, %v1182_v12, %v4883_v13 }
 0x1ec   : > { %2285 = vmatpush1.bf16.msra.mxu1 %v2284_v19  ;;  %v1185_v3 = vsel %vm1183_vm11, %v1178_v11, %v1180_v63  ;;  %v1184_v47 = vsel %vm1183_vm11, %v1180_v63, %v1182_v12  ;;  %v1737_v11 = vrot.slane %v1712_v0, %v1736_v58 }
 0x1ed   : > { %1622 = vmatprep.subr.mxu0 %v1185_v3  ;;  %1693 = vmatprep.subr.mxu1 %v1191_v15 }
 0x1ee   : > { %1623 = vmatpush1.msra.mxu0 %v1186_v29 }
 0x1ef   : > { %1635 = vmatmul.mubr.f32.vlgmr.msra.gmra.mrb[2].mxu0 %v4199_v6 }
 0x1f0   : > { %1694 = vmatpush1.msra.mxu1 %v1184_v47 }
 0x1f1   : > { %1706 = vmatmul.mubr.f32.vlgmr.msra.gmra.mrb[2].mxu1 %v4199_v6 }
 0x1fc   : > { %v1422_v59 = vpop.permute.xlu0 %1421 }
 0x272   : > { %v1494_v1 = vpop.f32.mrb[0].mxu0 }
 0x273   : > { %v1495_v54 = vadd.f32 %v1494_v1, %v1422_v59  ;;  %v1496_v53 = vpop.f32.mrb[1].mxu0 }
 0x274   : > { %v1497_v28 = vadd.f32 %v1496_v53, %v1422_v59 }
 0x275   : > { %v1754_v14 = vmul.f32 %v1717_v56, %v1495_v54 }
 0x276   : > { %v1755_v52 = vmul.f32 %v1721_v35, %v1497_v28 }
 0x277   : > { %v1773_v16 = vmul.f32 %v1754_v14, %v1754_v14 }
 0x278   : > { %v1762_v37 = vadd.f32 %v1755_v52, %v1754_v14  ;;  %v1774_v6 = vmul.f32 %v1755_v52, %v1755_v52  ;;  %v2073_v40 = vpack.c.bf16 %v1755_v52, %v1754_v14 }
 0x27a   : > { %v1781_v34 = vadd.f32 %v1774_v6, %v1773_v16  ;;  %1823 = vst [vmem:[%s4505_s14] sm:$0xff] %v2073_v40  ;;  %v1565_v41 = vpop.f32.mrb[0].mxu1 }
 0x27b   : > { %v1566_v22 = vadd.f32 %v1565_v41, %v1422_v59  ;;  %v1567_v17 = vpop.f32.mrb[1].mxu1 }
 0x27c   : > { %v1568_v27 = vadd.f32 %v1567_v17, %v1422_v59 }
 0x27d   : > { %v1756_v23 = vmul.f32 %v1725_v43, %v1566_v22 }
 0x27e   : > { %v1757_v49 = vmul.f32 %v1729_v51, %v1568_v27 }
 0x27f   : > { %v1763_v21 = vadd.f32 %v1762_v37, %v1756_v23  ;;  %v1775_v2 = vmul.f32 %v1756_v23, %v1756_v23 }
 0x280   : > { %v1776_v10 = vmul.f32 %v1757_v49, %v1757_v49  ;;  %v2074_v24 = vpack.c.bf16 %v1757_v49, %v1756_v23 }
 0x281   : > { %v1782_v48 = vadd.f32 %v1781_v34, %v1775_v2  ;;  %v1764_v4 = vadd.f32 %v1763_v21, %v1757_v49 }
 0x282   : > { %1824 = vst [vmem:[%s4505_s14 + $0x8] sm:$0xff] %v2074_v24 }
 0x283   : > { %v1783_v46 = vadd.f32 %v1782_v48, %v1776_v10 }
 0x2c2   : > { %v1636_v60 = vpop.f32.mrb[2].mxu0 }
 0x2c3   : > { %v1637_v57 = vadd.f32 %v1636_v60, %v1422_v59  ;;  %v1638_v36 = vpop.f32.mrb[3].mxu0 }
 0x2c4   : > { %v1639_v25 = vadd.f32 %v1638_v36, %v1422_v59  ;;  %v1707_v8 = vpop.f32.mrb[2].mxu1 }
 0x2c5   : > { %v1758_v31 = vmul.f32 %v1733_v39, %v1637_v57  ;;  %v1708_v18 = vadd.f32 %v1707_v8, %v1422_v59  ;;  %v1709_v50 = vpop.f32.mrb[3].mxu1 }
 0x2c6   : > { %v1759_v26 = vmul.f32 %v1737_v11, %v1639_v25  ;;  %v1710_v7 = vadd.f32 %v1709_v50, %v1422_v59 }
 0x2c7   : > { %v1765_v32 = vadd.f32 %v1764_v4, %v1758_v31  ;;  %v1777_v33 = vmul.f32 %v1758_v31, %v1758_v31  ;;  %v1760_v19 = vmul.f32 %v1741_v44, %v1708_v18 }
 0x2c8   : > { %v1778_v12 = vmul.f32 %v1759_v26, %v1759_v26  ;;  %v2075_v63 = vpack.c.bf16 %v1759_v26, %v1758_v31  ;;  %v1761_v13 = vmul.f32 %v1745_v45, %v1710_v7 }
 0x2c9   : > { %v1784_v15 = vadd.f32 %v1783_v46, %v1777_v33  ;;  %v1766_v3 = vadd.f32 %v1765_v32, %v1759_v26  ;;  %v1779_v47 = vmul.f32 %v1760_v19, %v1760_v19 }
 0x2ca   : > { %1825 = vst [vmem:[%s4505_s14 + $0x10] sm:$0xff] %v2075_v63  ;;  %v2076_v29 = vpack.c.bf16 %v1761_v13, %v1760_v19  ;;  %v1780_v0 = vmul.f32 %v1761_v13, %v1761_v13 }
 0x2cb   : > { %v1767_v55 = vadd.f32 %v1766_v3, %v1760_v19  ;;  %v1785_v38 = vadd.f32 %v1784_v15, %v1778_v12 }
 0x2cc   : > { %1826 = vst [vmem:[%s4505_s14 + $0x18] sm:$0xff] %v2076_v29 }
 0x2cd   : > { %v1768_v9 = vadd.f32 %v1767_v55, %v1761_v13  ;;  %v1786_v30 = vadd.f32 %v1785_v38, %v1779_v47 }
 0x2cf   : > { %1769 = vadd.xlane.f32.xlu1 %v1768_v9  ;;  %v1787_v59 = vadd.f32 %v1786_v30, %v1780_v0 }
 0x2d1   : > { %1788 = vadd.xlane.f32.xlu0 %v1787_v59 }
 0x2d2   : > { %2972 = shalt.err (!%p2969_p13)
}
 0x2d3   : > { %s2973_s29 = scalar_lea.hbm %s4515_s20, 512  ;;  %s2977_s14 = scalar_lea.hbm %s4629_s4, 1024 }
 0x2d4   : > { %p2974_p5 = scmp.ne.s32.totalorder %s4515_s20, %s2973_s29  ;;  %p2978_p9 = scmp.lt.u32.totalorder %s4515_s20, %s4629_s4 }
 0x2d5   : > { %p2979_p12 = scmp.lt.u32.totalorder %s2977_s14, %s2973_s29  ;;  %p2981_p1 = scmp.lt.u32.totalorder %s2973_s29, %s4515_s20 }
 0x2d6   : > { %p2975_p0 = pnand %p2974_p5, %p3308_p6 }
 0x2d7   : > { %p2980_p2 = por %p2979_p12, %p2978_p9 }
 0x2d8   : > { %p2976_p11 = pneg %p2975_p0 }
 0x2d9   : > { %p2982_p4 = por %p2981_p1, %p2980_p2 }
 0x2db   : > { %p2983_p8 = pnand %p2982_p4, %p2976_p11 }
 0x2dd   : > { %2986 = shalt.err (!%p2983_p8)
}
 0x2de   : > { %2300 = dma.vmem_to_hbm [thread:$0]  (%p3308_p6), %s1853_s7, 512, %s4515_s20, %s1828_s13   ;;  %vm1771_vm11 = vcmask 7168  }
 0x2df   : > { %s2053_s9 = sshll.u32 %s3353_s10, 3  ;;  %s1832_s19 = sand.u32 1, %s3185_s25  }
 0x2e0   : > { %s2068_s30 = sshll.u32 %s3185_s25, 7  ;;  %s316_s26 = scalar_lea.vmem [#allocation12], %s2053_s9 }
 0x2e1   : > { %s1865_s15 = sshll.u32 %s316_s26, 4  ;;  %s4539_s17 = scalar_lea.vmem [#allocation14], %s2053_s9  ;;  %s4547_s15 = int_to_ptr.vmem [resolvable:$true] %s1865_s15 }
 0x2e2   : > { %s1878_s29 = sshll.u32 %s4539_s17, 4  ;;  %s4545_s12 = scalar_lea.hbm %s4630_s5, %s2068_s30  ;;  %s4555_s29 = int_to_ptr.vmem [resolvable:$true] %s1878_s29 }
 0x2e3   : > { %s4553_s20 = scalar_lea.hbm %s4631_s6, %s2068_s30  ;;  %s4557_s7 = scalar_lea.sflag [#allocation13], %s1832_s19 }
 0x2e4   : > { %s2987_s13 = scalar_lea.vmem %s4547_s15, 128  ;;  %s3127_s27 = smov [#allocation12]  }
 0x2e5   : > { %p2988_p3 = scmp.ne.s32.totalorder %s4547_s15, %s2987_s13  ;;  %s2991_s9 = sshll.u32 %s3127_s27, 4  ;;  %s2992_s9 = int_to_ptr.vmem [resolvable:$false] %s2991_s9 }
 0x2e6   : > { %s2993_s16 = scalar_lea.vmem %s2992_s9, 256  ;;  %p2994_p13 = scmp.lt.s32.totalorder %s4547_s15, %s2992_s9 }
 0x2e7   : > { %p2989_p7 = pnand %p2988_p3, %p3308_p6  ;;  %p2995_p5 = scmp.lt.s32.totalorder %s2993_s16, %s2987_s13 }
 0x2e9   : > { %p2990_p10 = pneg %p2989_p7  ;;  %p2996_p0 = por %p2995_p5, %p2994_p13 }
 0x2eb   : > { %p2997_p11 = pnand %p2996_p0, %p2990_p10 }
 0x35c   : > { %v1770_v56 = vpop.xlane.xlu1 %1769 }
 0x35d   : > { %1772 = vst.msk [vmem:[%s316_s26] sm:$0xff] %vm1771_vm11, %v1770_v56 }
 0x35e   : > { %v1789_v1 = vpop.xlane.xlu0 %1788 }
 0x35f   : > { %3000 = shalt.err (!%p2997_p11)
}
 0x360   : > { %s3001_s19 = scalar_lea.hbm %s4545_s12, 128  ;;  %s3005_s14 = scalar_lea.hbm %s4630_s5, 256 }
 0x361   : > { %p3002_p9 = scmp.ne.s32.totalorder %s4545_s12, %s3001_s19  ;;  %p3006_p1 = scmp.lt.u32.totalorder %s4545_s12, %s4630_s5 }
 0x362   : > { %p3007_p4 = scmp.lt.u32.totalorder %s3005_s14, %s3001_s19  ;;  %p3009_p3 = scmp.lt.u32.totalorder %s3001_s19, %s4545_s12 }
 0x363   : > { %p3003_p12 = pnand %p3002_p9, %p3308_p6 }
 0x364   : > { %p3008_p8 = por %p3007_p4, %p3006_p1 }
 0x365   : > { %p3004_p2 = pneg %p3003_p12 }
 0x366   : > { %p3010_p7 = por %p3009_p3, %p3008_p8 }
 0x368   : > { %p3011_p10 = pnand %p3010_p7, %p3004_p2 }
 0x36a   : > { %3014 = shalt.err (!%p3011_p10)
}
 0x36b   : > { %2301 = dma.vmem_to_hbm [thread:$0]  (%p3308_p6), %s4547_s15, 128, %s4545_s12, %s4557_s7   ;;  %1790 = vst.msk [vmem:[%s4539_s17] sm:$0xff] %vm1771_vm11, %v1789_v1 }
 0x36c   : > { %s3015_s13 = scalar_lea.vmem %s4555_s29, 128  ;;  %s3128_s27 = smov [#allocation14]  }
 0x36d   : > { %p3016_p13 = scmp.ne.s32.totalorder %s4555_s29, %s3015_s13  ;;  %s3019_s9 = sshll.u32 %s3128_s27, 4  ;;  %s3020_s9 = int_to_ptr.vmem [resolvable:$false] %s3019_s9 }
 0x36e   : > { %s3021_s16 = scalar_lea.vmem %s3020_s9, 256  ;;  %p3022_p11 = scmp.lt.s32.totalorder %s4555_s29, %s3020_s9 }
 0x36f   : > { %p3017_p5 = pnand %p3016_p13, %p3308_p6  ;;  %p3023_p9 = scmp.lt.s32.totalorder %s3021_s16, %s3015_s13 }
 0x371   : > { %p3018_p0 = pneg %p3017_p5  ;;  %p3024_p12 = por %p3023_p9, %p3022_p11 }
 0x373   : > { %p3025_p2 = pnand %p3024_p12, %p3018_p0 }
 0x375   : > { %3028 = shalt.err (!%p3025_p2)
}
 0x376   : > { %s3029_s15 = scalar_lea.hbm %s4553_s20, 128  ;;  %s3033_s19 = scalar_lea.hbm %s4631_s6, 256 }
 0x377   : > { %p3030_p1 = scmp.ne.s32.totalorder %s4553_s20, %s3029_s15  ;;  %p3034_p3 = scmp.lt.u32.totalorder %s4553_s20, %s4631_s6 }
 0x378   : > { %p3035_p7 = scmp.lt.u32.totalorder %s3033_s19, %s3029_s15  ;;  %p3037_p13 = scmp.lt.u32.totalorder %s3029_s15, %s4553_s20 }
 0x379   : > { %p3031_p4 = pnand %p3030_p1, %p3308_p6 }
 0x37a   : > { %p3036_p10 = por %p3035_p7, %p3034_p3 }
 0x37b   : > { %p3032_p8 = pneg %p3031_p4 }
 0x37c   : > { %p3038_p5 = por %p3037_p13, %p3036_p10 }
 0x37e   : > { %p3039_p0 = pnand %p3038_p5, %p3032_p8 }
 0x380   : > { %3042 = shalt.err (!%p3039_p0)
}
 0x381   : > { %2302 = dma.vmem_to_hbm [thread:$0]  (%p3308_p6), %s4555_s29, 128, %s4553_s20, %s4557_s7  }
 0x382 PF: > { %s1890_s14 = sand.u32 1, %s3081_s21   ;;  %p4885_p11 = scmp.ne.s32.totalorder %s4729_s28, 0 }
 0x383   : > { %p4886_p9 = scmp.ge.s32.totalorder %s3093_s24, 2  ;;  %s1891_s25 = scalar_lea.sflag [#allocation5], %s1890_s14 }
 0x385   : > { %p2321_p12 = pnand %p4886_p9, %p4885_p11 }
 0x387   : > { %3072 = dma.done.wait (!%p2321_p12), %s1891_s25, 512  }
 0x388   : > { %3074 = vsyncadd (!%p2321_p12), %s1891_s25, 4294966784  ;;  %s4887_s10 = sadd.s32 4294967294, %s3093_s24  }
 0x389   : > { %s1899_s13 = sand.u32 1, %s4887_s10  }
 0x38a   : > { %s1900_s27 = scalar_lea.sflag [#allocation13], %s1899_s13 }
 0x38b   : > { %3076 = dma.done.wait (!%p2321_p12), %s1900_s27, 256  }
 0x38c   : > { %3078 = vsyncadd (!%p2321_p12), %s1900_s27, 4294967040  ;;  %p25_p6 = scmp.ge.s32.totalorder %s3294_s18, 4   ;;  %s4888_s21 = smov %s3085_s22 }
 0x38d   : > { %s4889_s22 = smov %s3089_s23  ;;  %s4890_s23 = smov %s3304_s8 }
 0x38e   : > { %s4891_s24 = smov %s3294_s18  ;;  %27 = sbr.rel (!%p25_p6) target bundleno = 9 (0x9), region = 125 }
 0x395   :  { %1914 = vsyncpa [#allocation4], 1 }
 0x396   :  { %1916 = vsyncpa [#allocation4 + $0x1], 1 }
 0x397   :  { %1917 = vsyncpa [#allocation7], 1 }
 0x398   :  { %1918 = vsyncpa [#allocation10], 1 }
 0x399   :  { %1919 = vsyncpa [#allocation5], 1 }
 0x39a   :  { %1921 = vsyncpa [#allocation5 + $0x1], 1 }
 0x39b   :  { %1922 = vsyncpa [#allocation13], 1 }
 0x39c   :  { %1924 = vsyncpa [#allocation13 + $0x1], 1 }

</bundles_post_ra>
